<compile_context>
chip_gen: v7x
topology: tpu7x:2x2x1
jax: 0.10.0
libtpu: 0.0.40
codegen_flags: <defaults>
</compile_context>

<pallas_src>
import math

import jax
import jax.numpy as jnp
from jax import lax
from jax.experimental import pallas as pl
from jax.experimental.pallas import tpu as pltpu

D_MODEL = 32
N_HEADS = 4
D_K = D_MODEL // N_HEADS
D_FF = 64
N_LAYERS = 2
LN_EPS = 1e-12                      # ESPnet LayerNorm eps
NEG_INF = float(jnp.finfo(jnp.float32).min)


# ----------------------------------------------------------------------------
# Fused Pallas kernel: conv2 matmul + embed Linear + PosEnc + 2 encoder layers
# + after_norm, one batch element per grid step.
# ----------------------------------------------------------------------------
def fused_encoder_kernel(patches_ref, pe_ref, mask_ref,
                         convw_ref, convb_ref, outw_ref, outb_ref,
                         ln1g_ref, ln1b_ref, wqkv_ref, bqkv_ref, wo_ref, bo_ref,
                         ln2g_ref, ln2b_ref, w1_ref, b1_ref, w2_ref, b2_ref,
                         afg_ref, afb_ref,
                         o_ref):
    """patches: (1, Wo, T, 9*C)  im2col rows for this batch element (freq-major)
       pe:      (T, D)           positional encoding
       mask:    (1, 1, T)        1.0 = valid key position
       layer weights are stacked along a leading layer axis (L, ...);
       Q/K/V weights are head-split + concatenated: (L, 3H, D, D_K)."""
    D, H, DK = D_MODEL, N_HEADS, D_K
    Wo = patches_ref.shape[1]
    T = pe_ref.shape[0]

    def ln(v, g, b):
        mu = jnp.mean(v, axis=-1, keepdims=True)
        var = jnp.mean((v - mu) ** 2, axis=-1, keepdims=True)
        return (v - mu) * lax.rsqrt(var + LN_EPS) * g + b

    # ---- conv2 (im2col matmul) algebraically folded with the embedding Linear ----
    # x_embed = sum_f relu(patches[f] @ W2 + b2) @ W_out[f]     (no (T, F*C) regroup)
    x = None
    for f in range(Wo):                                               # static unroll (Wo=4)
        hc = jnp.maximum(
            jnp.dot(patches_ref[0, f], convw_ref[...],
                    preferred_element_type=jnp.float32) + convb_ref[...], 0.0)
        term = jnp.dot(hc, outw_ref[f], preferred_element_type=jnp.float32)
        x = term if x is None else x + term
    x = (x + outb_ref[...]) * math.sqrt(float(D)) + pe_ref[...]       # (T, D)

    # ---- mask bias, hoisted once (shared by all layers / heads) ----
    mask = mask_ref[0]                                                # (1, T)
    bias = jnp.where(mask > 0, 0.0, NEG_INF)[None]                    # (1, 1, T) additive bias
    pmask = (mask > 0).astype(jnp.float32)[None]                      # (1, 1, T) post-softmax zero

    scale = 1.0 / math.sqrt(DK)
    for l in range(N_LAYERS):                                         # static unroll (L=2)
        # -------- multi-head self-attention (normalize_before), heads batched --------
        x1 = ln(x, ln1g_ref[l], ln1b_ref[l])                          # (T, D)
        x1h = jnp.broadcast_to(x1[None], (3 * H, T, D))               # leading batch dim only
        qkv = jnp.einsum('htd,hdk->htk', x1h, wqkv_ref[l],
                         preferred_element_type=jnp.float32) + bqkv_ref[l]   # (3H, T, DK)
        q = qkv[0:H]                                                  # leading-dim slices only
        k = qkv[H:2 * H]
        v = qkv[2 * H:3 * H]

        s = jnp.einsum('hqk,hsk->hqs', q, k,
                       preferred_element_type=jnp.float32) * scale + bias    # (H, T, T)
        smax = jnp.max(s, axis=-1, keepdims=True)
        e = jnp.exp(s - smax)
        p = e * pl.reciprocal(jnp.sum(e, axis=-1, keepdims=True), approx=False)
        p = p * pmask                                                 # masked_fill(0) after softmax
        ctx = jnp.einsum('hqs,hsk->hqk', p, v,
                         preferred_element_type=jnp.float32)          # (H, T, DK)
        att = jnp.einsum('hqk,hkd->hqd', ctx, wo_ref[l],
                         preferred_element_type=jnp.float32)          # (H, T, D)
        x = x + jnp.sum(att, axis=0) + bo_ref[l]

        # -------- position-wise feed forward --------
        x2 = ln(x, ln2g_ref[l], ln2b_ref[l])
        h1 = jnp.maximum(jnp.dot(x2, w1_ref[l],
                                 preferred_element_type=jnp.float32) + b1_ref[l], 0.0)
        x = x + jnp.dot(h1, w2_ref[l], preferred_element_type=jnp.float32) + b2_ref[l]

    # ---- after_norm ----
    o_ref[0] = ln(x, afg_ref[...], afb_ref[...])
    # TODO(synk): for real ASR sizes (T in the hundreds) convert the attention body to a
    # flash-style q-block x kv-block grid with online softmax instead of full (T,T) scores.


# ----------------------------------------------------------------------------
# Wrappers (glue: conv1 front-end, im2col, weight packing, specs)
# ----------------------------------------------------------------------------
def positional_encoding(T, d):
    pos = jnp.arange(T, dtype=jnp.float32)[:, None]
    div = jnp.exp(jnp.arange(0, d, 2, dtype=jnp.float32) * -(math.log(10000.0) / d))
    pe = jnp.zeros((T, d), jnp.float32)
    pe = pe.at[:, 0::2].set(jnp.sin(pos * div))
    pe = pe.at[:, 1::2].set(jnp.cos(pos * div))
    return pe


def conv2d_subsampling_frontend(feats, params):
    """conv1 (Cin=1, k=3, s=2) + ReLU in plain XLA, then im2col patches for conv2,
    grouped by output frequency: (B, Wo, Ho, 3*3*C) with (kh, kw, cin) column order."""
    # TODO(synk): conv1 (Cin=1 -> im2col K=9) is too narrow to benefit from a Pallas MXU
    # kernel, so it stays as lax.conv in XLA; conv2 (K=288) is fused into the main kernel.
    B, T, F = feats.shape
    x = feats[:, :, :, None]                                          # NHWC (B, T, F, 1)
    w1 = params['conv1_w'].transpose(2, 3, 1, 0)                      # (KH, KW, Cin, Cout)
    x = lax.conv_general_dilated(x, w1, window_strides=(2, 2), padding='VALID',
                                 dimension_numbers=('NHWC', 'HWIO', 'NHWC'))
    x = jnp.maximum(x + params['conv1_b'][None, None, None, :], 0.0)  # (B, T1, F1, C)

    _, H1, W1, C = x.shape
    KH = KW = 3
    s = 2
    Ho = (H1 - KH) // s + 1
    Wo = (W1 - KW) // s + 1
    cols = []
    for i in range(KH):
        for j in range(KW):
            cols.append(x[:, i:i + s * (Ho - 1) + 1:s, j:j + s * (Wo - 1) + 1:s, :])
    patches = jnp.stack(cols, axis=3).reshape(B, Ho, Wo, KH * KW * C)  # (kh, kw, cin) order
    patches = patches.transpose(0, 2, 1, 3)                            # (B, Wo, Ho, 9*C)
    return patches, Ho, Wo


def pack_encoder_weights(params, Fp):
    """Head-split + concat QKV, head-split W_o, stack per-layer weights along a layer
    axis, group the embedding Linear rows by frequency (ESPnet flattens as (c, f))."""
    C, D, H, DK = D_MODEL, D_MODEL, N_HEADS, D_K

    conv2_w = params['conv2_w'].transpose(2, 3, 1, 0).reshape(3 * 3 * C, C)   # (288, C)
    conv2_b = params['conv2_b'].reshape(1, C)
    # out_w rows are ordered (c, f): row = c*Fp + f  ->  per-frequency (C, D) blocks.
    out_w_blocks = params['out_w'].reshape(C, Fp, D).transpose(1, 0, 2)        # (Fp, C, D)

    layers = params['layers']

    def stk(name):
        return jnp.stack([lp[name] for lp in layers], axis=0)

    def hw(lp, name):   # (D, D), cols grouped by head -> (H, D, DK)
        return lp[name].reshape(D, H, DK).transpose(1, 0, 2)

    def hb(lp, name):   # (1, D) -> (H, 1, DK)
        return lp[name].reshape(1, H, DK).transpose(1, 0, 2)

    wqkv = jnp.stack([jnp.concatenate([hw(lp, 'wq'), hw(lp, 'wk'), hw(lp, 'wv')], axis=0)
                      for lp in layers], 0)                                     # (L, 3H, D, DK)
    bqkv = jnp.stack([jnp.concatenate([hb(lp, 'bq'), hb(lp, 'bk'), hb(lp, 'bv')], axis=0)
                      for lp in layers], 0)                                     # (L, 3H, 1, DK)
    wo_h = jnp.stack([lp['wo'].reshape(H, DK, D) for lp in layers], 0)          # (L, H, DK, D)

    stacked = (stk('ln1_g'), stk('ln1_b'), wqkv, bqkv, wo_h, stk('bo'),
               stk('ln2_g'), stk('ln2_b'), stk('w1'), stk('b1'), stk('w2'), stk('b2'))
    return conv2_w, conv2_b, out_w_blocks, stacked


def xformer_encoder_forward(feats, mask_bool, params):
    B = feats.shape[0]
    patches, Tp, Fp = conv2d_subsampling_frontend(feats, params)

    # ESPnet Conv2dSubsampling mask: x_mask[:, :, :-2:2][:, :, :-2:2]
    mask_sub = mask_bool[:, :, :-2:2][:, :, :-2:2]
    mask_f = mask_sub.astype(jnp.float32)                               # (B, 1, Tp)
    olens = jnp.sum(mask_sub.astype(jnp.int32), axis=-1).reshape(B)     # trivial, done in XLA

    pe = positional_encoding(Tp, D_MODEL)                               # (Tp, D)
    conv2_w, conv2_b, out_w_blocks, stacked = pack_encoder_weights(params, Fp)

    def full_spec(a):                 # whole array resident, same block every grid step
        zeros = (0,) * a.ndim
        return pl.BlockSpec(a.shape, lambda b: zeros)

    def batch_spec(a):                # one batch element per grid step
        trailing = (0,) * (a.ndim - 1)
        return pl.BlockSpec((1,) + a.shape[1:], lambda b: (b,) + trailing)

    inputs = (patches, pe, mask_f,
              conv2_w, conv2_b, out_w_blocks, params['out_b'],
              *stacked,
              params['after_norm_g'], params['after_norm_b'])
    in_specs = [batch_spec(patches), full_spec(pe), batch_spec(mask_f)]
    in_specs += [full_spec(a) for a in inputs[3:]]

    xs_out = pl.pallas_call(
        fused_encoder_kernel,
        grid=(B,),
        out_shape=jax.ShapeDtypeStruct((B, Tp, D_MODEL), jnp.float32),
        in_specs=in_specs,
        out_specs=pl.BlockSpec((1, Tp, D_MODEL), lambda b: (b, 0, 0)),
        compiler_params=pltpu.CompilerParams(
            dimension_semantics=("parallel",),
            vmem_limit_bytes=32 * 1024 * 1024),
    )(*inputs)

    return xs_out, olens, None


# ----------------------------------------------------------------------------
# Deterministic synthetic parameters
# ----------------------------------------------------------------------------
def init_params(key, idim):
    D = D_MODEL
    f1 = (idim - 3) // 2 + 1
    f2 = (f1 - 3) // 2 + 1
    lin_in = D * f2
    keys = iter(jax.random.split(key, 64))

    def nrm(shape, scale=0.05):
        return jax.random.normal(next(keys), shape, jnp.float32) * scale

    params = {
        'conv1_w': nrm((D, 1, 3, 3)), 'conv1_b': nrm((D,)),
        'conv2_w': nrm((D, D, 3, 3)), 'conv2_b': nrm((D,)),
        'out_w': nrm((lin_in, D)), 'out_b': nrm((1, D)),
        'after_norm_g': jnp.ones((1, D), jnp.float32),
        'after_norm_b': jnp.zeros((1, D), jnp.float32),
        'layers': [],
    }
    for _ in range(N_LAYERS):
        lp = dict(
            ln1_g=jnp.ones((1, D), jnp.float32), ln1_b=jnp.zeros((1, D), jnp.float32),
            wq=nrm((D, D)), bq=nrm((1, D)),
            wk=nrm((D, D)), bk=nrm((1, D)),
            wv=nrm((D, D)), bv=nrm((1, D)),
            wo=nrm((D, D)), bo=nrm((1, D)),
            ln2_g=jnp.ones((1, D), jnp.float32), ln2_b=jnp.zeros((1, D), jnp.float32),
            w1=nrm((D, D_FF)), b1=nrm((1, D_FF)),
            w2=nrm((D_FF, D)), b2=nrm((1, D)),
        )
        params['layers'].append(lp)
    return params


# ----------------------------------------------------------------------------
if __name__ == "__main__":
    key = jax.random.PRNGKey(0)
    kf, kp = jax.random.split(key)

    B, T, F = 2, 36, 20                       # T subsamples to 8, flattened feature dim -> 128
    lengths = jnp.array([36, 20], dtype=jnp.int32)
    feats = jax.random.normal(kf, (B, T, F), jnp.float32)
    mask = jnp.arange(T)[None, None, :] < lengths[:, None, None]   # (B, 1, T) bool pad mask

    params = init_params(kp, idim=F)

    xs_pad, olens, _ = xformer_encoder_forward(feats, mask, params)
    jax.block_until_ready((xs_pad, olens))

    assert xs_pad.shape == (B, 8, D_MODEL)
    assert bool(jnp.all(jnp.isfinite(xs_pad)))
    assert olens.tolist() == [8, 5]
    print("KERNEL_OK")
</pallas_src>

<mosaic_0001>
module attributes {stable_mosaic.version = 11 : i64} {
  func.func @fused_encoder_kernel(%arg0: i32, %arg1: memref<1x4x8x288xf32, #tpu.memory_space<vmem>>, %arg2: memref<8x32xf32, #tpu.memory_space<vmem>>, %arg3: memref<1x1x8xf32, #tpu.memory_space<vmem>>, %arg4: memref<288x32xf32, #tpu.memory_space<vmem>>, %arg5: memref<1x32xf32, #tpu.memory_space<vmem>>, %arg6: memref<4x32x32xf32, #tpu.memory_space<vmem>>, %arg7: memref<1x32xf32, #tpu.memory_space<vmem>>, %arg8: memref<2x1x32xf32, #tpu.memory_space<vmem>>, %arg9: memref<2x1x32xf32, #tpu.memory_space<vmem>>, %arg10: memref<2x12x32x8xf32, #tpu.memory_space<vmem>>, %arg11: memref<2x12x1x8xf32, #tpu.memory_space<vmem>>, %arg12: memref<2x4x8x32xf32, #tpu.memory_space<vmem>>, %arg13: memref<2x1x32xf32, #tpu.memory_space<vmem>>, %arg14: memref<2x1x32xf32, #tpu.memory_space<vmem>>, %arg15: memref<2x1x32xf32, #tpu.memory_space<vmem>>, %arg16: memref<2x32x64xf32, #tpu.memory_space<vmem>>, %arg17: memref<2x1x64xf32, #tpu.memory_space<vmem>>, %arg18: memref<2x64x32xf32, #tpu.memory_space<vmem>>, %arg19: memref<2x1x32xf32, #tpu.memory_space<vmem>>, %arg20: memref<1x32xf32, #tpu.memory_space<vmem>>, %arg21: memref<1x32xf32, #tpu.memory_space<vmem>>, %arg22: memref<1x8x32xf32, #tpu.memory_space<vmem>>) attributes {dimension_semantics = [#tpu.dimension_semantics<parallel>], iteration_bounds = array<i64: 2>, scalar_prefetch = 0 : i64, scratch_operands = 0 : i64, tpu.core_type = #tpu.core_type<tc>, window_params = [{transform_indices = @transform_0, window_bounds = array<i64: 1, 4, 8, 288>}, {pipeline_mode = #tpu.pipeline_mode<synchronous>, transform_indices = @transform_1, window_bounds = array<i64: 8, 32>}, {transform_indices = @transform_2, window_bounds = array<i64: 1, 1, 8>}, {pipeline_mode = #tpu.pipeline_mode<synchronous>, transform_indices = @transform_3, window_bounds = array<i64: 288, 32>}, {pipeline_mode = #tpu.pipeline_mode<synchronous>, transform_indices = @transform_4, window_bounds = array<i64: 1, 32>}, {pipeline_mode = #tpu.pipeline_mode<synchronous>, transform_indices = @transform_5, window_bounds = array<i64: 4, 32, 32>}, {pipeline_mode = #tpu.pipeline_mode<synchronous>, transform_indices = @transform_6, window_bounds = array<i64: 1, 32>}, {pipeline_mode = #tpu.pipeline_mode<synchronous>, transform_indices = @transform_7, window_bounds = array<i64: 2, 1, 32>}, {pipeline_mode = #tpu.pipeline_mode<synchronous>, transform_indices = @transform_8, window_bounds = array<i64: 2, 1, 32>}, {pipeline_mode = #tpu.pipeline_mode<synchronous>, transform_indices = @transform_9, window_bounds = array<i64: 2, 12, 32, 8>}, {pipeline_mode = #tpu.pipeline_mode<synchronous>, transform_indices = @transform_10, window_bounds = array<i64: 2, 12, 1, 8>}, {pipeline_mode = #tpu.pipeline_mode<synchronous>, transform_indices = @transform_11, window_bounds = array<i64: 2, 4, 8, 32>}, {pipeline_mode = #tpu.pipeline_mode<synchronous>, transform_indices = @transform_12, window_bounds = array<i64: 2, 1, 32>}, {pipeline_mode = #tpu.pipeline_mode<synchronous>, transform_indices = @transform_13, window_bounds = array<i64: 2, 1, 32>}, {pipeline_mode = #tpu.pipeline_mode<synchronous>, transform_indices = @transform_14, window_bounds = array<i64: 2, 1, 32>}, {pipeline_mode = #tpu.pipeline_mode<synchronous>, transform_indices = @transform_15, window_bounds = array<i64: 2, 32, 64>}, {pipeline_mode = #tpu.pipeline_mode<synchronous>, transform_indices = @transform_16, window_bounds = array<i64: 2, 1, 64>}, {pipeline_mode = #tpu.pipeline_mode<synchronous>, transform_indices = @transform_17, window_bounds = array<i64: 2, 64, 32>}, {pipeline_mode = #tpu.pipeline_mode<synchronous>, transform_indices = @transform_18, window_bounds = array<i64: 2, 1, 32>}, {pipeline_mode = #tpu.pipeline_mode<synchronous>, transform_indices = @transform_19, window_bounds = array<i64: 1, 32>}, {pipeline_mode = #tpu.pipeline_mode<synchronous>, transform_indices = @transform_20, window_bounds = array<i64: 1, 32>}, {transform_indices = @transform_21, window_bounds = array<i64: 1, 8, 32>}]} {
    %c0 = arith.constant 0 : index
    %c0_0 = arith.constant 0 : index
    %c0_1 = arith.constant 0 : index
    %c0_2 = arith.constant 0 : index
    %0 = vector.load %arg1[%c0, %c0_0, %c0_1, %c0_2] : memref<1x4x8x288xf32, #tpu.memory_space<vmem>>, vector<1x1x8x288xf32>
    %1 = vector.shape_cast %0 : vector<1x1x8x288xf32> to vector<8x288xf32>
    %c0_3 = arith.constant 0 : index
    %c0_4 = arith.constant 0 : index
    %2 = vector.load %arg4[%c0_3, %c0_4] : memref<288x32xf32, #tpu.memory_space<vmem>>, vector<288x32xf32>
    %cst = arith.constant dense<0.000000e+00> : vector<8x32xf32>
    %3 = tpu.matmul %1, %2, %cst {dimension_numbers = #tpu.dot_dimension_numbers<[1], [0], [0], [1], [0, 0, 1, 1], [], []>} : vector<8x288xf32>, vector<288x32xf32>, vector<8x32xf32> -> vector<8x32xf32>
    %c0_5 = arith.constant 0 : index
    %c0_6 = arith.constant 0 : index
    %4 = vector.load %arg5[%c0_5, %c0_6] : memref<1x32xf32, #tpu.memory_space<vmem>>, vector<1x32xf32>
    %5 = vector.broadcast %4 : vector<1x32xf32> to vector<8x32xf32>
    %6 = arith.addf %3, %5 : vector<8x32xf32>
    %cst_7 = arith.constant 0.000000e+00 : f32
    %7 = vector.broadcast %cst_7 : f32 to vector<8x32xf32>
    %8 = arith.maximumf %6, %7 : vector<8x32xf32>
    %c0_8 = arith.constant 0 : index
    %c0_9 = arith.constant 0 : index
    %c0_10 = arith.constant 0 : index
    %9 = vector.load %arg6[%c0_8, %c0_9, %c0_10] : memref<4x32x32xf32, #tpu.memory_space<vmem>>, vector<1x32x32xf32>
    %10 = vector.shape_cast %9 : vector<1x32x32xf32> to vector<32x32xf32>
    %cst_11 = arith.constant dense<0.000000e+00> : vector<8x32xf32>
    %11 = tpu.matmul %8, %10, %cst_11 {dimension_numbers = #tpu.dot_dimension_numbers<[1], [0], [0], [1], [0, 0, 1, 1], [], []>} : vector<8x32xf32>, vector<32x32xf32>, vector<8x32xf32> -> vector<8x32xf32>
    %c0_12 = arith.constant 0 : index
    %c1 = arith.constant 1 : index
    %c0_13 = arith.constant 0 : index
    %c0_14 = arith.constant 0 : index
    %12 = vector.load %arg1[%c0_12, %c1, %c0_13, %c0_14] : memref<1x4x8x288xf32, #tpu.memory_space<vmem>>, vector<1x1x8x288xf32>
    %13 = vector.shape_cast %12 : vector<1x1x8x288xf32> to vector<8x288xf32>
    %c0_15 = arith.constant 0 : index
    %c0_16 = arith.constant 0 : index
    %14 = vector.load %arg4[%c0_15, %c0_16] : memref<288x32xf32, #tpu.memory_space<vmem>>, vector<288x32xf32>
    %cst_17 = arith.constant dense<0.000000e+00> : vector<8x32xf32>
    %15 = tpu.matmul %13, %14, %cst_17 {dimension_numbers = #tpu.dot_dimension_numbers<[1], [0], [0], [1], [0, 0, 1, 1], [], []>} : vector<8x288xf32>, vector<288x32xf32>, vector<8x32xf32> -> vector<8x32xf32>
    %c0_18 = arith.constant 0 : index
    %c0_19 = arith.constant 0 : index
    %16 = vector.load %arg5[%c0_18, %c0_19] : memref<1x32xf32, #tpu.memory_space<vmem>>, vector<1x32xf32>
    %17 = vector.broadcast %16 : vector<1x32xf32> to vector<8x32xf32>
    %18 = arith.addf %15, %17 : vector<8x32xf32>
    %cst_20 = arith.constant 0.000000e+00 : f32
    %19 = vector.broadcast %cst_20 : f32 to vector<8x32xf32>
    %20 = arith.maximumf %18, %19 : vector<8x32xf32>
    %c1_21 = arith.constant 1 : index
    %c0_22 = arith.constant 0 : index
    %c0_23 = arith.constant 0 : index
    %21 = vector.load %arg6[%c1_21, %c0_22, %c0_23] : memref<4x32x32xf32, #tpu.memory_space<vmem>>, vector<1x32x32xf32>
    %22 = vector.shape_cast %21 : vector<1x32x32xf32> to vector<32x32xf32>
    %cst_24 = arith.constant dense<0.000000e+00> : vector<8x32xf32>
    %23 = tpu.matmul %20, %22, %cst_24 {dimension_numbers = #tpu.dot_dimension_numbers<[1], [0], [0], [1], [0, 0, 1, 1], [], []>} : vector<8x32xf32>, vector<32x32xf32>, vector<8x32xf32> -> vector<8x32xf32>
    %24 = arith.addf %11, %23 : vector<8x32xf32>
    %c0_25 = arith.constant 0 : index
    %c2 = arith.constant 2 : index
    %c0_26 = arith.constant 0 : index
    %c0_27 = arith.constant 0 : index
    %25 = vector.load %arg1[%c0_25, %c2, %c0_26, %c0_27] : memref<1x4x8x288xf32, #tpu.memory_space<vmem>>, vector<1x1x8x288xf32>
    %26 = vector.shape_cast %25 : vector<1x1x8x288xf32> to vector<8x288xf32>
    %c0_28 = arith.constant 0 : index
    %c0_29 = arith.constant 0 : index
    %27 = vector.load %arg4[%c0_28, %c0_29] : memref<288x32xf32, #tpu.memory_space<vmem>>, vector<288x32xf32>
    %cst_30 = arith.constant dense<0.000000e+00> : vector<8x32xf32>
    %28 = tpu.matmul %26, %27, %cst_30 {dimension_numbers = #tpu.dot_dimension_numbers<[1], [0], [0], [1], [0, 0, 1, 1], [], []>} : vector<8x288xf32>, vector<288x32xf32>, vector<8x32xf32> -> vector<8x32xf32>
    %c0_31 = arith.constant 0 : index
    %c0_32 = arith.constant 0 : index
    %29 = vector.load %arg5[%c0_31, %c0_32] : memref<1x32xf32, #tpu.memory_space<vmem>>, vector<1x32xf32>
    %30 = vector.broadcast %29 : vector<1x32xf32> to vector<8x32xf32>
    %31 = arith.addf %28, %30 : vector<8x32xf32>
    %cst_33 = arith.constant 0.000000e+00 : f32
    %32 = vector.broadcast %cst_33 : f32 to vector<8x32xf32>
    %33 = arith.maximumf %31, %32 : vector<8x32xf32>
    %c2_34 = arith.constant 2 : index
    %c0_35 = arith.constant 0 : index
    %c0_36 = arith.constant 0 : index
    %34 = vector.load %arg6[%c2_34, %c0_35, %c0_36] : memref<4x32x32xf32, #tpu.memory_space<vmem>>, vector<1x32x32xf32>
    %35 = vector.shape_cast %34 : vector<1x32x32xf32> to vector<32x32xf32>
    %cst_37 = arith.constant dense<0.000000e+00> : vector<8x32xf32>
    %36 = tpu.matmul %33, %35, %cst_37 {dimension_numbers = #tpu.dot_dimension_numbers<[1], [0], [0], [1], [0, 0, 1, 1], [], []>} : vector<8x32xf32>, vector<32x32xf32>, vector<8x32xf32> -> vector<8x32xf32>
    %37 = arith.addf %24, %36 : vector<8x32xf32>
    %c0_38 = arith.constant 0 : index
    %c3 = arith.constant 3 : index
    %c0_39 = arith.constant 0 : index
    %c0_40 = arith.constant 0 : index
    %38 = vector.load %arg1[%c0_38, %c3, %c0_39, %c0_40] : memref<1x4x8x288xf32, #tpu.memory_space<vmem>>, vector<1x1x8x288xf32>
    %39 = vector.shape_cast %38 : vector<1x1x8x288xf32> to vector<8x288xf32>
    %c0_41 = arith.constant 0 : index
    %c0_42 = arith.constant 0 : index
    %40 = vector.load %arg4[%c0_41, %c0_42] : memref<288x32xf32, #tpu.memory_space<vmem>>, vector<288x32xf32>
    %cst_43 = arith.constant dense<0.000000e+00> : vector<8x32xf32>
    %41 = tpu.matmul %39, %40, %cst_43 {dimension_numbers = #tpu.dot_dimension_numbers<[1], [0], [0], [1], [0, 0, 1, 1], [], []>} : vector<8x288xf32>, vector<288x32xf32>, vector<8x32xf32> -> vector<8x32xf32>
    %c0_44 = arith.constant 0 : index
    %c0_45 = arith.constant 0 : index
    %42 = vector.load %arg5[%c0_44, %c0_45] : memref<1x32xf32, #tpu.memory_space<vmem>>, vector<1x32xf32>
    %43 = vector.broadcast %42 : vector<1x32xf32> to vector<8x32xf32>
    %44 = arith.addf %41, %43 : vector<8x32xf32>
    %cst_46 = arith.constant 0.000000e+00 : f32
    %45 = vector.broadcast %cst_46 : f32 to vector<8x32xf32>
    %46 = arith.maximumf %44, %45 : vector<8x32xf32>
    %c3_47 = arith.constant 3 : index
    %c0_48 = arith.constant 0 : index
    %c0_49 = arith.constant 0 : index
    %47 = vector.load %arg6[%c3_47, %c0_48, %c0_49] : memref<4x32x32xf32, #tpu.memory_space<vmem>>, vector<1x32x32xf32>
    %48 = vector.shape_cast %47 : vector<1x32x32xf32> to vector<32x32xf32>
    %cst_50 = arith.constant dense<0.000000e+00> : vector<8x32xf32>
    %49 = tpu.matmul %46, %48, %cst_50 {dimension_numbers = #tpu.dot_dimension_numbers<[1], [0], [0], [1], [0, 0, 1, 1], [], []>} : vector<8x32xf32>, vector<32x32xf32>, vector<8x32xf32> -> vector<8x32xf32>
    %50 = arith.addf %37, %49 : vector<8x32xf32>
    %c0_51 = arith.constant 0 : index
    %c0_52 = arith.constant 0 : index
    %51 = vector.load %arg7[%c0_51, %c0_52] : memref<1x32xf32, #tpu.memory_space<vmem>>, vector<1x32xf32>
    %52 = vector.broadcast %51 : vector<1x32xf32> to vector<8x32xf32>
    %53 = arith.addf %50, %52 : vector<8x32xf32>
    %cst_53 = arith.constant 5.65685415 : f32
    %54 = vector.broadcast %cst_53 : f32 to vector<8x32xf32>
    %55 = arith.mulf %53, %54 : vector<8x32xf32>
    %c0_54 = arith.constant 0 : index
    %c0_55 = arith.constant 0 : index
    %56 = vector.load %arg2[%c0_54, %c0_55] : memref<8x32xf32, #tpu.memory_space<vmem>>, vector<8x32xf32>
    %57 = arith.addf %55, %56 : vector<8x32xf32>
    %c0_56 = arith.constant 0 : index
    %c0_57 = arith.constant 0 : index
    %c0_58 = arith.constant 0 : index
    %58 = vector.load %arg3[%c0_56, %c0_57, %c0_58] : memref<1x1x8xf32, #tpu.memory_space<vmem>>, vector<1x1x8xf32>
    %59 = vector.shape_cast %58 : vector<1x1x8xf32> to vector<1x8xf32>
    %cst_59 = arith.constant 0.000000e+00 : f32
    %60 = vector.broadcast %cst_59 : f32 to vector<1x8xf32>
    %61 = arith.cmpf ogt, %59, %60 : vector<1x8xf32>
    %cst_60 = arith.constant 0.000000e+00 : f32
    %cst_61 = arith.constant -3.40282347E+38 : f32
    %62 = vector.broadcast %cst_60 : f32 to vector<1x8xf32>
    %63 = vector.broadcast %cst_61 : f32 to vector<1x8xf32>
    %64 = arith.select %61, %62, %63 : vector<1x8xi1>, vector<1x8xf32>
    %65 = vector.shape_cast %64 : vector<1x8xf32> to vector<1x1x8xf32>
    %cst_62 = arith.constant 0.000000e+00 : f32
    %66 = vector.broadcast %cst_62 : f32 to vector<1x8xf32>
    %67 = arith.cmpf ogt, %59, %66 : vector<1x8xf32>
    %68 = arith.extui %67 : vector<1x8xi1> to vector<1x8xi32>
    %69 = arith.sitofp %68 : vector<1x8xi32> to vector<1x8xf32>
    %70 = vector.shape_cast %69 : vector<1x8xf32> to vector<1x1x8xf32>
    %c0_63 = arith.constant 0 : index
    %c0_64 = arith.constant 0 : index
    %c0_65 = arith.constant 0 : index
    %71 = vector.load %arg8[%c0_63, %c0_64, %c0_65] : memref<2x1x32xf32, #tpu.memory_space<vmem>>, vector<1x1x32xf32>
    %72 = vector.shape_cast %71 : vector<1x1x32xf32> to vector<1x32xf32>
    %c0_66 = arith.constant 0 : index
    %c0_67 = arith.constant 0 : index
    %c0_68 = arith.constant 0 : index
    %73 = vector.load %arg9[%c0_66, %c0_67, %c0_68] : memref<2x1x32xf32, #tpu.memory_space<vmem>>, vector<1x1x32xf32>
    %74 = vector.shape_cast %73 : vector<1x1x32xf32> to vector<1x32xf32>
    %cst_69 = arith.constant dense<0.000000e+00> : vector<8xf32>
    %75 = vector.multi_reduction <add>, %57, %cst_69 [1] : vector<8x32xf32> to vector<8xf32>
    %76 = vector.shape_cast %75 : vector<8xf32> to vector<8x1xf32>
    %cst_70 = arith.constant 3.200000e+01 : f32
    %77 = vector.broadcast %cst_70 : f32 to vector<8x1xf32>
    %78 = arith.divf %76, %77 : vector<8x1xf32>
    %79 = vector.broadcast %78 : vector<8x1xf32> to vector<8x32xf32>
    %80 = arith.subf %57, %79 : vector<8x32xf32>
    %81 = arith.mulf %80, %80 : vector<8x32xf32>
    %cst_71 = arith.constant dense<0.000000e+00> : vector<8xf32>
    %82 = vector.multi_reduction <add>, %81, %cst_71 [1] : vector<8x32xf32> to vector<8xf32>
    %83 = vector.shape_cast %82 : vector<8xf32> to vector<8x1xf32>
    %cst_72 = arith.constant 3.200000e+01 : f32
    %84 = vector.broadcast %cst_72 : f32 to vector<8x1xf32>
    %85 = arith.divf %83, %84 : vector<8x1xf32>
    %86 = vector.broadcast %78 : vector<8x1xf32> to vector<8x32xf32>
    %87 = arith.subf %57, %86 : vector<8x32xf32>
    %cst_73 = arith.constant 9.99999996E-13 : f32
    %88 = vector.broadcast %cst_73 : f32 to vector<8x1xf32>
    %89 = arith.addf %85, %88 : vector<8x1xf32>
    %90 = math.rsqrt %89 : vector<8x1xf32>
    %91 = vector.broadcast %90 : vector<8x1xf32> to vector<8x32xf32>
    %92 = arith.mulf %87, %91 : vector<8x32xf32>
    %93 = vector.broadcast %72 : vector<1x32xf32> to vector<8x32xf32>
    %94 = arith.mulf %92, %93 : vector<8x32xf32>
    %95 = vector.broadcast %74 : vector<1x32xf32> to vector<8x32xf32>
    %96 = arith.addf %94, %95 : vector<8x32xf32>
    %97 = vector.shape_cast %96 : vector<8x32xf32> to vector<1x8x32xf32>
    %98 = vector.shape_cast %97 : vector<1x8x32xf32> to vector<1x8x32xf32>
    %99 = vector.broadcast %98 : vector<1x8x32xf32> to vector<12x8x32xf32>
    %c0_74 = arith.constant 0 : index
    %c0_75 = arith.constant 0 : index
    %c0_76 = arith.constant 0 : index
    %c0_77 = arith.constant 0 : index
    %100 = vector.load %arg10[%c0_74, %c0_75, %c0_76, %c0_77] : memref<2x12x32x8xf32, #tpu.memory_space<vmem>>, vector<1x12x32x8xf32>
    %101 = vector.shape_cast %100 : vector<1x12x32x8xf32> to vector<12x32x8xf32>
    "tpu.trace_start"() <{level = 10 : i32, message = "htd,hdk->htk"}> : () -> ()
    %cst_78 = arith.constant dense<0.000000e+00> : vector<12x8x8xf32>
    %102 = tpu.matmul %99, %101, %cst_78 {dimension_numbers = #tpu.dot_dimension_numbers<[2], [1], [1], [2], [0, 0, 0, 1, 1, 2], [0], [0]>} : vector<12x8x32xf32>, vector<12x32x8xf32>, vector<12x8x8xf32> -> vector<12x8x8xf32>
    "tpu.trace_stop"() : () -> ()
    %c0_79 = arith.constant 0 : index
    %c0_80 = arith.constant 0 : index
    %c0_81 = arith.constant 0 : index
    %c0_82 = arith.constant 0 : index
    %103 = vector.load %arg11[%c0_79, %c0_80, %c0_81, %c0_82] : memref<2x12x1x8xf32, #tpu.memory_space<vmem>>, vector<1x12x1x8xf32>
    %104 = vector.shape_cast %103 : vector<1x12x1x8xf32> to vector<12x1x8xf32>
    %105 = vector.broadcast %104 : vector<12x1x8xf32> to vector<12x8x8xf32>
    %106 = arith.addf %102, %105 : vector<12x8x8xf32>
    %107 = vector.extract_strided_slice %106 {offsets = [0, 0, 0], sizes = [4, 8, 8], strides = [1, 1, 1]} : vector<12x8x8xf32> to vector<4x8x8xf32>
    %108 = vector.extract_strided_slice %106 {offsets = [4, 0, 0], sizes = [4, 8, 8], strides = [1, 1, 1]} : vector<12x8x8xf32> to vector<4x8x8xf32>
    %109 = vector.extract_strided_slice %106 {offsets = [8, 0, 0], sizes = [4, 8, 8], strides = [1, 1, 1]} : vector<12x8x8xf32> to vector<4x8x8xf32>
    "tpu.trace_start"() <{level = 10 : i32, message = "hqk,hsk->hqs"}> : () -> ()
    %cst_83 = arith.constant dense<0.000000e+00> : vector<4x8x8xf32>
    %110 = tpu.matmul %107, %108, %cst_83 {dimension_numbers = #tpu.dot_dimension_numbers<[2], [2], [1], [1], [0, 0, 0, 1, 1, 1], [0], [0]>} : vector<4x8x8xf32>, vector<4x8x8xf32>, vector<4x8x8xf32> -> vector<4x8x8xf32>
    "tpu.trace_stop"() : () -> ()
    %cst_84 = arith.constant 0.353553385 : f32
    %111 = vector.broadcast %cst_84 : f32 to vector<4x8x8xf32>
    %112 = arith.mulf %110, %111 : vector<4x8x8xf32>
    %113 = vector.broadcast %65 : vector<1x1x8xf32> to vector<4x8x8xf32>
    %114 = arith.addf %112, %113 : vector<4x8x8xf32>
    %cst_85 = arith.constant dense<0xFF800000> : vector<4x8xf32>
    %115 = vector.multi_reduction <maximumf>, %114, %cst_85 [2] : vector<4x8x8xf32> to vector<4x8xf32>
    %116 = vector.shape_cast %115 : vector<4x8xf32> to vector<4x8x1xf32>
    %117 = vector.broadcast %116 : vector<4x8x1xf32> to vector<4x8x8xf32>
    %118 = arith.subf %114, %117 : vector<4x8x8xf32>
    %119 = math.exp %118 : vector<4x8x8xf32>
    %cst_86 = arith.constant dense<0.000000e+00> : vector<4x8xf32>
    %120 = vector.multi_reduction <add>, %119, %cst_86 [2] : vector<4x8x8xf32> to vector<4x8xf32>
    %121 = vector.shape_cast %120 : vector<4x8xf32> to vector<4x8x1xf32>
    %122 = tpu.reciprocal %121 : vector<4x8x1xf32> -> vector<4x8x1xf32>
    %123 = vector.broadcast %122 : vector<4x8x1xf32> to vector<4x8x8xf32>
    %124 = arith.mulf %119, %123 : vector<4x8x8xf32>
    %125 = vector.broadcast %70 : vector<1x1x8xf32> to vector<4x8x8xf32>
    %126 = arith.mulf %124, %125 : vector<4x8x8xf32>
    "tpu.trace_start"() <{level = 10 : i32, message = "hqs,hsk->hqk"}> : () -> ()
    %cst_87 = arith.constant dense<0.000000e+00> : vector<4x8x8xf32>
    %127 = tpu.matmul %126, %109, %cst_87 {dimension_numbers = #tpu.dot_dimension_numbers<[2], [1], [1], [2], [0, 0, 0, 1, 1, 2], [0], [0]>} : vector<4x8x8xf32>, vector<4x8x8xf32>, vector<4x8x8xf32> -> vector<4x8x8xf32>
    "tpu.trace_stop"() : () -> ()
    %c0_88 = arith.constant 0 : index
    %c0_89 = arith.constant 0 : index
    %c0_90 = arith.constant 0 : index
    %c0_91 = arith.constant 0 : index
    %128 = vector.load %arg12[%c0_88, %c0_89, %c0_90, %c0_91] : memref<2x4x8x32xf32, #tpu.memory_space<vmem>>, vector<1x4x8x32xf32>
    %129 = vector.shape_cast %128 : vector<1x4x8x32xf32> to vector<4x8x32xf32>
    "tpu.trace_start"() <{level = 10 : i32, message = "hqk,hkd->hqd"}> : () -> ()
    %cst_92 = arith.constant dense<0.000000e+00> : vector<4x8x32xf32>
    %130 = tpu.matmul %127, %129, %cst_92 {dimension_numbers = #tpu.dot_dimension_numbers<[2], [1], [1], [2], [0, 0, 0, 1, 1, 2], [0], [0]>} : vector<4x8x8xf32>, vector<4x8x32xf32>, vector<4x8x32xf32> -> vector<4x8x32xf32>
    "tpu.trace_stop"() : () -> ()
    %cst_93 = arith.constant dense<0.000000e+00> : vector<8x32xf32>
    %131 = vector.multi_reduction <add>, %130, %cst_93 [0] : vector<4x8x32xf32> to vector<8x32xf32>
    %132 = arith.addf %57, %131 : vector<8x32xf32>
    %c0_94 = arith.constant 0 : index
    %c0_95 = arith.constant 0 : index
    %c0_96 = arith.constant 0 : index
    %133 = vector.load %arg13[%c0_94, %c0_95, %c0_96] : memref<2x1x32xf32, #tpu.memory_space<vmem>>, vector<1x1x32xf32>
    %134 = vector.shape_cast %133 : vector<1x1x32xf32> to vector<1x32xf32>
    %135 = vector.broadcast %134 : vector<1x32xf32> to vector<8x32xf32>
    %136 = arith.addf %132, %135 : vector<8x32xf32>
    %c0_97 = arith.constant 0 : index
    %c0_98 = arith.constant 0 : index
    %c0_99 = arith.constant 0 : index
    %137 = vector.load %arg14[%c0_97, %c0_98, %c0_99] : memref<2x1x32xf32, #tpu.memory_space<vmem>>, vector<1x1x32xf32>
    %138 = vector.shape_cast %137 : vector<1x1x32xf32> to vector<1x32xf32>
    %c0_100 = arith.constant 0 : index
    %c0_101 = arith.constant 0 : index
    %c0_102 = arith.constant 0 : index
    %139 = vector.load %arg15[%c0_100, %c0_101, %c0_102] : memref<2x1x32xf32, #tpu.memory_space<vmem>>, vector<1x1x32xf32>
    %140 = vector.shape_cast %139 : vector<1x1x32xf32> to vector<1x32xf32>
    %cst_103 = arith.constant dense<0.000000e+00> : vector<8xf32>
    %141 = vector.multi_reduction <add>, %136, %cst_103 [1] : vector<8x32xf32> to vector<8xf32>
    %142 = vector.shape_cast %141 : vector<8xf32> to vector<8x1xf32>
    %cst_104 = arith.constant 3.200000e+01 : f32
    %143 = vector.broadcast %cst_104 : f32 to vector<8x1xf32>
    %144 = arith.divf %142, %143 : vector<8x1xf32>
    %145 = vector.broadcast %144 : vector<8x1xf32> to vector<8x32xf32>
    %146 = arith.subf %136, %145 : vector<8x32xf32>
    %147 = arith.mulf %146, %146 : vector<8x32xf32>
    %cst_105 = arith.constant dense<0.000000e+00> : vector<8xf32>
    %148 = vector.multi_reduction <add>, %147, %cst_105 [1] : vector<8x32xf32> to vector<8xf32>
    %149 = vector.shape_cast %148 : vector<8xf32> to vector<8x1xf32>
    %cst_106 = arith.constant 3.200000e+01 : f32
    %150 = vector.broadcast %cst_106 : f32 to vector<8x1xf32>
    %151 = arith.divf %149, %150 : vector<8x1xf32>
    %152 = vector.broadcast %144 : vector<8x1xf32> to vector<8x32xf32>
    %153 = arith.subf %136, %152 : vector<8x32xf32>
    %cst_107 = arith.constant 9.99999996E-13 : f32
    %154 = vector.broadcast %cst_107 : f32 to vector<8x1xf32>
    %155 = arith.addf %151, %154 : vector<8x1xf32>
    %156 = math.rsqrt %155 : vector<8x1xf32>
    %157 = vector.broadcast %156 : vector<8x1xf32> to vector<8x32xf32>
    %158 = arith.mulf %153, %157 : vector<8x32xf32>
    %159 = vector.broadcast %138 : vector<1x32xf32> to vector<8x32xf32>
    %160 = arith.mulf %158, %159 : vector<8x32xf32>
    %161 = vector.broadcast %140 : vector<1x32xf32> to vector<8x32xf32>
    %162 = arith.addf %160, %161 : vector<8x32xf32>
    %c0_108 = arith.constant 0 : index
    %c0_109 = arith.constant 0 : index
    %c0_110 = arith.constant 0 : index
    %163 = vector.load %arg16[%c0_108, %c0_109, %c0_110] : memref<2x32x64xf32, #tpu.memory_space<vmem>>, vector<1x32x64xf32>
    %164 = vector.shape_cast %163 : vector<1x32x64xf32> to vector<32x64xf32>
    %cst_111 = arith.constant dense<0.000000e+00> : vector<8x64xf32>
    %165 = tpu.matmul %162, %164, %cst_111 {dimension_numbers = #tpu.dot_dimension_numbers<[1], [0], [0], [1], [0, 0, 1, 1], [], []>} : vector<8x32xf32>, vector<32x64xf32>, vector<8x64xf32> -> vector<8x64xf32>
    %c0_112 = arith.constant 0 : index
    %c0_113 = arith.constant 0 : index
    %c0_114 = arith.constant 0 : index
    %166 = vector.load %arg17[%c0_112, %c0_113, %c0_114] : memref<2x1x64xf32, #tpu.memory_space<vmem>>, vector<1x1x64xf32>
    %167 = vector.shape_cast %166 : vector<1x1x64xf32> to vector<1x64xf32>
    %168 = vector.broadcast %167 : vector<1x64xf32> to vector<8x64xf32>
    %169 = arith.addf %165, %168 : vector<8x64xf32>
    %cst_115 = arith.constant 0.000000e+00 : f32
    %170 = vector.broadcast %cst_115 : f32 to vector<8x64xf32>
    %171 = arith.maximumf %169, %170 : vector<8x64xf32>
    %c0_116 = arith.constant 0 : index
    %c0_117 = arith.constant 0 : index
    %c0_118 = arith.constant 0 : index
    %172 = vector.load %arg18[%c0_116, %c0_117, %c0_118] : memref<2x64x32xf32, #tpu.memory_space<vmem>>, vector<1x64x32xf32>
    %173 = vector.shape_cast %172 : vector<1x64x32xf32> to vector<64x32xf32>
    %cst_119 = arith.constant dense<0.000000e+00> : vector<8x32xf32>
    %174 = tpu.matmul %171, %173, %cst_119 {dimension_numbers = #tpu.dot_dimension_numbers<[1], [0], [0], [1], [0, 0, 1, 1], [], []>} : vector<8x64xf32>, vector<64x32xf32>, vector<8x32xf32> -> vector<8x32xf32>
    %175 = arith.addf %136, %174 : vector<8x32xf32>
    %c0_120 = arith.constant 0 : index
    %c0_121 = arith.constant 0 : index
    %c0_122 = arith.constant 0 : index
    %176 = vector.load %arg19[%c0_120, %c0_121, %c0_122] : memref<2x1x32xf32, #tpu.memory_space<vmem>>, vector<1x1x32xf32>
    %177 = vector.shape_cast %176 : vector<1x1x32xf32> to vector<1x32xf32>
    %178 = vector.broadcast %177 : vector<1x32xf32> to vector<8x32xf32>
    %179 = arith.addf %175, %178 : vector<8x32xf32>
    %c1_123 = arith.constant 1 : index
    %c0_124 = arith.constant 0 : index
    %c0_125 = arith.constant 0 : index
    %180 = vector.load %arg8[%c1_123, %c0_124, %c0_125] : memref<2x1x32xf32, #tpu.memory_space<vmem>>, vector<1x1x32xf32>
    %181 = vector.shape_cast %180 : vector<1x1x32xf32> to vector<1x32xf32>
    %c1_126 = arith.constant 1 : index
    %c0_127 = arith.constant 0 : index
    %c0_128 = arith.constant 0 : index
    %182 = vector.load %arg9[%c1_126, %c0_127, %c0_128] : memref<2x1x32xf32, #tpu.memory_space<vmem>>, vector<1x1x32xf32>
    %183 = vector.shape_cast %182 : vector<1x1x32xf32> to vector<1x32xf32>
    %cst_129 = arith.constant dense<0.000000e+00> : vector<8xf32>
    %184 = vector.multi_reduction <add>, %179, %cst_129 [1] : vector<8x32xf32> to vector<8xf32>
    %185 = vector.shape_cast %184 : vector<8xf32> to vector<8x1xf32>
    %cst_130 = arith.constant 3.200000e+01 : f32
    %186 = vector.broadcast %cst_130 : f32 to vector<8x1xf32>
    %187 = arith.divf %185, %186 : vector<8x1xf32>
    %188 = vector.broadcast %187 : vector<8x1xf32> to vector<8x32xf32>
    %189 = arith.subf %179, %188 : vector<8x32xf32>
    %190 = arith.mulf %189, %189 : vector<8x32xf32>
    %cst_131 = arith.constant dense<0.000000e+00> : vector<8xf32>
    %191 = vector.multi_reduction <add>, %190, %cst_131 [1] : vector<8x32xf32> to vector<8xf32>
    %192 = vector.shape_cast %191 : vector<8xf32> to vector<8x1xf32>
    %cst_132 = arith.constant 3.200000e+01 : f32
    %193 = vector.broadcast %cst_132 : f32 to vector<8x1xf32>
    %194 = arith.divf %192, %193 : vector<8x1xf32>
    %195 = vector.broadcast %187 : vector<8x1xf32> to vector<8x32xf32>
    %196 = arith.subf %179, %195 : vector<8x32xf32>
    %cst_133 = arith.constant 9.99999996E-13 : f32
    %197 = vector.broadcast %cst_133 : f32 to vector<8x1xf32>
    %198 = arith.addf %194, %197 : vector<8x1xf32>
    %199 = math.rsqrt %198 : vector<8x1xf32>
    %200 = vector.broadcast %199 : vector<8x1xf32> to vector<8x32xf32>
    %201 = arith.mulf %196, %200 : vector<8x32xf32>
    %202 = vector.broadcast %181 : vector<1x32xf32> to vector<8x32xf32>
    %203 = arith.mulf %201, %202 : vector<8x32xf32>
    %204 = vector.broadcast %183 : vector<1x32xf32> to vector<8x32xf32>
    %205 = arith.addf %203, %204 : vector<8x32xf32>
    %206 = vector.shape_cast %205 : vector<8x32xf32> to vector<1x8x32xf32>
    %207 = vector.shape_cast %206 : vector<1x8x32xf32> to vector<1x8x32xf32>
    %208 = vector.broadcast %207 : vector<1x8x32xf32> to vector<12x8x32xf32>
    %c1_134 = arith.constant 1 : index
    %c0_135 = arith.constant 0 : index
    %c0_136 = arith.constant 0 : index
    %c0_137 = arith.constant 0 : index
    %209 = vector.load %arg10[%c1_134, %c0_135, %c0_136, %c0_137] : memref<2x12x32x8xf32, #tpu.memory_space<vmem>>, vector<1x12x32x8xf32>
    %210 = vector.shape_cast %209 : vector<1x12x32x8xf32> to vector<12x32x8xf32>
    "tpu.trace_start"() <{level = 10 : i32, message = "htd,hdk->htk"}> : () -> ()
    %cst_138 = arith.constant dense<0.000000e+00> : vector<12x8x8xf32>
    %211 = tpu.matmul %208, %210, %cst_138 {dimension_numbers = #tpu.dot_dimension_numbers<[2], [1], [1], [2], [0, 0, 0, 1, 1, 2], [0], [0]>} : vector<12x8x32xf32>, vector<12x32x8xf32>, vector<12x8x8xf32> -> vector<12x8x8xf32>
    "tpu.trace_stop"() : () -> ()
    %c1_139 = arith.constant 1 : index
    %c0_140 = arith.constant 0 : index
    %c0_141 = arith.constant 0 : index
    %c0_142 = arith.constant 0 : index
    %212 = vector.load %arg11[%c1_139, %c0_140, %c0_141, %c0_142] : memref<2x12x1x8xf32, #tpu.memory_space<vmem>>, vector<1x12x1x8xf32>
    %213 = vector.shape_cast %212 : vector<1x12x1x8xf32> to vector<12x1x8xf32>
    %214 = vector.broadcast %213 : vector<12x1x8xf32> to vector<12x8x8xf32>
    %215 = arith.addf %211, %214 : vector<12x8x8xf32>
    %216 = vector.extract_strided_slice %215 {offsets = [0, 0, 0], sizes = [4, 8, 8], strides = [1, 1, 1]} : vector<12x8x8xf32> to vector<4x8x8xf32>
    %217 = vector.extract_strided_slice %215 {offsets = [4, 0, 0], sizes = [4, 8, 8], strides = [1, 1, 1]} : vector<12x8x8xf32> to vector<4x8x8xf32>
    %218 = vector.extract_strided_slice %215 {offsets = [8, 0, 0], sizes = [4, 8, 8], strides = [1, 1, 1]} : vector<12x8x8xf32> to vector<4x8x8xf32>
    "tpu.trace_start"() <{level = 10 : i32, message = "hqk,hsk->hqs"}> : () -> ()
    %cst_143 = arith.constant dense<0.000000e+00> : vector<4x8x8xf32>
    %219 = tpu.matmul %216, %217, %cst_143 {dimension_numbers = #tpu.dot_dimension_numbers<[2], [2], [1], [1], [0, 0, 0, 1, 1, 1], [0], [0]>} : vector<4x8x8xf32>, vector<4x8x8xf32>, vector<4x8x8xf32> -> vector<4x8x8xf32>
    "tpu.trace_stop"() : () -> ()
    %cst_144 = arith.constant 0.353553385 : f32
    %220 = vector.broadcast %cst_144 : f32 to vector<4x8x8xf32>
    %221 = arith.mulf %219, %220 : vector<4x8x8xf32>
    %222 = vector.broadcast %65 : vector<1x1x8xf32> to vector<4x8x8xf32>
    %223 = arith.addf %221, %222 : vector<4x8x8xf32>
    %cst_145 = arith.constant dense<0xFF800000> : vector<4x8xf32>
    %224 = vector.multi_reduction <maximumf>, %223, %cst_145 [2] : vector<4x8x8xf32> to vector<4x8xf32>
    %225 = vector.shape_cast %224 : vector<4x8xf32> to vector<4x8x1xf32>
    %226 = vector.broadcast %225 : vector<4x8x1xf32> to vector<4x8x8xf32>
    %227 = arith.subf %223, %226 : vector<4x8x8xf32>
    %228 = math.exp %227 : vector<4x8x8xf32>
    %cst_146 = arith.constant dense<0.000000e+00> : vector<4x8xf32>
    %229 = vector.multi_reduction <add>, %228, %cst_146 [2] : vector<4x8x8xf32> to vector<4x8xf32>
    %230 = vector.shape_cast %229 : vector<4x8xf32> to vector<4x8x1xf32>
    %231 = tpu.reciprocal %230 : vector<4x8x1xf32> -> vector<4x8x1xf32>
    %232 = vector.broadcast %231 : vector<4x8x1xf32> to vector<4x8x8xf32>
    %233 = arith.mulf %228, %232 : vector<4x8x8xf32>
    %234 = vector.broadcast %70 : vector<1x1x8xf32> to vector<4x8x8xf32>
    %235 = arith.mulf %233, %234 : vector<4x8x8xf32>
    "tpu.trace_start"() <{level = 10 : i32, message = "hqs,hsk->hqk"}> : () -> ()
    %cst_147 = arith.constant dense<0.000000e+00> : vector<4x8x8xf32>
    %236 = tpu.matmul %235, %218, %cst_147 {dimension_numbers = #tpu.dot_dimension_numbers<[2], [1], [1], [2], [0, 0, 0, 1, 1, 2], [0], [0]>} : vector<4x8x8xf32>, vector<4x8x8xf32>, vector<4x8x8xf32> -> vector<4x8x8xf32>
    "tpu.trace_stop"() : () -> ()
    %c1_148 = arith.constant 1 : index
    %c0_149 = arith.constant 0 : index
    %c0_150 = arith.constant 0 : index
    %c0_151 = arith.constant 0 : index
    %237 = vector.load %arg12[%c1_148, %c0_149, %c0_150, %c0_151] : memref<2x4x8x32xf32, #tpu.memory_space<vmem>>, vector<1x4x8x32xf32>
    %238 = vector.shape_cast %237 : vector<1x4x8x32xf32> to vector<4x8x32xf32>
    "tpu.trace_start"() <{level = 10 : i32, message = "hqk,hkd->hqd"}> : () -> ()
    %cst_152 = arith.constant dense<0.000000e+00> : vector<4x8x32xf32>
    %239 = tpu.matmul %236, %238, %cst_152 {dimension_numbers = #tpu.dot_dimension_numbers<[2], [1], [1], [2], [0, 0, 0, 1, 1, 2], [0], [0]>} : vector<4x8x8xf32>, vector<4x8x32xf32>, vector<4x8x32xf32> -> vector<4x8x32xf32>
    "tpu.trace_stop"() : () -> ()
    %cst_153 = arith.constant dense<0.000000e+00> : vector<8x32xf32>
    %240 = vector.multi_reduction <add>, %239, %cst_153 [0] : vector<4x8x32xf32> to vector<8x32xf32>
    %241 = arith.addf %179, %240 : vector<8x32xf32>
    %c1_154 = arith.constant 1 : index
    %c0_155 = arith.constant 0 : index
    %c0_156 = arith.constant 0 : index
    %242 = vector.load %arg13[%c1_154, %c0_155, %c0_156] : memref<2x1x32xf32, #tpu.memory_space<vmem>>, vector<1x1x32xf32>
    %243 = vector.shape_cast %242 : vector<1x1x32xf32> to vector<1x32xf32>
    %244 = vector.broadcast %243 : vector<1x32xf32> to vector<8x32xf32>
    %245 = arith.addf %241, %244 : vector<8x32xf32>
    %c1_157 = arith.constant 1 : index
    %c0_158 = arith.constant 0 : index
    %c0_159 = arith.constant 0 : index
    %246 = vector.load %arg14[%c1_157, %c0_158, %c0_159] : memref<2x1x32xf32, #tpu.memory_space<vmem>>, vector<1x1x32xf32>
    %247 = vector.shape_cast %246 : vector<1x1x32xf32> to vector<1x32xf32>
    %c1_160 = arith.constant 1 : index
    %c0_161 = arith.constant 0 : index
    %c0_162 = arith.constant 0 : index
    %248 = vector.load %arg15[%c1_160, %c0_161, %c0_162] : memref<2x1x32xf32, #tpu.memory_space<vmem>>, vector<1x1x32xf32>
    %249 = vector.shape_cast %248 : vector<1x1x32xf32> to vector<1x32xf32>
    %cst_163 = arith.constant dense<0.000000e+00> : vector<8xf32>
    %250 = vector.multi_reduction <add>, %245, %cst_163 [1] : vector<8x32xf32> to vector<8xf32>
    %251 = vector.shape_cast %250 : vector<8xf32> to vector<8x1xf32>
    %cst_164 = arith.constant 3.200000e+01 : f32
    %252 = vector.broadcast %cst_164 : f32 to vector<8x1xf32>
    %253 = arith.divf %251, %252 : vector<8x1xf32>
    %254 = vector.broadcast %253 : vector<8x1xf32> to vector<8x32xf32>
    %255 = arith.subf %245, %254 : vector<8x32xf32>
    %256 = arith.mulf %255, %255 : vector<8x32xf32>
    %cst_165 = arith.constant dense<0.000000e+00> : vector<8xf32>
    %257 = vector.multi_reduction <add>, %256, %cst_165 [1] : vector<8x32xf32> to vector<8xf32>
    %258 = vector.shape_cast %257 : vector<8xf32> to vector<8x1xf32>
    %cst_166 = arith.constant 3.200000e+01 : f32
    %259 = vector.broadcast %cst_166 : f32 to vector<8x1xf32>
    %260 = arith.divf %258, %259 : vector<8x1xf32>
    %261 = vector.broadcast %253 : vector<8x1xf32> to vector<8x32xf32>
    %262 = arith.subf %245, %261 : vector<8x32xf32>
    %cst_167 = arith.constant 9.99999996E-13 : f32
    %263 = vector.broadcast %cst_167 : f32 to vector<8x1xf32>
    %264 = arith.addf %260, %263 : vector<8x1xf32>
    %265 = math.rsqrt %264 : vector<8x1xf32>
    %266 = vector.broadcast %265 : vector<8x1xf32> to vector<8x32xf32>
    %267 = arith.mulf %262, %266 : vector<8x32xf32>
    %268 = vector.broadcast %247 : vector<1x32xf32> to vector<8x32xf32>
    %269 = arith.mulf %267, %268 : vector<8x32xf32>
    %270 = vector.broadcast %249 : vector<1x32xf32> to vector<8x32xf32>
    %271 = arith.addf %269, %270 : vector<8x32xf32>
    %c1_168 = arith.constant 1 : index
    %c0_169 = arith.constant 0 : index
    %c0_170 = arith.constant 0 : index
    %272 = vector.load %arg16[%c1_168, %c0_169, %c0_170] : memref<2x32x64xf32, #tpu.memory_space<vmem>>, vector<1x32x64xf32>
    %273 = vector.shape_cast %272 : vector<1x32x64xf32> to vector<32x64xf32>
    %cst_171 = arith.constant dense<0.000000e+00> : vector<8x64xf32>
    %274 = tpu.matmul %271, %273, %cst_171 {dimension_numbers = #tpu.dot_dimension_numbers<[1], [0], [0], [1], [0, 0, 1, 1], [], []>} : vector<8x32xf32>, vector<32x64xf32>, vector<8x64xf32> -> vector<8x64xf32>
    %c1_172 = arith.constant 1 : index
    %c0_173 = arith.constant 0 : index
    %c0_174 = arith.constant 0 : index
    %275 = vector.load %arg17[%c1_172, %c0_173, %c0_174] : memref<2x1x64xf32, #tpu.memory_space<vmem>>, vector<1x1x64xf32>
    %276 = vector.shape_cast %275 : vector<1x1x64xf32> to vector<1x64xf32>
    %277 = vector.broadcast %276 : vector<1x64xf32> to vector<8x64xf32>
    %278 = arith.addf %274, %277 : vector<8x64xf32>
    %cst_175 = arith.constant 0.000000e+00 : f32
    %279 = vector.broadcast %cst_175 : f32 to vector<8x64xf32>
    %280 = arith.maximumf %278, %279 : vector<8x64xf32>
    %c1_176 = arith.constant 1 : index
    %c0_177 = arith.constant 0 : index
    %c0_178 = arith.constant 0 : index
    %281 = vector.load %arg18[%c1_176, %c0_177, %c0_178] : memref<2x64x32xf32, #tpu.memory_space<vmem>>, vector<1x64x32xf32>
    %282 = vector.shape_cast %281 : vector<1x64x32xf32> to vector<64x32xf32>
    %cst_179 = arith.constant dense<0.000000e+00> : vector<8x32xf32>
    %283 = tpu.matmul %280, %282, %cst_179 {dimension_numbers = #tpu.dot_dimension_numbers<[1], [0], [0], [1], [0, 0, 1, 1], [], []>} : vector<8x64xf32>, vector<64x32xf32>, vector<8x32xf32> -> vector<8x32xf32>
    %284 = arith.addf %245, %283 : vector<8x32xf32>
    %c1_180 = arith.constant 1 : index
    %c0_181 = arith.constant 0 : index
    %c0_182 = arith.constant 0 : index
    %285 = vector.load %arg19[%c1_180, %c0_181, %c0_182] : memref<2x1x32xf32, #tpu.memory_space<vmem>>, vector<1x1x32xf32>
    %286 = vector.shape_cast %285 : vector<1x1x32xf32> to vector<1x32xf32>
    %287 = vector.broadcast %286 : vector<1x32xf32> to vector<8x32xf32>
    %288 = arith.addf %284, %287 : vector<8x32xf32>
    %c0_183 = arith.constant 0 : index
    %c0_184 = arith.constant 0 : index
    %289 = vector.load %arg20[%c0_183, %c0_184] : memref<1x32xf32, #tpu.memory_space<vmem>>, vector<1x32xf32>
    %c0_185 = arith.constant 0 : index
    %c0_186 = arith.constant 0 : index
    %290 = vector.load %arg21[%c0_185, %c0_186] : memref<1x32xf32, #tpu.memory_space<vmem>>, vector<1x32xf32>
    %cst_187 = arith.constant dense<0.000000e+00> : vector<8xf32>
    %291 = vector.multi_reduction <add>, %288, %cst_187 [1] : vector<8x32xf32> to vector<8xf32>
    %292 = vector.shape_cast %291 : vector<8xf32> to vector<8x1xf32>
    %cst_188 = arith.constant 3.200000e+01 : f32
    %293 = vector.broadcast %cst_188 : f32 to vector<8x1xf32>
    %294 = arith.divf %292, %293 : vector<8x1xf32>
    %295 = vector.broadcast %294 : vector<8x1xf32> to vector<8x32xf32>
    %296 = arith.subf %288, %295 : vector<8x32xf32>
    %297 = arith.mulf %296, %296 : vector<8x32xf32>
    %cst_189 = arith.constant dense<0.000000e+00> : vector<8xf32>
    %298 = vector.multi_reduction <add>, %297, %cst_189 [1] : vector<8x32xf32> to vector<8xf32>
    %299 = vector.shape_cast %298 : vector<8xf32> to vector<8x1xf32>
    %cst_190 = arith.constant 3.200000e+01 : f32
    %300 = vector.broadcast %cst_190 : f32 to vector<8x1xf32>
    %301 = arith.divf %299, %300 : vector<8x1xf32>
    %302 = vector.broadcast %294 : vector<8x1xf32> to vector<8x32xf32>
    %303 = arith.subf %288, %302 : vector<8x32xf32>
    %cst_191 = arith.constant 9.99999996E-13 : f32
    %304 = vector.broadcast %cst_191 : f32 to vector<8x1xf32>
    %305 = arith.addf %301, %304 : vector<8x1xf32>
    %306 = math.rsqrt %305 : vector<8x1xf32>
    %307 = vector.broadcast %306 : vector<8x1xf32> to vector<8x32xf32>
    %308 = arith.mulf %303, %307 : vector<8x32xf32>
    %309 = vector.broadcast %289 : vector<1x32xf32> to vector<8x32xf32>
    %310 = arith.mulf %308, %309 : vector<8x32xf32>
    %311 = vector.broadcast %290 : vector<1x32xf32> to vector<8x32xf32>
    %312 = arith.addf %310, %311 : vector<8x32xf32>
    %c0_192 = arith.constant 0 : index
    %c0_193 = arith.constant 0 : index
    %c0_194 = arith.constant 0 : index
    %313 = vector.load %arg22[%c0_192, %c0_193, %c0_194] : memref<1x8x32xf32, #tpu.memory_space<vmem>>, vector<1x8x32xf32>
    %314 = vector.shape_cast %313 : vector<1x8x32xf32> to vector<8x32xf32>
    %315 = vector.shape_cast %312 : vector<8x32xf32> to vector<1x8x32xf32>
    tpu.vector_store %arg22[%c0_192, %c0_193, %c0_194], %315 {strides = array<i32>} : memref<1x8x32xf32, #tpu.memory_space<vmem>>, vector<1x8x32xf32>,
    return
  }
  func.func @transform_0(%arg0: i32) -> (i32, i32, i32, i32) {
    %c0_i32 = arith.constant 0 : i32
    %c0_i32_0 = arith.constant 0 : i32
    %c0_i32_1 = arith.constant 0 : i32
    %c0_i32_2 = arith.constant 0 : i32
    return %arg0, %c0_i32, %c0_i32_0, %c0_i32_1 : i32, i32, i32, i32
  }
  func.func @transform_1(%arg0: i32) -> (i32, i32) {
    %c0_i32 = arith.constant 0 : i32
    %c0_i32_0 = arith.constant 0 : i32
    %c0_i32_1 = arith.constant 0 : i32
    return %c0_i32, %c0_i32_0 : i32, i32
  }
  func.func @transform_2(%arg0: i32) -> (i32, i32, i32) {
    %c0_i32 = arith.constant 0 : i32
    %c0_i32_0 = arith.constant 0 : i32
    %c0_i32_1 = arith.constant 0 : i32
    return %arg0, %c0_i32, %c0_i32_0 : i32, i32, i32
  }
  func.func @transform_3(%arg0: i32) -> (i32, i32) {
    %c0_i32 = arith.constant 0 : i32
    %c0_i32_0 = arith.constant 0 : i32
    %c0_i32_1 = arith.constant 0 : i32
    return %c0_i32, %c0_i32_0 : i32, i32
  }
  func.func @transform_4(%arg0: i32) -> (i32, i32) {
    %c0_i32 = arith.constant 0 : i32
    %c0_i32_0 = arith.constant 0 : i32
    %c0_i32_1 = arith.constant 0 : i32
    return %c0_i32, %c0_i32_0 : i32, i32
  }
  func.func @transform_5(%arg0: i32) -> (i32, i32, i32) {
    %c0_i32 = arith.constant 0 : i32
    %c0_i32_0 = arith.constant 0 : i32
    %c0_i32_1 = arith.constant 0 : i32
    %c0_i32_2 = arith.constant 0 : i32
    return %c0_i32, %c0_i32_0, %c0_i32_1 : i32, i32, i32
  }
  func.func @transform_6(%arg0: i32) -> (i32, i32) {
    %c0_i32 = arith.constant 0 : i32
    %c0_i32_0 = arith.constant 0 : i32
    %c0_i32_1 = arith.constant 0 : i32
    return %c0_i32, %c0_i32_0 : i32, i32
  }
  func.func @transform_7(%arg0: i32) -> (i32, i32, i32) {
    %c0_i32 = arith.constant 0 : i32
    %c0_i32_0 = arith.constant 0 : i32
    %c0_i32_1 = arith.constant 0 : i32
    %c0_i32_2 = arith.constant 0 : i32
    return %c0_i32, %c0_i32_0, %c0_i32_1 : i32, i32, i32
  }
  func.func @transform_8(%arg0: i32) -> (i32, i32, i32) {
    %c0_i32 = arith.constant 0 : i32
    %c0_i32_0 = arith.constant 0 : i32
    %c0_i32_1 = arith.constant 0 : i32
    %c0_i32_2 = arith.constant 0 : i32
    return %c0_i32, %c0_i32_0, %c0_i32_1 : i32, i32, i32
  }
  func.func @transform_9(%arg0: i32) -> (i32, i32, i32, i32) {
    %c0_i32 = arith.constant 0 : i32
    %c0_i32_0 = arith.constant 0 : i32
    %c0_i32_1 = arith.constant 0 : i32
    %c0_i32_2 = arith.constant 0 : i32
    %c0_i32_3 = arith.constant 0 : i32
    return %c0_i32, %c0_i32_0, %c0_i32_1, %c0_i32_2 : i32, i32, i32, i32
  }
  func.func @transform_10(%arg0: i32) -> (i32, i32, i32, i32) {
    %c0_i32 = arith.constant 0 : i32
    %c0_i32_0 = arith.constant 0 : i32
    %c0_i32_1 = arith.constant 0 : i32
    %c0_i32_2 = arith.constant 0 : i32
    %c0_i32_3 = arith.constant 0 : i32
    return %c0_i32, %c0_i32_0, %c0_i32_1, %c0_i32_2 : i32, i32, i32, i32
  }
  func.func @transform_11(%arg0: i32) -> (i32, i32, i32, i32) {
    %c0_i32 = arith.constant 0 : i32
    %c0_i32_0 = arith.constant 0 : i32
    %c0_i32_1 = arith.constant 0 : i32
    %c0_i32_2 = arith.constant 0 : i32
    %c0_i32_3 = arith.constant 0 : i32
    return %c0_i32, %c0_i32_0, %c0_i32_1, %c0_i32_2 : i32, i32, i32, i32
  }
  func.func @transform_12(%arg0: i32) -> (i32, i32, i32) {
    %c0_i32 = arith.constant 0 : i32
    %c0_i32_0 = arith.constant 0 : i32
    %c0_i32_1 = arith.constant 0 : i32
    %c0_i32_2 = arith.constant 0 : i32
    return %c0_i32, %c0_i32_0, %c0_i32_1 : i32, i32, i32
  }
  func.func @transform_13(%arg0: i32) -> (i32, i32, i32) {
    %c0_i32 = arith.constant 0 : i32
    %c0_i32_0 = arith.constant 0 : i32
    %c0_i32_1 = arith.constant 0 : i32
    %c0_i32_2 = arith.constant 0 : i32
    return %c0_i32, %c0_i32_0, %c0_i32_1 : i32, i32, i32
  }
  func.func @transform_14(%arg0: i32) -> (i32, i32, i32) {
    %c0_i32 = arith.constant 0 : i32
    %c0_i32_0 = arith.constant 0 : i32
    %c0_i32_1 = arith.constant 0 : i32
    %c0_i32_2 = arith.constant 0 : i32
    return %c0_i32, %c0_i32_0, %c0_i32_1 : i32, i32, i32
  }
  func.func @transform_15(%arg0: i32) -> (i32, i32, i32) {
    %c0_i32 = arith.constant 0 : i32
    %c0_i32_0 = arith.constant 0 : i32
    %c0_i32_1 = arith.constant 0 : i32
    %c0_i32_2 = arith.constant 0 : i32
    return %c0_i32, %c0_i32_0, %c0_i32_1 : i32, i32, i32
  }
  func.func @transform_16(%arg0: i32) -> (i32, i32, i32) {
    %c0_i32 = arith.constant 0 : i32
    %c0_i32_0 = arith.constant 0 : i32
    %c0_i32_1 = arith.constant 0 : i32
    %c0_i32_2 = arith.constant 0 : i32
    return %c0_i32, %c0_i32_0, %c0_i32_1 : i32, i32, i32
  }
  func.func @transform_17(%arg0: i32) -> (i32, i32, i32) {
    %c0_i32 = arith.constant 0 : i32
    %c0_i32_0 = arith.constant 0 : i32
    %c0_i32_1 = arith.constant 0 : i32
    %c0_i32_2 = arith.constant 0 : i32
    return %c0_i32, %c0_i32_0, %c0_i32_1 : i32, i32, i32
  }
  func.func @transform_18(%arg0: i32) -> (i32, i32, i32) {
    %c0_i32 = arith.constant 0 : i32
    %c0_i32_0 = arith.constant 0 : i32
    %c0_i32_1 = arith.constant 0 : i32
    %c0_i32_2 = arith.constant 0 : i32
    return %c0_i32, %c0_i32_0, %c0_i32_1 : i32, i32, i32
  }
  func.func @transform_19(%arg0: i32) -> (i32, i32) {
    %c0_i32 = arith.constant 0 : i32
    %c0_i32_0 = arith.constant 0 : i32
    %c0_i32_1 = arith.constant 0 : i32
    return %c0_i32, %c0_i32_0 : i32, i32
  }
  func.func @transform_20(%arg0: i32) -> (i32, i32) {
    %c0_i32 = arith.constant 0 : i32
    %c0_i32_0 = arith.constant 0 : i32
    %c0_i32_1 = arith.constant 0 : i32
    return %c0_i32, %c0_i32_0 : i32, i32
  }
  func.func @transform_21(%arg0: i32) -> (i32, i32, i32) {
    %c0_i32 = arith.constant 0 : i32
    %c0_i32_0 = arith.constant 0 : i32
    %c0_i32_1 = arith.constant 0 : i32
    return %arg0, %c0_i32, %c0_i32_0 : i32, i32, i32
  }
}

</mosaic_0001>

<bundles_post_ra>
// kernel: tpu_custom_call.1
= control target key start
LH: loop header
LB: loop body
LE: loop exit
PB: predicated region body
PF: predicated region fallthrough
CT: control target
= control target key end

     0   :  { %s9168_s0 = inlined_call_operand.vmem [shape: f32[2,4,8,288], index: 0, kind: input, shape index: {}]   ;;  %s9169_s1 = inlined_call_operand.vmem [shape: f32[8,32], index: 1, kind: input, shape index: {}]   ;;  %s9170_s2 = inlined_call_operand.vmem [shape: f32[2,1,8], index: 2, kind: input, shape index: {}]   ;;  %s9171_s3 = inlined_call_operand.vmem [shape: f32[288,32], index: 3, kind: input, shape index: {}]   ;;  %s9172_s4 = inlined_call_operand.vmem [shape: f32[1,32], index: 4, kind: input, shape index: {}]   ;;  %s9173_s5 = inlined_call_operand.vmem [shape: f32[4,32,32], index: 5, kind: input, shape index: {}]   ;;  %s9174_s6 = inlined_call_operand.vmem [shape: f32[1,32], index: 6, kind: input, shape index: {}]   ;;  %s9175_s7 = inlined_call_operand.vmem [shape: f32[2,1,32], index: 7, kind: input, shape index: {}]   ;;  %s9176_s8 = inlined_call_operand.vmem [shape: f32[2,1,32], index: 8, kind: input, shape index: {}]   ;;  %s9177_s9 = inlined_call_operand.vmem [shape: f32[2,12,32,8], index: 9, kind: input, shape index: {}]   ;;  %s9178_s10 = inlined_call_operand.vmem [shape: f32[2,12,1,8], index: 10, kind: input, shape index: {}]   ;;  %s9179_s11 = inlined_call_operand.vmem [shape: f32[2,4,8,32], index: 11, kind: input, shape index: {}]   ;;  %s9180_s12 = inlined_call_operand.vmem [shape: f32[2,1,32], index: 12, kind: input, shape index: {}]   ;;  %s9181_s13 = inlined_call_operand.vmem [shape: f32[2,1,32], index: 13, kind: input, shape index: {}]   ;;  %s9182_s14 = inlined_call_operand.vmem [shape: f32[2,1,32], index: 14, kind: input, shape index: {}]   ;;  %s9183_s15 = inlined_call_operand.vmem [shape: f32[2,32,64], index: 15, kind: input, shape index: {}]   ;;  %s9184_s16 = inlined_call_operand.vmem [shape: f32[2,1,64], index: 16, kind: input, shape index: {}]   ;;  %s9185_s17 = inlined_call_operand.vmem [shape: f32[2,64,32], index: 17, kind: input, shape index: {}]   ;;  %s9186_s18 = inlined_call_operand.vmem [shape: f32[2,1,32], index: 18, kind: input, shape index: {}]   ;;  %s9187_s19 = inlined_call_operand.vmem [shape: f32[1,32], index: 19, kind: input, shape index: {}]   ;;  %s9188_s20 = inlined_call_operand.vmem [shape: f32[1,32], index: 20, kind: input, shape index: {}]   ;;  %s9189_s21 = inlined_call_operand.hbm [shape: f32[2,8,32], index: 21, kind: output, shape index: {}]  }
   0x1   :  { %9199 = sst [smem:[#allocation11_spill]] %s9168_s0 }
   0x2   :  { %9200 = sst [smem:[#allocation12_spill]] %s9169_s1 }
   0x3   :  { %9201 = sst [smem:[#allocation13_spill]] %s9170_s2 }
   0x4   :  { %9202 = sst [smem:[#allocation14_spill]] %s9171_s3 }
   0x5   :  { %9203 = sst [smem:[#allocation15_spill]] %s9172_s4 }
   0x6   :  { %9204 = sst [smem:[#allocation16_spill]] %s9173_s5 }
   0x7   :  { %9205 = sst [smem:[#allocation17_spill]] %s9174_s6 }
   0x8   :  { %9206 = sst [smem:[#allocation18_spill]] %s9175_s7 }
   0x9   :  { %9207 = sst [smem:[#allocation19_spill]] %s9187_s19 }
   0xa   :  { %9208 = sst [smem:[#allocation20_spill]] %s9188_s20 }
   0xb   :  { %9209 = sst [smem:[#allocation21_spill]] %s9189_s21 }
   0xc   :  { %26 = vsyncpa [#allocation3], 0 }
   0xd   :  { %28 = vsyncpa [#allocation3 + $0x1], 0  ;;  %s7870_s2 = smov 0   ;;  %s7872_s25 = smov 0  }
   0xe   :  { %s7874_s26 = smov 0   ;;  %s7876_s27 = smov 0  }
   0xf LB: > { %9210 = sst [smem:[#allocation5_spill]] %s7741_s2  ;;  %s7891_s3 = sadd.s32 4294967295, %s7753_s27   ;;  %s7753_s27 = sphi %s7876_s27, %s9233_s27   ;;  %s7749_s26 = sphi %s7874_s26, %s9235_s26   ;;  %s7745_s25 = sphi %s7872_s25, %s9237_s25   ;;  %s7741_s2 = sphi %s7870_s2, %s9236_s2  }
  0x10   : > { %9211 = sst [smem:[#allocation6_spill]] %s7749_s26  ;;  %s6116_s28 = sadd.s32 4294967294, %s7753_s27  }
  0x11   : > { %9212 = sst [smem:[#allocation7_spill]] %s7753_s27  ;;  %s7895_s29 = sadd.s32 1, %s7753_s27  }
  0x12   : > { %9213 = sst [smem:[#allocation8_spill]] %s7895_s29  ;;  %s492_s0 = sadd.s32 1, %s7749_s26 }
  0x13   : > { %s489_s4 = ssub.s32 %s7753_s27, %s7895_s29  ;;  %p502_p0 = scmp.ne.s32.totalorder %s7749_s26, %s7745_s25 }
  0x14   : > { %p490_p1 = scmp.eq.s32.totalorder %s489_s4, 0  ;;  %p503_p2 = scmp.eq.s32.totalorder %s7891_s3, 1 }
  0x15   : > { %p508_p3 = scmp.ne.s32.totalorder %s7745_s25, %s7741_s2  ;;  %p509_p4 = scmp.eq.s32.totalorder %s6116_s28, 1 }
  0x16   : > { %s7906_s30 = scalar_select %p490_p1, %s7749_s26, %s492_s0  }
  0x17   : > { %p7908_p5 = por %p503_p2, %p502_p0  ;;  %p7912_p6 = por %p509_p4, %p508_p3 }
  0x18   : > { %9214 = sst [smem:[#allocation9_spill]] %s7906_s30  ;;  %p6119_p7 = scmp.ge.s32.totalorder %s7753_s27, 1 }
  0x19   : > { %s9216_s22 = scalar_select %p7912_p6, 1, 0 }
  0x1a   : > { %p598_p8 = scmp.lt.s32.totalorder %s7753_s27, 3 }
  0x1b   : > { %9217 = sst [smem:[#allocation10_spill]] %s9216_s22 }
  0x1c   : > { %p599_p9 = pnand %p6119_p7, %p598_p8 }
  0x1d   : > { %s9218_s24 = sld [smem:[#allocation14_spill]] (!%p599_p9)  ;;  %v7755_v3 = vmov (!%p599_p9), 0.0|0.0   ;;  %vm7756_vm0 = vmmov (!%p599_p9), 0   ;;  %v7757_v8 = vmov (!%p599_p9), 0.0   ;;  %p661_p10 = scmp.lt.s32.totalorder (!%p599_p9), %s7891_s3, 1  ;;  %vm715_vm1 = vcmask (!%p599_p9), 261120  }
  0x1e   : > { %602 = sbr.rel (%p599_p9) target bundleno = 5886 (0x16fe), region = 104  ;;  %7281 = vmatprep.subr.bf16.mxu1 (!%p599_p9), %v7755_v3  ;;  %6725 = vmatprep.mubr.msk.f32.mxu1 (!%p599_p9), %vm7756_vm0, %v7757_v8  ;;  %s9219_s20 = sld [smem:[#allocation11_spill]] (!%p599_p9)  ;;  %vm2638_vm2 = vcmask (!%p599_p9), 64512   ;;  %vm3737_vm4 = vcmask (!%p599_p9), 523264  }
  0x1f   : > { %s9220_s27 = sld [smem:[#allocation16_spill]] (!%p599_p9)  ;;  %s9222_s22 = sld [smem:[#allocation15_spill]] (!%p599_p9) }
  0x20   : > { %s9223_s6 = sld [smem:[#allocation17_spill]] (!%p599_p9)  ;;  %s9224_s29 = sld [smem:[#allocation12_spill]] (!%p599_p9) }
  0x21   : > { %s9225_s7 = sld [smem:[#allocation18_spill]] (!%p599_p9)  ;;  %s9226_s2 = sld [smem:[#allocation13_spill]] (!%p599_p9) }
  0x23   : > { %v688_v0 = vld [vmem:[%s9218_s24 + $0x80] sm:$0xff] (!%p599_p9)  ;;  %v689_v1 = vld [vmem:[%s9218_s24 + $0x88] sm:$0xff] (!%p599_p9)  ;;  %v690_v11 = vld [vmem:[%s9218_s24 + $0x90] sm:$0xff] (!%p599_p9) }
  0x24   : > { %v704_v2 = vld [vmem:[%s9218_s24 + $0x100] sm:$0xff] (!%p599_p9)  ;;  %v7928_v4 = vpack.c.bf16 (!%p599_p9), %v689_v1, %v688_v0  ;;  %v705_v5 = vld [vmem:[%s9218_s24 + $0x108] sm:$0xff] (!%p599_p9)  ;;  %v691_v12 = vld [vmem:[%s9218_s24 + $0x98] sm:$0xff] (!%p599_p9) }
  0x25   : > { %v672_v6 = vld [vmem:[%s9218_s24] sm:$0xff]  ;;  %v673_v7 = vld [vmem:[%s9218_s24 + $0x8] sm:$0xff]  ;;  %v7942_v9 = vpack.c.bf16 %v705_v5, %v704_v2  ;;  %v706_v13 = vld [vmem:[%s9218_s24 + $0x110] sm:$0xff]  ;;  %v7956_v14 = vpack.c.bf16 %v691_v12, %v690_v11  ;;  %s7968_s30 = scalar_select %p661_p10, %s7891_s3, 1 }
  0x26   : > { %v7944_v10 = vpack.c.bf16 %v673_v7, %v672_v6  ;;  %7250 = vmatprep.subr.bf16.mxu0 %v7928_v4  ;;  %v707_v15 = vld [vmem:[%s9218_s24 + $0x118] sm:$0xff]  ;;  %v674_v16 = vld [vmem:[%s9218_s24 + $0x10] sm:$0xff]  ;;  %v692_v20 = vld [vmem:[%s9218_s24 + $0xa0] sm:$0xff] }
  0x27   : > { %v675_v17 = vld [vmem:[%s9218_s24 + $0x18] sm:$0xff]  ;;  %7283 = vmatpush3.bf16.msra.mxu1 %v7942_v9  ;;  %v7972_v18 = vpack.c.bf16 %v707_v15, %v706_v13  ;;  %v693_v21 = vld [vmem:[%s9218_s24 + $0xa8] sm:$0xff]  ;;  %s7605_s23 = smul.u32 96, %s7968_s30  ;;  %v676_v23 = vld [vmem:[%s9218_s24 + $0x20] sm:$0xff] }
  0x28   : > { %7252 = vmatpush3.bf16.msra.mxu0 %v7944_v10  ;;  %v7974_v19 = vpack.c.bf16 %v675_v17, %v674_v16  ;;  %7284 = vmatprep.subr.bf16.mxu1 %v7755_v3  ;;  %v7985_v22 = vpack.c.bf16 %v693_v21, %v692_v20  ;;  %v677_v24 = vld [vmem:[%s9218_s24 + $0x28] sm:$0xff]  ;;  %v694_v25 = vld [vmem:[%s9218_s24 + $0xb0] sm:$0xff]  ;;  %v695_v26 = vld [vmem:[%s9218_s24 + $0xb8] sm:$0xff] }
  0x29   : > { %7254 = vmatprep.subr.bf16.mxu0 %v7956_v14  ;;  %s8002_s19 = scalar_lea.vmem %s9219_s20, %s7605_s23  ;;  %v8007_v28 = vpack.c.bf16 %v677_v24, %v676_v23  ;;  %v8011_v29 = vpack.c.bf16 %v695_v26, %v694_v25  ;;  %v678_v30 = vld [vmem:[%s9218_s24 + $0x30] sm:$0xff]  ;;  %v679_v31 = vld [vmem:[%s9218_s24 + $0x38] sm:$0xff]  ;;  %v696_v32 = vld [vmem:[%s9218_s24 + $0xc0] sm:$0xff]  ;;  %s9221_s23 = smov %s9220_s27 }
  0x2a   : > { %v671_v27 = vld [vmem:[%s8002_s19 + $0x10] sm:$0xff]  ;;  %v697_v33 = vld [vmem:[%s9218_s24 + $0xc8] sm:$0xff]  ;;  %v8028_v34 = vpack.c.bf16 %v679_v31, %v678_v30  ;;  %v680_v37 = vld [vmem:[%s9218_s24 + $0x40] sm:$0xff] }
  0x2b   : > { %7286 = vmatpush3.bf16.msra.mxu1 %v7972_v18  ;;  %v670_v35 = vld [vmem:[%s8002_s19 + $0x8] sm:$0xff]  ;;  %v8033_v36 = vpack.c.bf16 %v697_v33, %v696_v32  ;;  %v6125_v39 = vld [vmem:[%s8002_s19 + $0x20] sm:$0xff]  ;;  %v698_v40 = vld [vmem:[%s9218_s24 + $0xd0] sm:$0xff] }
  0x2c   : > { %7256 = vmatpush3.bf16.msra.mxu0 %v7974_v19  ;;  %7288 = vmatprep.subr.bf16.mxu1 %v7928_v4  ;;  %v681_v38 = vld [vmem:[%s9218_s24 + $0x48] sm:$0xff]  ;;  %v699_v41 = vld [vmem:[%s9218_s24 + $0xd8] sm:$0xff]  ;;  %v682_v44 = vld [vmem:[%s9218_s24 + $0x50] sm:$0xff] }
  0x2d   : > { %7258 = vmatprep.subr.bf16.mxu0 %v7985_v22  ;;  %783 = vmatprep.mubr.f32.mxu0 %v670_v35  ;;  %v8050_v42 = vpack.c.bf16 %v681_v38, %v680_v37  ;;  %v8054_v43 = vpack.c.bf16 %v699_v41, %v698_v40  ;;  %v683_v45 = vld [vmem:[%s9218_s24 + $0x58] sm:$0xff]  ;;  %v700_v46 = vld [vmem:[%s9218_s24 + $0xe0] sm:$0xff]  ;;  %v701_v47 = vld [vmem:[%s9218_s24 + $0xe8] sm:$0xff] }
  0x2e   : > { %6726 = vmatmul.mubr.msk.f32.vlgmr.msra.gmra.mrb[0].mxu1 %vm715_vm1, %v671_v27  ;;  %v8070_v48 = vpack.c.bf16 %v683_v45, %v682_v44  ;;  %v8074_v49 = vpack.c.bf16 %v701_v47, %v700_v46  ;;  %v684_v50 = vld [vmem:[%s9218_s24 + $0x60] sm:$0xff]  ;;  %v685_v51 = vld [vmem:[%s9218_s24 + $0x68] sm:$0xff]  ;;  %v702_v52 = vld [vmem:[%s9218_s24 + $0xf0] sm:$0xff] }
  0x2f   : > { %7290 = vmatpush3.bf16.msra.mxu1 %v7944_v10  ;;  %935 = vmatprep.mubr.f32.mxu1 %v6125_v39  ;;  %v703_v53 = vld [vmem:[%s9218_s24 + $0xf8] sm:$0xff]  ;;  %v8090_v54 = vpack.c.bf16 %v685_v51, %v684_v50  ;;  %v686_v56 = vld [vmem:[%s9218_s24 + $0x70] sm:$0xff]  ;;  %v669_v59 = vld [vmem:[%s8002_s19] sm:$0xff] }
  0x30   : > { %7260 = vmatpush3.bf16.msra.mxu0 %v8007_v28  ;;  %7292 = vmatprep.subr.bf16.mxu1 %v7956_v14  ;;  %v8094_v55 = vpack.c.bf16 %v703_v53, %v702_v52  ;;  %v687_v57 = vld [vmem:[%s9218_s24 + $0x78] sm:$0xff]  ;;  %v6126_v61 = vld [vmem:[%s8002_s19 + $0x28] sm:$0xff]  ;;  %v860_v62 = vld [vmem:[%s9220_s27] sm:$0xff]  ;;  %s658_s27 = sand.u32 1, %s7745_s25  }
  0x31   : > { %7262 = vmatprep.subr.bf16.mxu0 %v8011_v29  ;;  %v8104_v58 = vpack.c.bf16 %v687_v57, %v686_v56  ;;  %v6124_v60 = vld [vmem:[%s8002_s19 + $0x18] sm:$0xff]  ;;  %v861_v63 = vld [vmem:[%s9221_s23 + $0x8] sm:$0xff]  ;;  %v862_v1 = vld [vmem:[%s9221_s23 + $0x10] sm:$0xff]  ;;  %s6120_s1 = sshll.u32 %s658_s27, 3  ;;  %s6035_s28 = scalar_lea.sflag [#allocation3], %s658_s27 }
  0x32   : > { %v7332_v0 = vpack.c.bf16 %v861_v63, %v860_v62  ;;  %v863_v2 = vld [vmem:[%s9221_s23 + $0x18] sm:$0xff]  ;;  %v6128_v6 = vld [vmem:[%s9221_s23 + $0x20] sm:$0xff]  ;;  %v6129_v7 = vld [vmem:[%s9221_s23 + $0x28] sm:$0xff] }
  0x33   : > { %7294 = vmatpush3.bf16.msra.mxu1 %v7974_v19  ;;  %v7335_v5 = vpack.c.bf16 %v863_v2, %v862_v1  ;;  %v7326_v11 = vpack.c.bf16 %v6129_v7, %v6128_v6  ;;  %v6130_v12 = vld [vmem:[%s9221_s23 + $0x30] sm:$0xff]  ;;  %v6131_v13 = vld [vmem:[%s9221_s23 + $0x38] sm:$0xff]  ;;  %v8161_v21 = vld [vmem:[%s9222_s22] ss:$0 sm:$0xff] }
  0x34   : > { %7264 = vmatpush3.bf16.msra.mxu0 %v8028_v34  ;;  %7296 = vmatprep.subr.bf16.mxu1 %v7985_v22  ;;  %v7329_v15 = vpack.c.bf16 %v6131_v13, %v6130_v12  ;;  %v6136_v39 = vld [vmem:[%s8002_s19 + $0x40] sm:$0xff]  ;;  %v6135_v41 = vld [vmem:[%s8002_s19 + $0x38] sm:$0xff]  ;;  %v6134_v44 = vld [vmem:[%s8002_s19 + $0x30] sm:$0xff] }
  0x35   : > { %7266 = vmatprep.subr.bf16.mxu0 %v8033_v36  ;;  %v6138_v45 = vld [vmem:[%s9221_s23 + $0x40] sm:$0xff]  ;;  %v6139_v46 = vld [vmem:[%s9221_s23 + $0x48] sm:$0xff]  ;;  %v6145_v51 = vld [vmem:[%s8002_s19 + $0x58] sm:$0xff] }
  0x36   : > { %v7376_v47 = vpack.c.bf16 %v6139_v46, %v6138_v45  ;;  %v6152_v13 = vld [vmem:[%s9223_s6] ss:$0 sm:$0xff]  ;;  %v1670_v46 = vld [vmem:[%s9177_s9 + $0x38] sm:$0xff]  ;;  %s9229_s6 = sld [smem:[#allocation21_spill]] }
  0x37   : > { %7298 = vmatpush3.bf16.msra.mxu1 %v8007_v28 }
  0x38   : > { %7268 = vmatpush3.bf16.msra.mxu0 %v8050_v42  ;;  %7300 = vmatprep.subr.bf16.mxu1 %v8011_v29 }
  0x39   : > { %7270 = vmatprep.subr.bf16.mxu0 %v8054_v43 }
  0x3b   : > { %7302 = vmatpush3.bf16.msra.mxu1 %v8028_v34 }
  0x3c   : > { %7272 = vmatpush3.bf16.msra.mxu0 %v8070_v48  ;;  %7304 = vmatprep.subr.bf16.mxu1 %v8033_v36 }
  0x3d   : > { %7274 = vmatprep.subr.bf16.mxu0 %v8074_v49 }
  0x3f   : > { %7306 = vmatpush3.bf16.msra.mxu1 %v8050_v42 }
  0x40   : > { %7276 = vmatpush3.bf16.msra.mxu0 %v8090_v54  ;;  %7308 = vmatprep.subr.bf16.mxu1 %v8054_v43 }
  0x41   : > { %7278 = vmatprep.subr.bf16.mxu0 %v8094_v55 }
  0x43   : > { %7310 = vmatpush3.bf16.msra.mxu1 %v8070_v48 }
  0x44   : > { %7280 = vmatpush3.bf16.msra.mxu0 %v8104_v58  ;;  %7312 = vmatprep.subr.bf16.mxu1 %v8074_v49 }
  0x45   : > { %7319 = vmatprep.subr.bf16.mxu0 %v7755_v3 }
  0x47   : > { %784 = vmatmul.mubr.f32.vlgmr.msra.gmra.mrb[0].mxu0 %v669_v59  ;;  %7314 = vmatpush3.bf16.msra.mxu1 %v8090_v54 }
  0x48   : > { %7321 = vmatpush3.bf16.msra.mxu0 %v7942_v9  ;;  %7316 = vmatprep.subr.bf16.mxu1 %v8094_v55 }
  0x49   : > { %7322 = vmatprep.subr.bf16.mxu0 %v7755_v3  ;;  %6736 = vmatprep.mubr.msk.f32.mxu0 %vm7756_vm0, %v7757_v8 }
  0x4b   : > { %7318 = vmatpush3.bf16.msra.mxu1 %v8104_v58 }
  0x4c   : > { %7324 = vmatpush3.bf16.msra.mxu0 %v7972_v18  ;;  %7331 = vmatprep.subr.bf16.mxu1 %v7755_v3 }
  0x4d   : > { %7325 = vmatprep.subr.bf16.mxu0 %v7755_v3 }
  0x4e   : > { %936 = vmatmul.mubr.f32.vlgmr.msra.gmra.mrb[2].mxu1 %v6124_v60 }
  0x4f   : > { %6737 = vmatmul.mubr.msk.f32.vlgmr.msra.gmra.mrb[2].mxu0 %vm715_vm1, %v6126_v61  ;;  %6758 = vmatprep.mubr.msk.f32.mxu1 %vm7756_vm0, %v7757_v8 }
  0x50   : > { %6747 = vmatprep.mubr.msk.f32.mxu0 %vm7756_vm0, %v7757_v8  ;;  %7333 = vmatpush3.bf16.msra.mxu1 %v7332_v0 }
  0x51   : > { %7334 = vmatprep.subr.bf16.mxu1 %v7755_v3  ;;  %7327 = vmatpush3.bf16.msra.mxu0 %v7326_v11 }
  0x52   : > { %7328 = vmatprep.subr.bf16.mxu0 %v7755_v3 }
  0x54   : > { %7336 = vmatpush3.bf16.msra.mxu1 %v7335_v5  ;;  %v6144_v5 = vld [vmem:[%s8002_s19 + $0x50] sm:$0xff] }
  0x55   : > { %7369 = vmatprep.subr.bf16.mxu1 %v7755_v3  ;;  %7330 = vmatpush3.bf16.msra.mxu0 %v7329_v15 }
  0x56   : > { %7338 = vmatprep.subr.bf16.mxu0 %v7928_v4 }
 0x101   : > { %v855_v16 = vpop.f32.mrb[0].mxu1 }
 0x102   : > { %v6727_v17 = vpop.f32.mrb[1].mxu1 }
 0x11a   : > { %v6373_v20 = vpop.f32.mrb[0].mxu0 }
 0x11b   : > { %v6374_v23 = vpop.f32.mrb[1].mxu0 }
 0x11c   : > { %v6375_v24 = vadd.f32 %v6374_v23, %v6373_v20  ;;  %v1626_v20 = vld [vmem:[%s9224_s29] sm:$0xff]  ;;  %s9227_s29 = sld [smem:[#allocation19_spill]] }
 0x11e   : > { %v786_v25 = vadd.f32 %v6375_v24, %v8161_v21 }
 0x120   : > { %v856_v26 = vadd.f32 %v855_v16, %v786_v25 }
 0x121   : > { %v6413_v30 = vpop.f32.mrb[2].mxu1 }
 0x122   : > { %v859_v27 = vmax.f32 %v856_v26, 0.0  ;;  %v1007_v31 = vpop.f32.mrb[2].mxu0  ;;  %v6414_v32 = vpop.f32.mrb[3].mxu1 }
 0x123   : > { %v6738_v33 = vpop.f32.mrb[3].mxu0  ;;  %v6415_v35 = vadd.f32 %v6414_v32, %v6413_v30  ;;  %v1663_v32 = vld [vmem:[%s9177_s9] sm:$0xff] }
 0x124   : > { %6759 = vmatmul.mubr.msk.f32.vlgmr.msra.gmra.mrb[4].mxu1 %vm715_vm1, %v859_v27  ;;  %v1664_v33 = vld [vmem:[%s9177_s9 + $0x8] sm:$0xff] }
 0x125   : > { %7371 = vmatpush3.bf16.msra.mxu1 %v7942_v9  ;;  %6769 = vmatprep.mubr.msk.f32.mxu1 %vm7756_vm0, %v7757_v8  ;;  %v938_v37 = vadd.f32 %v6415_v35, %v8161_v21  ;;  %v1667_v35 = vld [vmem:[%s9177_s9 + $0x20] sm:$0xff] }
 0x126   : > { %7372 = vmatprep.subr.bf16.mxu1 %v7755_v3 }
 0x127   : > { %v1008_v38 = vadd.f32 %v1007_v31, %v938_v37  ;;  %v7426_v37 = vpack.c.bf16 %v1664_v33, %v1663_v32 }
 0x129   : > { %7374 = vmatpush3.bf16.msra.mxu1 %v7972_v18  ;;  %v1011_v40 = vmax.f32 %v1008_v38, 0.0  ;;  %v1668_v38 = vld [vmem:[%s9177_s9 + $0x28] sm:$0xff] }
 0x12a   : > { %7375 = vmatprep.subr.bf16.mxu1 %v7755_v3 }
 0x12b   : > { %6748 = vmatmul.mubr.msk.f32.vlgmr.msra.gmra.mrb[4].mxu0 %vm715_vm1, %v1011_v40  ;;  %v1665_v40 = vld [vmem:[%s9177_s9 + $0x10] sm:$0xff] }
 0x12c   : > { %6770 = vmatmul.mubr.msk.f32.vlgmr.msra.gmra.mrb[6].mxu1 %vm715_vm1, %v6136_v39  ;;  %7340 = vmatpush3.bf16.msra.mxu0 %v7944_v10  ;;  %v7432_v39 = vpack.c.bf16 %v1668_v38, %v1667_v35  ;;  %v1697_v35 = vld [vmem:[%s9177_s9 + $0x110] sm:$0xff] }
 0x12d   : > { %1234 = vmatprep.mubr.f32.mxu0 %v6135_v41  ;;  %7342 = vmatprep.subr.bf16.mxu0 %v7956_v14  ;;  %v1666_v41 = vld [vmem:[%s9177_s9 + $0x18] sm:$0xff]  ;;  %v1701_v38 = vld [vmem:[%s9177_s9 + $0x130] sm:$0xff] }
 0x12e   : > { %6780 = vmatprep.mubr.msk.f32.mxu1 %vm7756_vm0, %v7757_v8  ;;  %7377 = vmatpush3.bf16.msra.mxu1 %v7376_v47  ;;  %v7429_v45 = vpack.c.bf16 %v1666_v41, %v1665_v40 }
 0x12f   : > { %7378 = vmatprep.subr.bf16.mxu1 %v7755_v3 }
 0x130   : > { %7344 = vmatpush3.bf16.msra.mxu0 %v7974_v19 }
 0x131   : > { %7346 = vmatprep.subr.bf16.mxu0 %v7985_v22 }
 0x134   : > { %7348 = vmatpush3.bf16.msra.mxu0 %v8007_v28 }
 0x135   : > { %7350 = vmatprep.subr.bf16.mxu0 %v8011_v29 }
 0x138   : > { %7352 = vmatpush3.bf16.msra.mxu0 %v8028_v34 }
 0x139   : > { %7354 = vmatprep.subr.bf16.mxu0 %v8033_v36 }
 0x13c   : > { %7356 = vmatpush3.bf16.msra.mxu0 %v8050_v42 }
 0x13d   : > { %7358 = vmatprep.subr.bf16.mxu0 %v8054_v43 }
 0x140   : > { %7360 = vmatpush3.bf16.msra.mxu0 %v8070_v48 }
 0x141   : > { %7362 = vmatprep.subr.bf16.mxu0 %v8074_v49 }
 0x144   : > { %7364 = vmatpush3.bf16.msra.mxu0 %v8090_v54 }
 0x145   : > { %7366 = vmatprep.subr.bf16.mxu0 %v8094_v55 }
 0x148   : > { %7368 = vmatpush3.bf16.msra.mxu0 %v8104_v58 }
 0x149   : > { %7413 = vmatprep.subr.bf16.mxu0 %v7755_v3 }
 0x14b   : > { %1235 = vmatmul.mubr.f32.vlgmr.msra.gmra.mrb[6].mxu0 %v6134_v44  ;;  %v1669_v44 = vld [vmem:[%s9177_s9 + $0x30] sm:$0xff] }
 0x14c   : > { %7415 = vmatpush3.bf16.msra.mxu0 %v7942_v9  ;;  %6791 = vmatprep.mubr.msk.f32.mxu0 %vm7756_vm0, %v7757_v8  ;;  %v6140_v9 = vld [vmem:[%s9221_s23 + $0x50] sm:$0xff]  ;;  %v7435_v47 = vpack.c.bf16 %v1670_v46, %v1669_v44  ;;  %v1703_v44 = vld [vmem:[%s9177_s9 + $0x140] sm:$0xff] }
 0x14d   : > { %7416 = vmatprep.subr.bf16.mxu0 %v7755_v3  ;;  %v1707_v46 = vld [vmem:[%s9177_s9 + $0x160] sm:$0xff] }
 0x150   : > { %7418 = vmatpush3.bf16.msra.mxu0 %v7972_v18  ;;  %v6141_v18 = vld [vmem:[%s9221_s23 + $0x58] sm:$0xff] }
 0x151   : > { %7419 = vmatprep.subr.bf16.mxu0 %v7755_v3  ;;  %v7379_v50 = vpack.c.bf16 %v6141_v18, %v6140_v9 }
 0x153   : > { %7380 = vmatpush3.bf16.msra.mxu1 %v7379_v50  ;;  %6792 = vmatmul.mubr.msk.f32.vlgmr.msra.gmra.mrb[8].mxu0 %vm715_vm1, %v6145_v51 }
 0x154   : > { %7382 = vmatprep.subr.bf16.mxu1 %v7928_v4  ;;  %6802 = vmatprep.mubr.msk.f32.mxu0 %vm7756_vm0, %v7757_v8 }
 0x1f7   : > { %v1159_v52 = vpop.f32.mrb[4].mxu1 }
 0x1f8   : > { %v6760_v53 = vpop.f32.mrb[5].mxu1 }
 0x1f9   : > { %v1671_v53 = vld [vmem:[%s9177_s9 + $0x40] sm:$0xff] }
 0x1fe   : > { %v1086_v56 = vpop.f32.mrb[4].mxu0 }
 0x1ff   : > { %v1306_v57 = vpop.f32.mrb[6].mxu1  ;;  %v1160_v59 = vadd.f32 %v1159_v52, %v1086_v56  ;;  %v6749_v60 = vpop.f32.mrb[5].mxu0  ;;  %v6154_v52 = vld [vmem:[%s9225_s7] ss:$0 sm:$0xff] }
 0x200   : > { %v6771_v61 = vpop.f32.mrb[7].mxu1  ;;  %v1676_v60 = vld [vmem:[%s9177_s9 + $0x68] sm:$0xff] }
 0x201   : > { %v6155_v61 = vld [vmem:[%s9176_s8] ss:$0 sm:$0xff] }
 0x21e   : > { %v6463_v62 = vpop.f32.mrb[6].mxu0 }
 0x21f   : > { %v6464_v63 = vpop.f32.mrb[7].mxu0 }
 0x220   : > { %v6465_v0 = vadd.f32 %v6464_v63, %v6463_v62 }
 0x222   : > { %v1237_v1 = vadd.f32 %v6465_v0, %v8161_v21 }
 0x224   : > { %v1307_v4 = vadd.f32 %v1306_v57, %v1237_v1  ;;  %v1672_v57 = vld [vmem:[%s9177_s9 + $0x48] sm:$0xff]  ;;  %v1673_v1 = vld [vmem:[%s9177_s9 + $0x50] sm:$0xff] }
 0x225   : > { %v7438_v63 = vpack.c.bf16 %v1672_v57, %v1671_v53  ;;  %v1710_v53 = vld [vmem:[%s9177_s9 + $0x178] sm:$0xff] }
 0x226   : > { %v1310_v2 = vmax.f32 %v1307_v4, 0.0 }
 0x228   : > { %6781 = vmatmul.mubr.msk.f32.vlgmr.msra.gmra.mrb[8].mxu1 %vm715_vm1, %v1310_v2  ;;  %v1674_v2 = vld [vmem:[%s9177_s9 + $0x58] sm:$0xff] }
 0x229   : > { %7384 = vmatpush3.bf16.msra.mxu1 %v7944_v10  ;;  %1461 = vmatprep.mubr.f32.mxu1 %v6144_v5  ;;  %v6143_v10 = vld [vmem:[%s8002_s19 + $0x48] sm:$0xff]  ;;  %v1677_v5 = vld [vmem:[%s9177_s9 + $0x70] sm:$0xff]  ;;  %s668_s19 = scalar_lea.vmem %s9226_s2, %s7968_s30  ;;  %s9228_s2 = sld [smem:[#allocation20_spill]] }
 0x22a   : > { %7386 = vmatprep.subr.bf16.mxu1 %v7956_v14  ;;  %v6147_v14 = vld [vmem:[%s9221_s23 + $0x60] sm:$0xff]  ;;  %s660_s30 = scalar_lea.vmem [#allocation2], %s6120_s1 }
 0x22b   : > { %s6048_s4 = sshll.u32 %s660_s30, 4  ;;  %s9127_s4 = int_to_ptr.vmem [resolvable:$true] %s6048_s4 }
 0x22c   : > { %s7691_s26 = scalar_lea.vmem %s9127_s4, 128 }
 0x22d   : > { %7388 = vmatpush3.bf16.msra.mxu1 %v7974_v19  ;;  %v6148_v19 = vld [vmem:[%s9221_s23 + $0x68] sm:$0xff]  ;;  %p7692_p11 = scmp.ne.s32.totalorder %s9127_s4, %s7691_s26 }
 0x22e   : > { %7390 = vmatprep.subr.bf16.mxu1 %v7985_v22  ;;  %v7420_v22 = vpack.c.bf16 %v6148_v19, %v6147_v14  ;;  %v7441_v14 = vpack.c.bf16 %v1674_v2, %v1673_v1 }
 0x22f   : > { %p7693_p12 = pnand %p7692_p11, %p7908_p5 }
 0x230   : > { %7421 = vmatpush3.bf16.msra.mxu0 %v7420_v22  ;;  %v1679_v22 = vld [vmem:[%s9177_s9 + $0x80] sm:$0xff] }
 0x231   : > { %7392 = vmatpush3.bf16.msra.mxu1 %v8007_v28  ;;  %v1533_v28 = vpop.f32.mrb[8].mxu0  ;;  %7422 = vmatprep.subr.bf16.mxu0 %v7755_v3  ;;  %p7694_p13 = pneg %p7693_p12 }
 0x232   : > { %7394 = vmatprep.subr.bf16.mxu1 %v8011_v29  ;;  %v6149_v29 = vld [vmem:[%s9221_s23 + $0x70] sm:$0xff] }
 0x235   : > { %7396 = vmatpush3.bf16.msra.mxu1 %v8028_v34  ;;  %v6150_v34 = vld [vmem:[%s9221_s23 + $0x78] sm:$0xff] }
 0x236   : > { %7398 = vmatprep.subr.bf16.mxu1 %v8033_v36  ;;  %v6793_v36 = vpop.f32.mrb[9].mxu0 }
 0x239   : > { %7400 = vmatpush3.bf16.msra.mxu1 %v8050_v42  ;;  %v7423_v42 = vpack.c.bf16 %v6150_v34, %v6149_v29  ;;  %v1683_v29 = vld [vmem:[%s9177_s9 + $0xa0] sm:$0xff]  ;;  %v1684_v34 = vld [vmem:[%s9177_s9 + $0xa8] sm:$0xff] }
 0x23a   : > { %7402 = vmatprep.subr.bf16.mxu1 %v8054_v43 }
 0x23b   : > { %7424 = vmatpush3.bf16.msra.mxu0 %v7423_v42  ;;  %v7456_v42 = vpack.c.bf16 %v1684_v34, %v1683_v29  ;;  %v6161_v29 = vld [vmem:[%s9178_s10 + $0x5] ss:$0 sm:$0xff] }
 0x23c   : > { %7425 = vmatprep.subr.bf16.mxu0 %v7755_v3 }
 0x23d   : > { %7404 = vmatpush3.bf16.msra.mxu1 %v8070_v48 }
 0x23e   : > { %7406 = vmatprep.subr.bf16.mxu1 %v8074_v49 }
 0x241   : > { %7408 = vmatpush3.bf16.msra.mxu1 %v8090_v54 }
 0x242   : > { %7410 = vmatprep.subr.bf16.mxu1 %v8094_v55 }
 0x245   : > { %7412 = vmatpush3.bf16.msra.mxu1 %v8104_v58 }
 0x246   : > { %7431 = vmatprep.subr.bf16.mxu1 %v7755_v3 }
 0x248   : > { %1462 = vmatmul.mubr.f32.vlgmr.msra.gmra.mrb[10].mxu1 %v6143_v10  ;;  %v1678_v10 = vld [vmem:[%s9177_s9 + $0x78] sm:$0xff] }
 0x249   : > { %6824 = vmatprep.mubr.msk.f32.mxu1 %vm7756_vm0, %v7757_v8  ;;  %7433 = vmatpush3.bf16.msra.mxu1 %v7432_v39  ;;  %v7447_v19 = vpack.c.bf16 %v1678_v10, %v1677_v5  ;;  %v1702_v39 = vld [vmem:[%s9177_s9 + $0x138] sm:$0xff]  ;;  %v6160_v5 = vld [vmem:[%s9178_s10 + $0x4] ss:$0 sm:$0xff] }
 0x24a   : > { %7434 = vmatprep.subr.bf16.mxu1 %v7755_v3  ;;  %v7483_v41 = vpack.c.bf16 %v1702_v39, %v1701_v38  ;;  %v1628_v39 = vld [vmem:[%s668_s19] sm:$0x1]  ;;  %s6338_s19 = sshll.u32 %s7891_s3, 7  ;;  %s7759_s3 = smov [#allocation2]  }
 0x24b   : > { %vm1629_vm3 = vcmp.gt.f32.partialorder %v1628_v39, 0.0  ;;  %s7695_s1 = sshll.u32 %s7759_s3, 4  ;;  %s7696_s1 = int_to_ptr.vmem [resolvable:$false] %s7695_s1 }
 0x24c   : > { %p7698_p0 = scmp.lt.s32.totalorder %s9127_s4, %s7696_s1 }
 0x24d   : > { %7436 = vmatpush3.bf16.msra.mxu1 %v7435_v47  ;;  %v1708_v47 = vld [vmem:[%s9177_s9 + $0x168] sm:$0xff] }
 0x24e   : > { %7443 = vmatprep.subr.bf16.mxu1 %v7755_v3 }
 0x2fb   : > { %v1385_v43 = vpop.f32.mrb[8].mxu1 }
 0x2fc   : > { %v1389_v48 = vadd.f32 %v1385_v43, %v1160_v59  ;;  %v6782_v49 = vpop.f32.mrb[9].mxu1  ;;  %v1675_v59 = vld [vmem:[%s9177_s9 + $0x60] sm:$0xff]  ;;  %v1681_v43 = vld [vmem:[%s9177_s9 + $0x90] sm:$0xff] }
 0x2fd   : > { %v7444_v0 = vpack.c.bf16 %v1676_v60, %v1675_v59  ;;  %v1685_v49 = vld [vmem:[%s9177_s9 + $0xb0] sm:$0xff] }
 0x31b   : > { %v6508_v54 = vpop.f32.mrb[10].mxu1 }
 0x31c   : > { %v6509_v55 = vpop.f32.mrb[11].mxu1 }
 0x31d   : > { %v6510_v58 = vadd.f32 %v6509_v55, %v6508_v54  ;;  %v1686_v54 = vld [vmem:[%s9177_s9 + $0xb8] sm:$0xff] }
 0x31f   : > { %v1464_v6 = vadd.f32 %v6510_v58, %v8161_v21  ;;  %v7459_v58 = vpack.c.bf16 %v1686_v54, %v1685_v49 }
 0x321   : > { %v1534_v7 = vadd.f32 %v1533_v28, %v1464_v6  ;;  %v1680_v28 = vld [vmem:[%s9177_s9 + $0x88] sm:$0xff]  ;;  %v1687_v6 = vld [vmem:[%s9177_s9 + $0xc0] sm:$0xff] }
 0x322   : > { %v7450_v36 = vpack.c.bf16 %v1680_v28, %v1679_v22 }
 0x323   : > { %v1537_v11 = vmax.f32 %v1534_v7, 0.0  ;;  %v1688_v7 = vld [vmem:[%s9177_s9 + $0xc8] sm:$0xff] }
 0x325   : > { %6803 = vmatmul.mubr.msk.f32.vlgmr.msra.gmra.mrb[10].mxu0 %vm715_vm1, %v1537_v11  ;;  %v1691_v11 = vld [vmem:[%s9177_s9 + $0xe0] sm:$0xff] }
 0x326   : > { %6813 = vmatprep.mubr.msk.f32.mxu0 %vm7756_vm0, %v7757_v8  ;;  %7427 = vmatpush3.bf16.msra.mxu0 %v7426_v37  ;;  %v1698_v37 = vld [vmem:[%s9177_s9 + $0x118] sm:$0xff] }
 0x327   : > { %7428 = vmatprep.subr.bf16.mxu0 %v7755_v3  ;;  %v7477_v40 = vpack.c.bf16 %v1698_v37, %v1697_v35  ;;  %v2948_v37 = vlaneseq }
 0x329   : > { %v2949_v38 = vshrl.u32 %v2948_v37, 7  ;;  %v6167_v37 = vld [vmem:[%s9178_s10 + $0xb] ss:$0 sm:$0xff] }
 0x32a   : > { %7430 = vmatpush3.bf16.msra.mxu0 %v7429_v45  ;;  %v1704_v45 = vld [vmem:[%s9177_s9 + $0x148] sm:$0xff] }
 0x32b   : > { %7437 = vmatprep.subr.bf16.mxu0 %v7755_v3 }
 0x3f8   : > { %v1612_v12 = vpop.f32.mrb[10].mxu0 }
 0x3f9   : > { %v1616_v15 = vadd.f32 %v1612_v12, %v1389_v48  ;;  %v6804_v16 = vpop.f32.mrb[11].mxu0  ;;  %v1682_v48 = vld [vmem:[%s9177_s9 + $0x98] sm:$0xff]  ;;  %v1692_v12 = vld [vmem:[%s9177_s9 + $0xe8] sm:$0xff] }
 0x3fa   : > { %v7453_v55 = vpack.c.bf16 %v1682_v48, %v1681_v43  ;;  %v1689_v16 = vld [vmem:[%s9177_s9 + $0xd0] sm:$0xff]  ;;  %v6162_v43 = vld [vmem:[%s9178_s10 + $0x6] ss:$0 sm:$0xff]  ;;  %v6163_v48 = vld [vmem:[%s9178_s10 + $0x7] ss:$0 sm:$0xff] }
 0x3fb   : > { %v1624_v17 = vadd.f32 %v6152_v13, %v1616_v15  ;;  %v7462_v13 = vpack.c.bf16 %v1688_v7, %v1687_v6  ;;  %v7468_v15 = vpack.c.bf16 %v1692_v12, %v1691_v11  ;;  %v6159_v6 = vld [vmem:[%s9178_s10 + $0x3] ss:$0 sm:$0xff] }
 0x3fd   : > { %v1625_v21 = vmul.f32 5.656854, %v1624_v17  ;;  %v1690_v17 = vld [vmem:[%s9177_s9 + $0xd8] sm:$0xff] }
 0x3ff   : > { %v8265_v23 = vadd.f32 %v1626_v20, %v1625_v21  ;;  %v1693_v20 = vld [vmem:[%s9177_s9 + $0xf0] sm:$0xff]  ;;  %v1694_v21 = vld [vmem:[%s9177_s9 + $0xf8] sm:$0xff] }
 0x401   : > { %v1635_v24 = vsel %vm715_vm1, %v8265_v23, 0.0 }
 0x402   : > { %1636 = vadd.xlane.f32.xlu0 %v1635_v24  ;;  %v7465_v24 = vpack.c.bf16 %v1690_v17, %v1689_v16  ;;  %v6164_v17 = vld [vmem:[%s9178_s10 + $0x8] ss:$0 sm:$0xff] }
 0x48f   : > { %v1637_v25 = vpop.xlane.xlu0 %1636 }
 0x490   : > { %v1639_v26 = vmul.f32 0.03125, %v1637_v25  ;;  %v7471_v25 = vpack.c.bf16 %v1694_v21, %v1693_v20  ;;  %v6165_v20 = vld [vmem:[%s9178_s10 + $0x9] ss:$0 sm:$0xff] }
 0x492   : > { %v1640_v27 = vsub.f32 %v8265_v23, %v1639_v26  ;;  %v1695_v26 = vld [vmem:[%s9177_s9 + $0x100] sm:$0xff] }
 0x494   : > { %v1641_v30 = vmul.f32 %v1640_v27, %v1640_v27 }
 0x496   : > { %v1642_v31 = vsel %vm715_vm1, %v1641_v30, 0.0  ;;  %v1699_v30 = vld [vmem:[%s9177_s9 + $0x120] sm:$0xff] }
 0x497   : > { %1643 = vadd.xlane.f32.xlu0 %v1642_v31  ;;  %v1700_v31 = vld [vmem:[%s9177_s9 + $0x128] sm:$0xff] }
 0x498   : > { %v7480_v33 = vpack.c.bf16 %v1700_v31, %v1699_v30 }
 0x524   : > { %v1644_v9 = vpop.xlane.xlu0 %1643 }
 0x525   : > { %v1645_v18 = vmul.f32 0.03125, %v1644_v9  ;;  %v7486_v9 = vpack.c.bf16 %v1704_v45, %v1703_v44  ;;  %v7758_v45 = vmov -3.4028235e+38  }
 0x527   : > { %v1646_v50 = vadd.f32 1e-12, %v1645_v18  ;;  %v7492_v18 = vpack.c.bf16 %v1708_v47, %v1707_v46  ;;  %v1630_v46 = vsel %vm1629_vm3, 0.0, %v7758_v45 }
 0x529   : > { %7649 = vrsqrt.f32 %v1646_v50  ;;  %v1705_v50 = vld [vmem:[%s9177_s9 + $0x150] sm:$0xff] }
 0x533   : > { %v7650_v51 = vpop.eup %7649 }
 0x534   : > { %v1648_v56 = vmul.f32 %v7650_v51, %v1640_v27  ;;  %v1696_v27 = vld [vmem:[%s9177_s9 + $0x108] sm:$0xff]  ;;  %v1706_v51 = vld [vmem:[%s9177_s9 + $0x158] sm:$0xff] }
 0x535   : > { %v7474_v32 = vpack.c.bf16 %v1696_v27, %v1695_v26 }
 0x536   : > { %v1655_v62 = vmul.f32 %v6154_v52, %v1648_v56  ;;  %v1709_v52 = vld [vmem:[%s9177_s9 + $0x170] sm:$0xff]  ;;  %v7489_v56 = vpack.c.bf16 %v1706_v51, %v1705_v50 }
 0x537   : > { %v7495_v57 = vpack.c.bf16 %v1710_v53, %v1709_v52 }
 0x538   : > { %v8320_v4 = vadd.f32 %v6155_v61, %v1655_v62 }
 0x53a   : > { %6814 = vmatmul.mubr.msk.f32.vlgmr.msra.gmra.mrb[12].mxu0 %vm715_vm1, %v8320_v4  ;;  %6825 = vmatmul.mubr.msk.f32.vlgmr.msra.gmra.mrb[12].mxu1 %vm715_vm1, %v8320_v4 }
 0x53b   : > { %7439 = vmatpush3.bf16.msra.mxu0 %v7438_v63  ;;  %7445 = vmatpush3.bf16.msra.mxu1 %v7444_v0 }
 0x53c   : > { %7440 = vmatprep.subr.bf16.mxu0 %v7755_v3  ;;  %7446 = vmatprep.subr.bf16.mxu1 %v7755_v3 }
 0x53d   : > { %6835 = vmatprep.mubr.msk.f32.mxu0 %vm7756_vm0, %v7757_v8  ;;  %6846 = vmatprep.mubr.msk.f32.mxu1 %vm7756_vm0, %v7757_v8 }
 0x53f   : > { %7442 = vmatpush3.bf16.msra.mxu0 %v7441_v14  ;;  %7448 = vmatpush3.bf16.msra.mxu1 %v7447_v19  ;;  %v6156_v14 = vld [vmem:[%s9178_s10] ss:$0 sm:$0xff] }
 0x540   : > { %7449 = vmatprep.subr.bf16.mxu0 %v7755_v3  ;;  %7455 = vmatprep.subr.bf16.mxu1 %v7755_v3 }
 0x542   : > { %6836 = vmatmul.mubr.msk.f32.vlgmr.msra.gmra.mrb[14].mxu0 %vm715_vm1, %v8320_v4  ;;  %6847 = vmatmul.mubr.msk.f32.vlgmr.msra.gmra.mrb[14].mxu1 %vm715_vm1, %v8320_v4 }
 0x543   : > { %7451 = vmatpush3.bf16.msra.mxu0 %v7450_v36  ;;  %7457 = vmatpush3.bf16.msra.mxu1 %v7456_v42  ;;  %v6157_v36 = vld [vmem:[%s9178_s10 + $0x1] ss:$0 sm:$0xff] }
 0x544   : > { %7452 = vmatprep.subr.bf16.mxu0 %v7755_v3  ;;  %7458 = vmatprep.subr.bf16.mxu1 %v7755_v3 }
 0x545   : > { %6857 = vmatprep.mubr.msk.f32.mxu0 %vm7756_vm0, %v7757_v8  ;;  %6868 = vmatprep.mubr.msk.f32.mxu1 %vm7756_vm0, %v7757_v8 }
 0x547   : > { %7454 = vmatpush3.bf16.msra.mxu0 %v7453_v55  ;;  %7460 = vmatpush3.bf16.msra.mxu1 %v7459_v58  ;;  %v6158_v58 = vld [vmem:[%s9178_s10 + $0x2] ss:$0 sm:$0xff] }
 0x548   : > { %7461 = vmatprep.subr.bf16.mxu0 %v7755_v3  ;;  %7467 = vmatprep.subr.bf16.mxu1 %v7755_v3 }
 0x54a   : > { %6858 = vmatmul.mubr.msk.f32.vlgmr.msra.gmra.mrb[16].mxu0 %vm715_vm1, %v8320_v4  ;;  %6869 = vmatmul.mubr.msk.f32.vlgmr.msra.gmra.mrb[16].mxu1 %vm715_vm1, %v8320_v4 }
 0x54b   : > { %7463 = vmatpush3.bf16.msra.mxu0 %v7462_v13  ;;  %7469 = vmatpush3.bf16.msra.mxu1 %v7468_v15 }
 0x54c   : > { %7464 = vmatprep.subr.bf16.mxu0 %v7755_v3  ;;  %7470 = vmatprep.subr.bf16.mxu1 %v7755_v3 }
 0x54d   : > { %6879 = vmatprep.mubr.msk.f32.mxu0 %vm7756_vm0, %v7757_v8  ;;  %6890 = vmatprep.mubr.msk.f32.mxu1 %vm7756_vm0, %v7757_v8 }
 0x54f   : > { %7466 = vmatpush3.bf16.msra.mxu0 %v7465_v24  ;;  %7472 = vmatpush3.bf16.msra.mxu1 %v7471_v25 }
 0x550   : > { %7473 = vmatprep.subr.bf16.mxu0 %v7755_v3  ;;  %7479 = vmatprep.subr.bf16.mxu1 %v7755_v3 }
 0x552   : > { %6880 = vmatmul.mubr.msk.f32.vlgmr.msra.gmra.mrb[18].mxu0 %vm715_vm1, %v8320_v4  ;;  %6891 = vmatmul.mubr.msk.f32.vlgmr.msra.gmra.mrb[18].mxu1 %vm715_vm1, %v8320_v4 }
 0x553   : > { %7475 = vmatpush3.bf16.msra.mxu0 %v7474_v32  ;;  %7481 = vmatpush3.bf16.msra.mxu1 %v7480_v33 }
 0x554   : > { %7476 = vmatprep.subr.bf16.mxu0 %v7755_v3  ;;  %7482 = vmatprep.subr.bf16.mxu1 %v7755_v3 }
 0x555   : > { %6901 = vmatprep.mubr.msk.f32.mxu0 %vm7756_vm0, %v7757_v8  ;;  %6912 = vmatprep.mubr.msk.f32.mxu1 %vm7756_vm0, %v7757_v8 }
 0x557   : > { %7478 = vmatpush3.bf16.msra.mxu0 %v7477_v40  ;;  %7484 = vmatpush3.bf16.msra.mxu1 %v7483_v41  ;;  %v2950_v40 = vsub.s32 0, %v2949_v38  ;;  %v6153_v41 = vsel %vm1629_vm3, 1.0, %v7757_v8 }
 0x558   : > { %7485 = vmatprep.subr.bf16.mxu0 %v7755_v3  ;;  %7491 = vmatprep.subr.bf16.mxu1 %v7755_v3 }
 0x559   : > { %v8556_v44 = vrot.slane %v6153_v41, %v2950_v40  ;;  %v8558_v47 = vrot.slane %v1630_v46, %v2950_v40 }
 0x55a   : > { %6902 = vmatmul.mubr.msk.f32.vlgmr.msra.gmra.mrb[20].mxu0 %vm715_vm1, %v8320_v4  ;;  %6913 = vmatmul.mubr.msk.f32.vlgmr.msra.gmra.mrb[20].mxu1 %vm715_vm1, %v8320_v4 }
 0x55b   : > { %7487 = vmatpush3.bf16.msra.mxu0 %v7486_v9  ;;  %7493 = vmatpush3.bf16.msra.mxu1 %v7492_v18 }
 0x55c   : > { %7488 = vmatprep.subr.bf16.mxu0 %v7755_v3  ;;  %7494 = vmatprep.subr.bf16.mxu1 %v7755_v3 }
 0x55d   : > { %6923 = vmatprep.mubr.msk.f32.mxu0 %vm7756_vm0, %v7757_v8  ;;  %6934 = vmatprep.mubr.msk.f32.mxu1 %vm7756_vm0, %v7757_v8 }
 0x55f   : > { %7490 = vmatpush3.bf16.msra.mxu0 %v7489_v56  ;;  %7496 = vmatpush3.bf16.msra.mxu1 %v7495_v57 }
 0x560   : > { %6937 = vmatprep.subr.mxu0 %v7757_v8  ;;  %6952 = vmatprep.subr.mxu1 %v7757_v8 }
 0x562   : > { %6924 = vmatmul.mubr.msk.f32.vlgmr.msra.gmra.mrb[22].mxu0 %vm715_vm1, %v8320_v4  ;;  %6935 = vmatmul.mubr.msk.f32.vlgmr.msra.gmra.mrb[22].mxu1 %vm715_vm1, %v8320_v4 }
 0x563   : > { %6939 = vmatprep.mubr.msk.f32.mxu0 %vm7756_vm0, %v7757_v8  ;;  %6954 = vmatprep.mubr.msk.f32.mxu1 %vm7756_vm0, %v7757_v8 }
 0x60d   : > { %v1864_v59 = vpop.f32.mrb[12].mxu0  ;;  %v1934_v60 = vpop.f32.mrb[12].mxu1 }
 0x60e   : > { %v6815_v61 = vpop.f32.mrb[13].mxu0  ;;  %v6826_v62 = vpop.f32.mrb[13].mxu1  ;;  %v1865_v34 = vadd.f32 %v6156_v14, %v1864_v59  ;;  %v1935_v49 = vadd.f32 %v6157_v36, %v1934_v60 }
 0x615   : > { %v2004_v63 = vpop.f32.mrb[14].mxu0  ;;  %v2074_v0 = vpop.f32.mrb[14].mxu1 }
 0x616   : > { %v6837_v1 = vpop.f32.mrb[15].mxu0  ;;  %v6848_v2 = vpop.f32.mrb[15].mxu1  ;;  %v2005_v15 = vadd.f32 %v6158_v58, %v2004_v63  ;;  %v2075_v16 = vadd.f32 %v6159_v6, %v2074_v0 }
 0x61d   : > { %v2144_v10 = vpop.f32.mrb[16].mxu0  ;;  %v2214_v4 = vpop.f32.mrb[16].mxu1 }
 0x61e   : > { %v2145_v19 = vadd.f32 %v6160_v5, %v2144_v10  ;;  %v6859_v22 = vpop.f32.mrb[17].mxu0  ;;  %v6870_v28 = vpop.f32.mrb[17].mxu1  ;;  %v2215_v42 = vadd.f32 %v6161_v29, %v2214_v4 }
 0x620   : > { %6938 = vmatpush3.xpose.msk.msra.mxu0 %vm2638_vm2, %v2145_v19 }
 0x621   : > { %6942 = vmatprep.subr.mxu0 %v7757_v8 }
 0x623   : > { %6940 = vmatmul.mubr.msk.f32.vlgmr.msra.gmra.mrb[24].mxu0 %vm2638_vm2, %v1865_v34 }
 0x624   : > { %6943 = vmatpush3.xpose.msk.msra.mxu0 %vm2638_vm2, %v2215_v42  ;;  %6944 = vmatprep.mubr.msk.f32.mxu0 %vm7756_vm0, %v7757_v8 }
 0x625   : > { %v2284_v54 = vpop.f32.mrb[18].mxu0  ;;  %v2354_v55 = vpop.f32.mrb[18].mxu1  ;;  %6947 = vmatprep.subr.mxu0 %v7757_v8 }
 0x626   : > { %v2285_v7 = vadd.f32 %v6162_v43, %v2284_v54  ;;  %v2355_v11 = vadd.f32 %v6163_v48, %v2354_v55  ;;  %v6881_v12 = vpop.f32.mrb[19].mxu0  ;;  %v6892_v13 = vpop.f32.mrb[19].mxu1 }
 0x627   : > { %6945 = vmatmul.mubr.msk.f32.vlgmr.msra.gmra.mrb[26].mxu0 %vm2638_vm2, %v1935_v49 }
 0x628   : > { %6948 = vmatpush3.xpose.msk.msra.mxu0 %vm2638_vm2, %v2285_v7  ;;  %6953 = vmatpush3.xpose.msk.msra.mxu1 %vm2638_vm2, %v2355_v11 }
 0x629   : > { %6949 = vmatprep.mubr.msk.f32.mxu0 %vm7756_vm0, %v7757_v8  ;;  %6957 = vmatprep.subr.mxu0 %v7757_v8 }
 0x62a   : > { %6962 = vmatprep.subr.mxu1 %v7757_v8 }
 0x62b   : > { %6950 = vmatmul.mubr.msk.f32.vlgmr.msra.gmra.mrb[28].mxu0 %vm2638_vm2, %v2005_v15  ;;  %6955 = vmatmul.mubr.msk.f32.vlgmr.msra.gmra.mrb[24].mxu1 %vm2638_vm2, %v2075_v16 }
 0x62c   : > { %6959 = vmatprep.mubr.msk.f32.mxu0 %vm7756_vm0, %v7757_v8  ;;  %6964 = vmatprep.mubr.msk.f32.mxu1 %vm7756_vm0, %v7757_v8 }
 0x62d   : > { %v2424_v21 = vpop.f32.mrb[20].mxu0  ;;  %v2494_v24 = vpop.f32.mrb[20].mxu1 }
 0x62e   : > { %v2425_v25 = vadd.f32 %v6164_v17, %v2424_v21  ;;  %v2495_v26 = vadd.f32 %v6165_v20, %v2494_v24  ;;  %v6903_v27 = vpop.f32.mrb[21].mxu0  ;;  %v6914_v30 = vpop.f32.mrb[21].mxu1 }
 0x630   : > { %6958 = vmatpush3.msra.mxu0 %v2425_v25  ;;  %6963 = vmatpush3.msra.mxu1 %v2495_v26  ;;  %v6166_v26 = vld [vmem:[%s9178_s10 + $0xa] ss:$0 sm:$0xff] }
 0x631   : > { %6967 = vmatprep.subr.mxu0 %v7757_v8  ;;  %6972 = vmatprep.subr.mxu1 %v7757_v8 }
 0x635   : > { %v8547_v31 = vpop.f32.mrb[22].mxu0  ;;  %v8549_v32 = vpop.f32.mrb[22].mxu1 }
 0x636   : > { %v6925_v33 = vpop.f32.mrb[23].mxu0  ;;  %v6936_v35 = vpop.f32.mrb[23].mxu1 }
 0x637   : > { %v2565_v33 = vadd.f32 %v6166_v26, %v8547_v31  ;;  %v2635_v31 = vadd.f32 %v6167_v37, %v8549_v32  ;;  %v3303_v32 = vld [vmem:[%s9179_s11] sm:$0xff] }
 0x6f6   : > { %v2711_v9 = vpop.f32.mrb[24].mxu0 }
 0x6f7   : > { %v2943_v18 = vmul.f32 0.35355338, %v2711_v9  ;;  %v6941_v50 = vpop.f32.mrb[25].mxu0 }
 0x6f8   : > { %v3304_v50 = vld [vmem:[%s9179_s11 + $0x8] sm:$0xff] }
 0x6f9   : > { %v2953_v51 = vadd.f32 %v8558_v47, %v2943_v18 }
 0x6fa   : > { %v2787_v52 = vpop.f32.mrb[26].mxu0 }
 0x6fb   : > { %v2944_v53 = vmul.f32 0.35355338, %v2787_v52  ;;  %v6946_v56 = vpop.f32.mrb[27].mxu0  ;;  %v2957_v57 = vsel %vm2638_vm2, %v2953_v51, -inf }
 0x6fc   : > { %2958 = vmax.xlane.f32.xlu1 %v2957_v57  ;;  %v3306_v56 = vld [vmem:[%s9179_s11 + $0x18] sm:$0xff] }
 0x6fd   : > { %v2954_v59 = vadd.f32 %v8558_v47, %v2944_v53 }
 0x6fe   : > { %v2863_v60 = vpop.f32.mrb[28].mxu0  ;;  %v2939_v61 = vpop.f32.mrb[24].mxu1 }
 0x6ff   : > { %v2945_v62 = vmul.f32 0.35355338, %v2863_v60  ;;  %v2946_v63 = vmul.f32 0.35355338, %v2939_v61  ;;  %v6951_v0 = vpop.f32.mrb[29].mxu0  ;;  %v6956_v1 = vpop.f32.mrb[25].mxu1 }
 0x700   : > { %v2960_v2 = vsel %vm2638_vm2, %v2954_v59, -inf }
 0x701   : > { %2961 = vmax.xlane.f32.xlu1 %v2960_v2  ;;  %v2956_v5 = vadd.f32 %v8558_v47, %v2946_v63  ;;  %v2955_v10 = vadd.f32 %v8558_v47, %v2945_v62 }
 0x703   : > { %v2966_v4 = vsel %vm2638_vm2, %v2956_v5, -inf  ;;  %v2963_v14 = vsel %vm2638_vm2, %v2955_v10, -inf }
 0x704   : > { %2964 = vmax.xlane.f32.xlu0 %v2963_v14 }
 0x705   : > { %2967 = vmax.xlane.f32.xlu1 %v2966_v4 }
 0x789   : > { %v2959_v19 = vpop.xlane.xlu1 %2958 }
 0x78a   : > { %v2969_v22 = vsub.f32 %v2953_v51, %v2959_v19  ;;  %v3305_v51 = vld [vmem:[%s9179_s11 + $0x10] sm:$0xff] }
 0x78c   : > { %v2973_v28 = vmul.f32 1.442695, %v2969_v22 }
 0x78e   : > { %7651 = vpow2.f32 %v2973_v28  ;;  %v2962_v29 = vpop.xlane.xlu1 %2961 }
 0x78f   : > { %v2970_v34 = vsub.f32 %v2954_v59, %v2962_v29 }
 0x791   : > { %v2975_v36 = vmul.f32 1.442695, %v2970_v34  ;;  %v2965_v42 = vpop.xlane.xlu0 %2964 }
 0x792   : > { %v2968_v43 = vpop.xlane.xlu1 %2967  ;;  %v2971_v48 = vsub.f32 %v2955_v10, %v2965_v42 }
 0x793   : > { %7653 = vpow2.f32 %v2975_v36  ;;  %v2972_v49 = vsub.f32 %v2956_v5, %v2968_v43 }
 0x794   : > { %v2977_v54 = vmul.f32 1.442695, %v2971_v48  ;;  %v6196_v48 = vld [vmem:[%s9180_s12] ss:$0 sm:$0xff] }
 0x795   : > { %v2979_v55 = vmul.f32 1.442695, %v2972_v49 }
 0x796   : > { %7655 = vpow2.f32 %v2977_v54 }
 0x797   : > { %7657 = vpow2.f32 %v2979_v55 }
 0x798   : > { %v7652_v58 = vpop.eup %7651 }
 0x799   : > { %v2981_v6 = vsel %vm2638_vm2, %v7652_v58, 0.0 }
 0x79a   : > { %2982 = vadd.xlane.f32.xlu0 %v2981_v6 }
 0x79d   : > { %v7654_v7 = vpop.eup %7653 }
 0x79e   : > { %v2984_v11 = vsel %vm2638_vm2, %v7654_v7, 0.0 }
 0x79f   : > { %2985 = vadd.xlane.f32.xlu1 %v2984_v11 }
 0x7a0   : > { %v7656_v12 = vpop.eup %7655 }
 0x7a1   : > { %v7658_v13 = vpop.eup %7657  ;;  %v2987_v15 = vsel %vm2638_vm2, %v7656_v12, 0.0 }
 0x7a2   : > { %v2990_v16 = vsel %vm2638_vm2, %v7658_v13, 0.0  ;;  %2988 = vadd.xlane.f32.xlu0 %v2987_v15  ;;  %v3645_v15 = vld [vmem:[%s9183_s15 + $0x8] sm:$0xff] }
 0x7a3   : > { %2991 = vadd.xlane.f32.xlu1 %v2990_v16  ;;  %v3646_v16 = vld [vmem:[%s9183_s15 + $0x10] sm:$0xff] }
 0x827   : > { %v2983_v17 = vpop.xlane.xlu0 %2982 }
 0x828   : > { %7659 = vrcp.f32 %v2983_v17  ;;  %v3647_v17 = vld [vmem:[%s9183_s15 + $0x18] sm:$0xff] }
 0x82c   : > { %v2986_v20 = vpop.xlane.xlu1 %2985 }
 0x82d   : > { %7661 = vrcp.f32 %v2986_v20  ;;  %v7501_v20 = vpack.c.bf16 %v3647_v17, %v3646_v16  ;;  %v6223_v16 = vld [vmem:[%s9177_s9 + $0x200] sm:$0xff]  ;;  %v6224_v17 = vld [vmem:[%s9177_s9 + $0x208] sm:$0xff] }
 0x82f   : > { %v2989_v21 = vpop.xlane.xlu0 %2988 }
 0x830   : > { %v2992_v24 = vpop.xlane.xlu1 %2991  ;;  %7663 = vrcp.f32 %v2989_v21  ;;  %v3729_v21 = vld [vmem:[%s9185_s17] sm:$0xff] }
 0x831   : > { %7665 = vrcp.f32 %v2992_v24  ;;  %v3730_v24 = vld [vmem:[%s9185_s17 + $0x8] sm:$0xff] }
 0x832   : > { %v7660_v25 = vpop.eup %7659  ;;  %v7504_v26 = vpack.c.bf16 %v3730_v24, %v3729_v21 }
 0x833   : > { %v2997_v27 = vmul.f32 %v7660_v25, %v7652_v58  ;;  %v3731_v25 = vld [vmem:[%s9185_s17 + $0x10] sm:$0xff] }
 0x835   : > { %v3007_v30 = vmul.f32 %v8556_v44, %v2997_v27  ;;  %v3732_v27 = vld [vmem:[%s9185_s17 + $0x18] sm:$0xff] }
 0x837   : > { %v7662_v35 = vpop.eup %7661  ;;  %6960 = vmatmul.mubr.msk.f32.vlgmr.msra.gmra.mrb[30].mxu0 %vm2638_vm2, %v3007_v30  ;;  %v7507_v30 = vpack.c.bf16 %v3732_v27, %v3731_v25  ;;  %v7540_v25 = vpack.c.bf16 %v6224_v17, %v6223_v16  ;;  %v6254_v16 = vld [vmem:[%s9177_s9 + $0x2f8] sm:$0xff] }
 0x838   : > { %v2998_v38 = vmul.f32 %v7662_v35, %v7654_v7  ;;  %6968 = vmatpush3.msra.mxu0 %v2565_v33  ;;  %6969 = vmatprep.mubr.msk.f32.mxu0 %vm7756_vm0, %v7757_v8  ;;  %v3733_v33 = vld [vmem:[%s9185_s17 + $0x20] sm:$0xff]  ;;  %v3734_v35 = vld [vmem:[%s9185_s17 + $0x28] sm:$0xff] }
 0x839   : > { %6977 = vmatprep.subr.mxu0 %v7757_v8  ;;  %v7510_v37 = vpack.c.bf16 %v3734_v35, %v3733_v33  ;;  %v6225_v33 = vld [vmem:[%s9177_s9 + $0x210] sm:$0xff]  ;;  %v6226_v35 = vld [vmem:[%s9177_s9 + $0x218] sm:$0xff] }
 0x83a   : > { %v7664_v39 = vpop.eup %7663  ;;  %v3008_v40 = vmul.f32 %v8556_v44, %v2998_v38 }
 0x83b   : > { %v7666_v41 = vpop.eup %7665  ;;  %v2999_v45 = vmul.f32 %v7664_v39, %v7656_v12 }
 0x83c   : > { %v3000_v46 = vmul.f32 %v7666_v41, %v7658_v13  ;;  %6965 = vmatmul.mubr.msk.f32.vlgmr.msra.gmra.mrb[26].mxu1 %vm2638_vm2, %v3008_v40  ;;  %v3644_v13 = vld [vmem:[%s9183_s15] sm:$0xff] }
 0x83d   : > { %6973 = vmatpush3.msra.mxu1 %v2635_v31  ;;  %6974 = vmatprep.mubr.msk.f32.mxu1 %vm7756_vm0, %v7757_v8  ;;  %v3009_v9 = vmul.f32 %v8556_v44, %v2999_v45  ;;  %v6197_v31 = vld [vmem:[%s9181_s13] ss:$0 sm:$0xff] }
 0x83e   : > { %v3010_v18 = vmul.f32 %v8556_v44, %v3000_v46  ;;  %6982 = vmatprep.subr.mxu1 %v7757_v8  ;;  %v6198_v46 = vld [vmem:[%s9182_s14] ss:$0 sm:$0xff] }
 0x83f   : > { %6970 = vmatmul.mubr.msk.f32.vlgmr.msra.gmra.mrb[32].mxu0 %vm2638_vm2, %v3009_v9 }
 0x840   : > { %6975 = vmatmul.mubr.msk.f32.vlgmr.msra.gmra.mrb[28].mxu1 %vm2638_vm2, %v3010_v18  ;;  %6979 = vmatprep.mubr.msk.f32.mxu0 %vm7756_vm0, %v7757_v8 }
 0x841   : > { %6984 = vmatprep.mubr.msk.f32.mxu1 %vm7756_vm0, %v7757_v8  ;;  %6978 = vmatpush3.msra.mxu0 %v3303_v32  ;;  %v3735_v32 = vld [vmem:[%s9185_s17 + $0x30] sm:$0xff] }
 0x842   : > { %6987 = vmatprep.subr.mxu0 %v7757_v8  ;;  %6983 = vmatpush3.msra.mxu1 %v3304_v50  ;;  %v3736_v50 = vld [vmem:[%s9185_s17 + $0x38] sm:$0xff] }
 0x843   : > { %6992 = vmatprep.subr.mxu1 %v7757_v8 }
 0x90a   : > { %v3080_v52 = vpop.f32.mrb[30].mxu0 }
 0x90b   : > { %v6961_v53 = vpop.f32.mrb[31].mxu0  ;;  %6980 = vmatmul.mubr.msk.f32.vlgmr.msra.gmra.mrb[34].mxu0 %vm2638_vm2, %v3080_v52  ;;  %v6199_v52 = vld [vmem:[%s9184_s16] ss:$0 sm:$0xff] }
 0x90c   : > { %6988 = vmatpush3.msra.mxu0 %v3305_v51  ;;  %6989 = vmatprep.mubr.msk.f32.mxu0 %vm7756_vm0, %v7757_v8  ;;  %v7513_v51 = vpack.c.bf16 %v3736_v50, %v3735_v32  ;;  %v6233_v32 = vld [vmem:[%s9177_s9 + $0x250] sm:$0xff]  ;;  %v6234_v50 = vld [vmem:[%s9177_s9 + $0x258] sm:$0xff] }
 0x90d   : > { %7497 = vmatprep.subr.bf16.mxu0 %v7755_v3 }
 0x90f   : > { %v3153_v57 = vpop.f32.mrb[26].mxu1 }
 0x910   : > { %v6966_v59 = vpop.f32.mrb[27].mxu1  ;;  %6985 = vmatmul.mubr.msk.f32.vlgmr.msra.gmra.mrb[30].mxu1 %vm2638_vm2, %v3153_v57 }
 0x911   : > { %6993 = vmatpush3.msra.mxu1 %v3306_v56  ;;  %6994 = vmatprep.mubr.msk.f32.mxu1 %vm7756_vm0, %v7757_v8 }
 0x912   : > { %v3226_v60 = vpop.f32.mrb[32].mxu0  ;;  %7503 = vmatprep.subr.bf16.mxu1 %v7755_v3 }
 0x913   : > { %v3299_v61 = vpop.f32.mrb[28].mxu1  ;;  %v6971_v62 = vpop.f32.mrb[33].mxu0  ;;  %6990 = vmatmul.mubr.msk.f32.vlgmr.msra.gmra.mrb[36].mxu0 %vm2638_vm2, %v3226_v60 }
 0x914   : > { %v6976_v63 = vpop.f32.mrb[29].mxu1  ;;  %6995 = vmatmul.mubr.msk.f32.vlgmr.msra.gmra.mrb[32].mxu1 %vm2638_vm2, %v3299_v61  ;;  %7005 = vmatprep.mubr.msk.f32.mxu0 %vm7756_vm0, %v7757_v8  ;;  %v6202_v61 = vld [vmem:[%s9186_s18] ss:$0 sm:$0xff] }
 0x915   : > { %7024 = vmatprep.mubr.msk.f32.mxu1 %vm7756_vm0, %v7757_v8  ;;  %7505 = vmatpush3.bf16.msra.mxu1 %v7504_v26  ;;  %v6213_v26 = vld [vmem:[%s9177_s9 + $0x1b0] sm:$0xff] }
 0x916   : > { %7506 = vmatprep.subr.bf16.mxu1 %v7755_v3 }
 0x919   : > { %7508 = vmatpush3.bf16.msra.mxu1 %v7507_v30  ;;  %v6214_v30 = vld [vmem:[%s9177_s9 + $0x1b8] sm:$0xff] }
 0x91a   : > { %7509 = vmatprep.subr.bf16.mxu1 %v7755_v3 }
 0x91d   : > { %7511 = vmatpush3.bf16.msra.mxu1 %v7510_v37  ;;  %v7525_v37 = vpack.c.bf16 %v6214_v30, %v6213_v26  ;;  %v6271_v26 = vld [vmem:[%s9178_s10 + $0x10] ss:$0 sm:$0xff] }
 0x91e   : > { %7512 = vmatprep.subr.bf16.mxu1 %v7755_v3 }
 0x921   : > { %7514 = vmatpush3.bf16.msra.mxu1 %v7513_v51 }
 0x922   : > { %7527 = vmatprep.subr.bf16.mxu1 %v7755_v3 }
 0x9de   : > { %v3376_v0 = vpop.f32.mrb[34].mxu0 }
 0x9df   : > { %v6981_v1 = vpop.f32.mrb[35].mxu0  ;;  %v3599_v5 = vsel %vm715_vm1, %v3376_v0, 0.0 }
 0x9e3   : > { %v3449_v2 = vpop.f32.mrb[30].mxu1 }
 0x9e4   : > { %v3600_v10 = vsel %vm715_vm1, %v3449_v2, 0.0  ;;  %v6986_v4 = vpop.f32.mrb[31].mxu1 }
 0x9e5   : > { %v3601_v14 = vadd.f32 %v3600_v10, %v3599_v5 }
 0x9e6   : > { %v3522_v19 = vpop.f32.mrb[36].mxu0 }
 0x9e7   : > { %v3602_v22 = vsel %vm715_vm1, %v3522_v19, 0.0  ;;  %v3595_v28 = vpop.f32.mrb[32].mxu1  ;;  %v6991_v29 = vpop.f32.mrb[37].mxu0  ;;  %v6207_v19 = vld [vmem:[%s9177_s9 + $0x180] sm:$0xff] }
 0x9e8   : > { %v3603_v34 = vadd.f32 %v3602_v22, %v3601_v14  ;;  %v6996_v36 = vpop.f32.mrb[33].mxu1  ;;  %v3604_v42 = vsel %vm715_vm1, %v3595_v28, 0.0  ;;  %v6208_v22 = vld [vmem:[%s9177_s9 + $0x188] sm:$0xff]  ;;  %v6215_v28 = vld [vmem:[%s9177_s9 + $0x1c0] sm:$0xff] }
 0x9e9   : > { %v7516_v29 = vpack.c.bf16 %v6208_v22, %v6207_v19  ;;  %v6247_v19 = vld [vmem:[%s9177_s9 + $0x2c0] sm:$0xff]  ;;  %v6248_v22 = vld [vmem:[%s9177_s9 + $0x2c8] sm:$0xff] }
 0x9ea   : > { %v3605_v43 = vadd.f32 %v3604_v42, %v3603_v34  ;;  %v6216_v34 = vld [vmem:[%s9177_s9 + $0x1c8] sm:$0xff]  ;;  %v6209_v42 = vld [vmem:[%s9177_s9 + $0x190] sm:$0xff] }
 0x9eb   : > { %v7528_v36 = vpack.c.bf16 %v6216_v34, %v6215_v28  ;;  %v6237_v34 = vld [vmem:[%s9177_s9 + $0x270] sm:$0xff] }
 0x9ec   : > { %v3606_v49 = vadd.f32 %v3605_v43, %v8265_v23  ;;  %v7498_v23 = vpack.c.bf16 %v3645_v15, %v3644_v13  ;;  %v6210_v43 = vld [vmem:[%s9177_s9 + $0x198] sm:$0xff]  ;;  %v6211_v13 = vld [vmem:[%s9177_s9 + $0x1a0] sm:$0xff] }
 0x9ee   : > { %v3614_v54 = vadd.f32 %v6196_v48, %v3606_v49  ;;  %7499 = vmatpush3.bf16.msra.mxu0 %v7498_v23  ;;  %v6217_v48 = vld [vmem:[%s9177_s9 + $0x1d0] sm:$0xff]  ;;  %v7519_v49 = vpack.c.bf16 %v6210_v43, %v6209_v42  ;;  %v6212_v23 = vld [vmem:[%s9177_s9 + $0x1a8] sm:$0xff]  ;;  %v6250_v43 = vld [vmem:[%s9177_s9 + $0x2d8] sm:$0xff] }
 0x9ef   : > { %7500 = vmatprep.subr.bf16.mxu0 %v7755_v3  ;;  %v7522_v24 = vpack.c.bf16 %v6212_v23, %v6211_v13  ;;  %v6249_v42 = vld [vmem:[%s9177_s9 + $0x2d0] sm:$0xff]  ;;  %v6252_v13 = vld [vmem:[%s9177_s9 + $0x2e8] sm:$0xff] }
 0x9f0   : > { %v3617_v55 = vsel %vm715_vm1, %v3614_v54, 0.0  ;;  %v6253_v23 = vld [vmem:[%s9177_s9 + $0x2f0] sm:$0xff] }
 0x9f1   : > { %3618 = vadd.xlane.f32.xlu0 %v3617_v55  ;;  %v7585_v17 = vpack.c.bf16 %v6254_v16, %v6253_v23 }
 0x9f2   : > { %7502 = vmatpush3.bf16.msra.mxu0 %v7501_v20  ;;  %v6206_v20 = vld [vmem:[%s9176_s8 + $0x1] ss:$0 sm:$0xff] }
 0x9f3   : > { %7515 = vmatprep.subr.bf16.mxu0 %v7755_v3 }
 0xa7e   : > { %v3619_v58 = vpop.xlane.xlu0 %3618 }
 0xa7f   : > { %v3620_v6 = vmul.f32 0.03125, %v3619_v58 }
 0xa81   : > { %v3621_v7 = vsub.f32 %v3614_v54, %v3620_v6 }
 0xa83   : > { %v3622_v11 = vmul.f32 %v3621_v7, %v3621_v7 }
 0xa85   : > { %v3623_v12 = vsel %vm715_vm1, %v3622_v11, 0.0 }
 0xa86   : > { %3624 = vadd.xlane.f32.xlu1 %v3623_v12  ;;  %v6205_v12 = vld [vmem:[%s9225_s7 + $0x1] ss:$0 sm:$0xff]  ;;  %s9125_s7 = scalar_lea.hbm %s9229_s6, %s6338_s19 }
 0xb13   : > { %v3625_v38 = vpop.xlane.xlu1 %3624 }
 0xb14   : > { %v3626_v39 = vmul.f32 0.03125, %v3625_v38  ;;  %v7543_v38 = vpack.c.bf16 %v6226_v35, %v6225_v33  ;;  %v6267_v35 = vld [vmem:[%s9178_s10 + $0xc] ss:$0 sm:$0xff] }
 0xb16   : > { %v3627_v40 = vadd.f32 1e-12, %v3626_v39  ;;  %v6219_v39 = vld [vmem:[%s9177_s9 + $0x1e0] sm:$0xff] }
 0xb18   : > { %7667 = vrsqrt.f32 %v3627_v40  ;;  %v6220_v40 = vld [vmem:[%s9177_s9 + $0x1e8] sm:$0xff] }
 0xb22   : > { %v7668_v41 = vpop.eup %7667 }
 0xb23   : > { %v3629_v45 = vmul.f32 %v7668_v41, %v3621_v7  ;;  %v6231_v41 = vld [vmem:[%s9177_s9 + $0x240] sm:$0xff] }
 0xb25   : > { %v3636_v9 = vmul.f32 %v6197_v31, %v3629_v45  ;;  %v6232_v31 = vld [vmem:[%s9177_s9 + $0x248] sm:$0xff]  ;;  %v7534_v45 = vpack.c.bf16 %v6220_v40, %v6219_v39  ;;  %v6273_v40 = vld [vmem:[%s9178_s10 + $0x12] ss:$0 sm:$0xff] }
 0xb27   : > { %v3643_v18 = vadd.f32 %v6198_v46, %v3636_v9  ;;  %v7552_v46 = vpack.c.bf16 %v6232_v31, %v6231_v41  ;;  %v6221_v9 = vld [vmem:[%s9177_s9 + $0x1f0] sm:$0xff] }
 0xb29   : > { %7006 = vmatmul.mubr.msk.f32.vlgmr.msra.gmra.mrb[38].mxu0 %vm715_vm1, %v3643_v18  ;;  %v6222_v18 = vld [vmem:[%s9177_s9 + $0x1f8] sm:$0xff] }
 0xb2a   : > { %7035 = vmatprep.mubr.msk.f32.mxu0 %vm7756_vm0, %v7757_v8  ;;  %7517 = vmatpush3.bf16.msra.mxu0 %v7516_v29  ;;  %v7537_v51 = vpack.c.bf16 %v6222_v18, %v6221_v9  ;;  %v7576_v29 = vpack.c.bf16 %v6248_v22, %v6247_v19  ;;  %v6276_v22 = vld [vmem:[%s9178_s10 + $0x15] ss:$0 sm:$0xff] }
 0xb2b   : > { %7518 = vmatprep.subr.bf16.mxu0 %v7755_v3 }
 0xb2e   : > { %7520 = vmatpush3.bf16.msra.mxu0 %v7519_v49  ;;  %v7579_v49 = vpack.c.bf16 %v6250_v43, %v6249_v42 }
 0xb2f   : > { %7521 = vmatprep.subr.bf16.mxu0 %v7755_v3 }
 0xbfc   : > { %v3724_v53 = vpop.f32.mrb[38].mxu0 }
 0xbfd   : > { %v3725_v56 = vadd.f32 %v6199_v52, %v3724_v53  ;;  %v7007_v57 = vpop.f32.mrb[39].mxu0  ;;  %v7555_v52 = vpack.c.bf16 %v6234_v50, %v6233_v32  ;;  %v6227_v53 = vld [vmem:[%s9177_s9 + $0x220] sm:$0xff]  ;;  %v6272_v50 = vld [vmem:[%s9178_s10 + $0x11] ss:$0 sm:$0xff] }
 0xbfe   : > { %v6239_v57 = vld [vmem:[%s9177_s9 + $0x280] sm:$0xff] }
 0xbff   : > { %v3728_v59 = vmax.f32 %v3725_v56, 0.0  ;;  %v6228_v56 = vld [vmem:[%s9177_s9 + $0x228] sm:$0xff] }
 0xc01   : > { %7025 = vmatmul.mubr.msk.f32.vlgmr.msra.gmra.mrb[34].mxu1 %vm3737_vm4, %v3728_v59  ;;  %v6240_v59 = vld [vmem:[%s9177_s9 + $0x288] sm:$0xff] }
 0xc02   : > { %7057 = vmatprep.mubr.msk.f32.mxu1 %vm7756_vm0, %v7757_v8  ;;  %7529 = vmatpush3.bf16.msra.mxu1 %v7528_v36  ;;  %v6238_v36 = vld [vmem:[%s9177_s9 + $0x278] sm:$0xff] }
 0xc03   : > { %7530 = vmatprep.subr.bf16.mxu1 %v7755_v3 }
 0xcd4   : > { %v3807_v60 = vpop.f32.mrb[34].mxu1 }
 0xcd5   : > { %v3811_v62 = vadd.f32 %v3807_v60, %v3614_v54  ;;  %v7026_v63 = vpop.f32.mrb[35].mxu1  ;;  %v6218_v54 = vld [vmem:[%s9177_s9 + $0x1d8] sm:$0xff]  ;;  %v7546_v60 = vpack.c.bf16 %v6228_v56, %v6227_v53  ;;  %v6268_v56 = vld [vmem:[%s9178_s10 + $0xd] ss:$0 sm:$0xff] }
 0xcd6   : > { %v7531_v55 = vpack.c.bf16 %v6218_v54, %v6217_v48  ;;  %v6230_v63 = vld [vmem:[%s9177_s9 + $0x238] sm:$0xff]  ;;  %v7561_v48 = vpack.c.bf16 %v6238_v36, %v6237_v34  ;;  %v6243_v54 = vld [vmem:[%s9177_s9 + $0x2a0] sm:$0xff] }
 0xcd7   : > { %v8696_v0 = vadd.f32 %v6202_v61, %v3811_v62  ;;  %v7564_v61 = vpack.c.bf16 %v6240_v59, %v6239_v57  ;;  %v6229_v62 = vld [vmem:[%s9177_s9 + $0x230] sm:$0xff] }
 0xcd8   : > { %7532 = vmatpush3.bf16.msra.mxu1 %v7531_v55  ;;  %v6244_v55 = vld [vmem:[%s9177_s9 + $0x2a8] sm:$0xff] }
 0xcd9   : > { %v3824_v1 = vsel %vm715_vm1, %v8696_v0, 0.0  ;;  %7539 = vmatprep.subr.bf16.mxu1 %v7755_v3 }
 0xcda   : > { %3825 = vadd.xlane.f32.xlu0 %v3824_v1  ;;  %v6241_v1 = vld [vmem:[%s9177_s9 + $0x290] sm:$0xff] }
 0xd67   : > { %v3826_v2 = vpop.xlane.xlu0 %3825 }
 0xd68   : > { %v3827_v5 = vmul.f32 0.03125, %v3826_v2  ;;  %v6242_v2 = vld [vmem:[%s9177_s9 + $0x298] sm:$0xff] }
 0xd6a   : > { %v3828_v10 = vsub.f32 %v8696_v0, %v3827_v5  ;;  %v7549_v5 = vpack.c.bf16 %v6230_v63, %v6229_v62  ;;  %v6274_v63 = vld [vmem:[%s9178_s10 + $0x13] ss:$0 sm:$0xff] }
 0xd6c   : > { %v3829_v4 = vmul.f32 %v3828_v10, %v3828_v10 }
 0xd6e   : > { %v3830_v14 = vsel %vm715_vm1, %v3829_v4, 0.0  ;;  %v6235_v4 = vld [vmem:[%s9177_s9 + $0x260] sm:$0xff] }
 0xd6f   : > { %3831 = vadd.xlane.f32.xlu1 %v3830_v14  ;;  %v6236_v14 = vld [vmem:[%s9177_s9 + $0x268] sm:$0xff] }
 0xd70   : > { %v7558_v28 = vpack.c.bf16 %v6236_v14, %v6235_v4 }
 0xdfc   : > { %v3832_v58 = vpop.xlane.xlu1 %3831 }
 0xdfd   : > { %v3833_v6 = vmul.f32 0.03125, %v3832_v58  ;;  %v7570_v58 = vpack.c.bf16 %v6244_v55, %v6243_v54 }
 0xdff   : > { %v3834_v7 = vadd.f32 1e-12, %v3833_v6  ;;  %v6245_v6 = vld [vmem:[%s9177_s9 + $0x2b0] sm:$0xff] }
 0xe01   : > { %7669 = vrsqrt.f32 %v3834_v7  ;;  %v6246_v7 = vld [vmem:[%s9177_s9 + $0x2b8] sm:$0xff] }
 0xe0b   : > { %v7670_v11 = vpop.eup %7669 }
 0xe0c   : > { %v3836_v15 = vmul.f32 %v7670_v11, %v3828_v10  ;;  %v7567_v10 = vpack.c.bf16 %v6242_v2, %v6241_v1  ;;  %v7573_v11 = vpack.c.bf16 %v6246_v7, %v6245_v6 }
 0xe0e   : > { %v3843_v21 = vmul.f32 %v6205_v12, %v3836_v15  ;;  %v6251_v12 = vld [vmem:[%s9177_s9 + $0x2e0] sm:$0xff] }
 0xe0f   : > { %v7582_v15 = vpack.c.bf16 %v6252_v13, %v6251_v12 }
 0xe10   : > { %v8751_v27 = vadd.f32 %v6206_v20, %v3843_v21 }
 0xe12   : > { %7036 = vmatmul.mubr.msk.f32.vlgmr.msra.gmra.mrb[40].mxu0 %vm715_vm1, %v8751_v27  ;;  %7058 = vmatmul.mubr.msk.f32.vlgmr.msra.gmra.mrb[36].mxu1 %vm715_vm1, %v8751_v27 }
 0xe13   : > { %7523 = vmatpush3.bf16.msra.mxu0 %v7522_v24  ;;  %7541 = vmatpush3.bf16.msra.mxu1 %v7540_v25 }
 0xe14   : > { %7524 = vmatprep.subr.bf16.mxu0 %v7755_v3  ;;  %7542 = vmatprep.subr.bf16.mxu1 %v7755_v3 }
 0xe15   : > { %7046 = vmatprep.mubr.msk.f32.mxu0 %vm7756_vm0, %v7757_v8  ;;  %7079 = vmatprep.mubr.msk.f32.mxu1 %vm7756_vm0, %v7757_v8 }
 0xe17   : > { %7526 = vmatpush3.bf16.msra.mxu0 %v7525_v37  ;;  %7544 = vmatpush3.bf16.msra.mxu1 %v7543_v38 }
 0xe18   : > { %7533 = vmatprep.subr.bf16.mxu0 %v7755_v3  ;;  %7551 = vmatprep.subr.bf16.mxu1 %v7755_v3 }
 0xe1a   : > { %7047 = vmatmul.mubr.msk.f32.vlgmr.msra.gmra.mrb[42].mxu0 %vm715_vm1, %v8751_v27  ;;  %7080 = vmatmul.mubr.msk.f32.vlgmr.msra.gmra.mrb[38].mxu1 %vm715_vm1, %v8751_v27 }
 0xe1b   : > { %7535 = vmatpush3.bf16.msra.mxu0 %v7534_v45  ;;  %7553 = vmatpush3.bf16.msra.mxu1 %v7552_v46  ;;  %v6269_v45 = vld [vmem:[%s9178_s10 + $0xe] ss:$0 sm:$0xff] }
 0xe1c   : > { %7536 = vmatprep.subr.bf16.mxu0 %v7755_v3  ;;  %7554 = vmatprep.subr.bf16.mxu1 %v7755_v3 }
 0xe1d   : > { %7068 = vmatprep.mubr.msk.f32.mxu0 %vm7756_vm0, %v7757_v8  ;;  %7101 = vmatprep.mubr.msk.f32.mxu1 %vm7756_vm0, %v7757_v8 }
 0xe1f   : > { %7538 = vmatpush3.bf16.msra.mxu0 %v7537_v51  ;;  %7556 = vmatpush3.bf16.msra.mxu1 %v7555_v52  ;;  %v6275_v51 = vld [vmem:[%s9178_s10 + $0x14] ss:$0 sm:$0xff] }
 0xe20   : > { %7545 = vmatprep.subr.bf16.mxu0 %v7755_v3  ;;  %7563 = vmatprep.subr.bf16.mxu1 %v7755_v3 }
 0xe22   : > { %7069 = vmatmul.mubr.msk.f32.vlgmr.msra.gmra.mrb[44].mxu0 %vm715_vm1, %v8751_v27  ;;  %7102 = vmatmul.mubr.msk.f32.vlgmr.msra.gmra.mrb[40].mxu1 %vm715_vm1, %v8751_v27 }
 0xe23   : > { %7547 = vmatpush3.bf16.msra.mxu0 %v7546_v60  ;;  %7565 = vmatpush3.bf16.msra.mxu1 %v7564_v61 }
 0xe24   : > { %7548 = vmatprep.subr.bf16.mxu0 %v7755_v3  ;;  %7566 = vmatprep.subr.bf16.mxu1 %v7755_v3 }
 0xe25   : > { %7090 = vmatprep.mubr.msk.f32.mxu0 %vm7756_vm0, %v7757_v8  ;;  %7123 = vmatprep.mubr.msk.f32.mxu1 %vm7756_vm0, %v7757_v8 }
 0xe27   : > { %7550 = vmatpush3.bf16.msra.mxu0 %v7549_v5  ;;  %7568 = vmatpush3.bf16.msra.mxu1 %v7567_v10  ;;  %v6270_v5 = vld [vmem:[%s9178_s10 + $0xf] ss:$0 sm:$0xff] }
 0xe28   : > { %7557 = vmatprep.subr.bf16.mxu0 %v7755_v3  ;;  %7575 = vmatprep.subr.bf16.mxu1 %v7755_v3 }
 0xe2a   : > { %7091 = vmatmul.mubr.msk.f32.vlgmr.msra.gmra.mrb[46].mxu0 %vm715_vm1, %v8751_v27  ;;  %7124 = vmatmul.mubr.msk.f32.vlgmr.msra.gmra.mrb[42].mxu1 %vm715_vm1, %v8751_v27 }
 0xe2b   : > { %7559 = vmatpush3.bf16.msra.mxu0 %v7558_v28  ;;  %7577 = vmatpush3.bf16.msra.mxu1 %v7576_v29 }
 0xe2c   : > { %7560 = vmatprep.subr.bf16.mxu0 %v7755_v3  ;;  %7578 = vmatprep.subr.bf16.mxu1 %v7755_v3 }
 0xe2d   : > { %7112 = vmatprep.mubr.msk.f32.mxu0 %vm7756_vm0, %v7757_v8  ;;  %7145 = vmatprep.mubr.msk.f32.mxu1 %vm7756_vm0, %v7757_v8 }
 0xe2f   : > { %7562 = vmatpush3.bf16.msra.mxu0 %v7561_v48  ;;  %7580 = vmatpush3.bf16.msra.mxu1 %v7579_v49 }
 0xe30   : > { %7569 = vmatprep.subr.bf16.mxu0 %v7755_v3  ;;  %7159 = vmatprep.subr.mxu1 %v7757_v8 }
 0xe32   : > { %7113 = vmatmul.mubr.msk.f32.vlgmr.msra.gmra.mrb[48].mxu0 %vm715_vm1, %v8751_v27  ;;  %7146 = vmatmul.mubr.msk.f32.vlgmr.msra.gmra.mrb[44].mxu1 %vm715_vm1, %v8751_v27 }
 0xe33   : > { %7571 = vmatpush3.bf16.msra.mxu0 %v7570_v58  ;;  %7134 = vmatprep.mubr.msk.f32.mxu0 %vm7756_vm0, %v7757_v8 }
 0xe34   : > { %7572 = vmatprep.subr.bf16.mxu0 %v7755_v3  ;;  %7161 = vmatprep.mubr.msk.f32.mxu1 %vm7756_vm0, %v7757_v8 }
 0xe37   : > { %7574 = vmatpush3.bf16.msra.mxu0 %v7573_v11 }
 0xe38   : > { %7581 = vmatprep.subr.bf16.mxu0 %v7755_v3 }
 0xe3a   : > { %7135 = vmatmul.mubr.msk.f32.vlgmr.msra.gmra.mrb[50].mxu0 %vm715_vm1, %v8751_v27 }
 0xe3b   : > { %7583 = vmatpush3.bf16.msra.mxu0 %v7582_v15  ;;  %7156 = vmatprep.mubr.msk.f32.mxu0 %vm7756_vm0, %v7757_v8 }
 0xe3c   : > { %7584 = vmatprep.subr.bf16.mxu0 %v7755_v3 }
 0xe3f   : > { %7586 = vmatpush3.bf16.msra.mxu0 %v7585_v17 }
 0xe40   : > { %7169 = vmatprep.subr.mxu0 %v7757_v8 }
 0xe42   : > { %7157 = vmatmul.mubr.msk.f32.vlgmr.msra.gmra.mrb[52].mxu0 %vm715_vm1, %v8751_v27 }
 0xe43   : > { %7171 = vmatprep.mubr.msk.f32.mxu0 %vm7756_vm0, %v7757_v8 }
 0xee5   : > { %v4054_v20 = vpop.f32.mrb[40].mxu0  ;;  %v4194_v21 = vpop.f32.mrb[36].mxu1 }
 0xee6   : > { %v7037_v24 = vpop.f32.mrb[41].mxu0  ;;  %v7059_v25 = vpop.f32.mrb[37].mxu1  ;;  %v4055_v39 = vadd.f32 %v6267_v35, %v4054_v20  ;;  %v4195_v32 = vadd.f32 %v6269_v45, %v4194_v21 }
 0xeed   : > { %v4124_v30 = vpop.f32.mrb[42].mxu0  ;;  %v4334_v33 = vpop.f32.mrb[38].mxu1 }
 0xeee   : > { %v4335_v37 = vadd.f32 %v6271_v26, %v4334_v33  ;;  %v7048_v38 = vpop.f32.mrb[43].mxu0  ;;  %v7081_v27 = vpop.f32.mrb[39].mxu1  ;;  %v4125_v62 = vadd.f32 %v6268_v56, %v4124_v30 }
 0xef0   : > { %7160 = vmatpush3.xpose.msk.msra.mxu1 %vm2638_vm2, %v4335_v37 }
 0xef1   : > { %7164 = vmatprep.subr.mxu1 %v7757_v8 }
 0xef3   : > { %7162 = vmatmul.mubr.msk.f32.vlgmr.msra.gmra.mrb[46].mxu1 %vm2638_vm2, %v4055_v39 }
 0xef4   : > { %7166 = vmatprep.mubr.msk.f32.mxu1 %vm7756_vm0, %v7757_v8 }
 0xef5   : > { %v4264_v41 = vpop.f32.mrb[44].mxu0  ;;  %v4474_v31 = vpop.f32.mrb[40].mxu1 }
 0xef6   : > { %v4475_v46 = vadd.f32 %v6273_v40, %v4474_v31  ;;  %v7070_v9 = vpop.f32.mrb[45].mxu0  ;;  %v7103_v18 = vpop.f32.mrb[41].mxu1  ;;  %v4265_v19 = vadd.f32 %v6270_v5, %v4264_v41 }
 0xef8   : > { %7170 = vmatpush3.xpose.msk.msra.mxu0 %vm2638_vm2, %v4475_v46 }
 0xef9   : > { %7179 = vmatprep.subr.mxu0 %v7757_v8 }
 0xefb   : > { %7172 = vmatmul.mubr.msk.f32.vlgmr.msra.gmra.mrb[54].mxu0 %vm2638_vm2, %v4195_v32 }
 0xefc   : > { %7181 = vmatprep.mubr.msk.f32.mxu0 %vm7756_vm0, %v7757_v8 }
 0xefd   : > { %v4404_v52 = vpop.f32.mrb[46].mxu0  ;;  %v4614_v53 = vpop.f32.mrb[42].mxu1 }
 0xefe   : > { %v4405_v57 = vadd.f32 %v6272_v50, %v4404_v52  ;;  %v4615_v59 = vadd.f32 %v6275_v51, %v4614_v53  ;;  %v7092_v60 = vpop.f32.mrb[47].mxu0  ;;  %v7125_v61 = vpop.f32.mrb[43].mxu1 }
 0xeff   : > { %v6277_v60 = vld [vmem:[%s9178_s10 + $0x16] ss:$0 sm:$0xff] }
 0xf00   : > { %7165 = vmatpush3.xpose.msk.msra.mxu1 %vm2638_vm2, %v4405_v57  ;;  %7180 = vmatpush3.msra.mxu0 %v4615_v59 }
 0xf01   : > { %7174 = vmatprep.subr.mxu1 %v7757_v8  ;;  %7189 = vmatprep.subr.mxu0 %v7757_v8 }
 0xf03   : > { %7167 = vmatmul.mubr.msk.f32.vlgmr.msra.gmra.mrb[48].mxu1 %vm2638_vm2, %v4125_v62 }
 0xf04   : > { %7176 = vmatprep.mubr.msk.f32.mxu1 %vm7756_vm0, %v7757_v8 }
 0xf05   : > { %v4544_v1 = vpop.f32.mrb[48].mxu0  ;;  %v8966_v2 = vpop.f32.mrb[44].mxu1 }
 0xf06   : > { %v4545_v10 = vadd.f32 %v6274_v63, %v4544_v1  ;;  %v7114_v4 = vpop.f32.mrb[49].mxu0  ;;  %v7147_v14 = vpop.f32.mrb[45].mxu1  ;;  %v4755_v63 = vadd.f32 %v6277_v60, %v8966_v2  ;;  %v6327_v60 = vld [vmem:[%s9185_s17 + $0x58] sm:$0xff] }
 0xf08   : > { %7175 = vmatpush3.xpose.msk.msra.mxu1 %vm2638_vm2, %v4545_v10 }
 0xf09   : > { %7184 = vmatprep.subr.mxu1 %v7757_v8 }
 0xf0b   : > { %7177 = vmatmul.mubr.msk.f32.vlgmr.msra.gmra.mrb[50].mxu1 %vm2638_vm2, %v4265_v19  ;;  %v6278_v19 = vld [vmem:[%s9178_s10 + $0x17] ss:$0 sm:$0xff] }
 0xf0c   : > { %7186 = vmatprep.mubr.msk.f32.mxu1 %vm7756_vm0, %v7757_v8 }
 0xf0d   : > { %v4684_v28 = vpop.f32.mrb[50].mxu0 }
 0xf0e   : > { %v4685_v29 = vadd.f32 %v6276_v22, %v4684_v28  ;;  %v7136_v34 = vpop.f32.mrb[51].mxu0 }
 0xf10   : > { %7185 = vmatpush3.msra.mxu1 %v4685_v29 }
 0xf11   : > { %7194 = vmatprep.subr.mxu1 %v7757_v8 }
 0xf15   : > { %v8980_v36 = vpop.f32.mrb[52].mxu0 }
 0xf16   : > { %v7158_v42 = vpop.f32.mrb[53].mxu0  ;;  %v4825_v29 = vadd.f32 %v6278_v19, %v8980_v36  ;;  %v6303_v36 = vld [vmem:[%s9179_s11 + $0x20] sm:$0xff] }
 0xfc6   : > { %v4900_v43 = vpop.f32.mrb[46].mxu1 }
 0xfc7   : > { %v5132_v48 = vmul.f32 0.35355338, %v4900_v43  ;;  %v7163_v49 = vpop.f32.mrb[47].mxu1 }
 0xfc9   : > { %v5136_v54 = vadd.f32 %v5132_v48, %v8558_v47  ;;  %v6304_v48 = vld [vmem:[%s9179_s11 + $0x28] sm:$0xff] }
 0xfcb   : > { %v5140_v55 = vsel %vm2638_vm2, %v5136_v54, -inf }
 0xfcc   : > { %5141 = vmax.xlane.f32.xlu0 %v5140_v55 }
 0xfce   : > { %v5052_v58 = vpop.f32.mrb[54].mxu0 }
 0xfcf   : > { %v5134_v6 = vmul.f32 0.35355338, %v5052_v58  ;;  %v7173_v7 = vpop.f32.mrb[55].mxu0 }
 0xfd1   : > { %v5138_v11 = vadd.f32 %v5134_v6, %v8558_v47  ;;  %v6306_v6 = vld [vmem:[%s9179_s11 + $0x38] sm:$0xff] }
 0xfd3   : > { %v5146_v12 = vsel %vm2638_vm2, %v5138_v11, -inf }
 0xfd4   : > { %5147 = vmax.xlane.f32.xlu0 %v5146_v12 }
 0xfd6   : > { %v4976_v13 = vpop.f32.mrb[48].mxu1 }
 0xfd7   : > { %v5133_v15 = vmul.f32 0.35355338, %v4976_v13  ;;  %v7168_v23 = vpop.f32.mrb[49].mxu1 }
 0xfd9   : > { %v5137_v16 = vadd.f32 %v5133_v15, %v8558_v47 }
 0xfdb   : > { %v5143_v17 = vsel %vm2638_vm2, %v5137_v16, -inf }
 0xfdc   : > { %5144 = vmax.xlane.f32.xlu1 %v5143_v17 }
 0xfde   : > { %v5128_v20 = vpop.f32.mrb[50].mxu1 }
 0xfdf   : > { %v5135_v21 = vmul.f32 0.35355338, %v5128_v20  ;;  %v7178_v24 = vpop.f32.mrb[51].mxu1 }
 0xfe1   : > { %v5139_v25 = vadd.f32 %v5135_v21, %v8558_v47 }
 0xfe3   : > { %v5149_v26 = vsel %vm2638_vm2, %v5139_v25, -inf }
 0xfe4   : > { %5150 = vmax.xlane.f32.xlu1 %v5149_v26 }
0x1059   : > { %v5142_v30 = vpop.xlane.xlu0 %5141 }
0x105a   : > { %v5152_v33 = vsub.f32 %v5136_v54, %v5142_v30 }
0x105c   : > { %v5156_v35 = vmul.f32 1.442695, %v5152_v33 }
0x105e   : > { %7671 = vpow2.f32 %v5156_v35 }
0x1061   : > { %v5148_v37 = vpop.xlane.xlu0 %5147 }
0x1062   : > { %v5154_v38 = vsub.f32 %v5138_v11, %v5148_v37 }
0x1064   : > { %v5160_v27 = vmul.f32 1.442695, %v5154_v38 }
0x1066   : > { %7673 = vpow2.f32 %v5160_v27 }
0x1068   : > { %v7672_v39 = vpop.eup %7671 }
0x1069   : > { %v5145_v40 = vpop.xlane.xlu1 %5144  ;;  %v5164_v41 = vsel %vm2638_vm2, %v7672_v39, 0.0 }
0x106a   : > { %v5153_v31 = vsub.f32 %v5137_v16, %v5145_v40  ;;  %5165 = vadd.xlane.f32.xlu0 %v5164_v41 }
0x106c   : > { %v5158_v45 = vmul.f32 1.442695, %v5153_v31 }
0x106e   : > { %7675 = vpow2.f32 %v5158_v45 }
0x1070   : > { %v7674_v47 = vpop.eup %7673 }
0x1071   : > { %v5151_v46 = vpop.xlane.xlu1 %5150  ;;  %v5170_v9 = vsel %vm2638_vm2, %v7674_v47, 0.0 }
0x1072   : > { %v5155_v18 = vsub.f32 %v5139_v25, %v5151_v46  ;;  %5171 = vadd.xlane.f32.xlu0 %v5170_v9 }
0x1074   : > { %v5162_v32 = vmul.f32 1.442695, %v5155_v18  ;;  %v6317_v18 = vld [vmem:[%s9183_s15 + $0x20] sm:$0xff] }
0x1076   : > { %7677 = vpow2.f32 %v5162_v32  ;;  %v6318_v32 = vld [vmem:[%s9183_s15 + $0x28] sm:$0xff] }
0x1078   : > { %v7676_v50 = vpop.eup %7675 }
0x1079   : > { %v5167_v51 = vsel %vm2638_vm2, %v7676_v50, 0.0 }
0x107a   : > { %5168 = vadd.xlane.f32.xlu1 %v5167_v51  ;;  %v6320_v51 = vld [vmem:[%s9183_s15 + $0x38] sm:$0xff] }
0x1080   : > { %v7678_v52 = vpop.eup %7677 }
0x1081   : > { %v5173_v53 = vsel %vm2638_vm2, %v7678_v52, 0.0 }
0x1082   : > { %5174 = vadd.xlane.f32.xlu1 %v5173_v53  ;;  %v6324_v53 = vld [vmem:[%s9185_s17 + $0x40] sm:$0xff] }
0x10f7   : > { %v5166_v56 = vpop.xlane.xlu0 %5165 }
0x10f8   : > { %7679 = vrcp.f32 %v5166_v56  ;;  %v6325_v56 = vld [vmem:[%s9185_s17 + $0x48] sm:$0xff] }
0x10ff   : > { %v5172_v57 = vpop.xlane.xlu0 %5171 }
0x1100   : > { %7681 = vrcp.f32 %v5172_v57  ;;  %v6326_v57 = vld [vmem:[%s9185_s17 + $0x50] sm:$0xff] }
0x1102   : > { %v7680_v59 = vpop.eup %7679 }
0x1103   : > { %v5180_v61 = vmul.f32 %v7680_v59, %v7672_v39  ;;  %v7594_v59 = vpack.c.bf16 %v6325_v56, %v6324_v53 }
0x1105   : > { %v5184_v62 = vmul.f32 %v5180_v61, %v8556_v44  ;;  %v7597_v61 = vpack.c.bf16 %v6327_v60, %v6326_v57 }
0x1107   : > { %v5169_v1 = vpop.xlane.xlu1 %5168  ;;  %7182 = vmatmul.mubr.msk.f32.vlgmr.msra.gmra.mrb[56].mxu0 %vm2638_vm2, %v5184_v62  ;;  %v6328_v62 = vld [vmem:[%s9185_s17 + $0x60] sm:$0xff] }
0x1108   : > { %7683 = vrcp.f32 %v5169_v1  ;;  %7190 = vmatpush3.msra.mxu0 %v4755_v63  ;;  %7191 = vmatprep.mubr.msk.f32.mxu0 %vm7756_vm0, %v7757_v8  ;;  %v6329_v63 = vld [vmem:[%s9185_s17 + $0x68] sm:$0xff] }
0x1109   : > { %7199 = vmatprep.subr.mxu0 %v7757_v8  ;;  %v7600_v1 = vpack.c.bf16 %v6329_v63, %v6328_v62 }
0x110a   : > { %v7682_v5 = vpop.eup %7681 }
0x110b   : > { %v5182_v10 = vmul.f32 %v7682_v5, %v7674_v47 }
0x110d   : > { %v5186_v4 = vmul.f32 %v5182_v10, %v8556_v44 }
0x110f   : > { %v5175_v14 = vpop.xlane.xlu1 %5174  ;;  %7192 = vmatmul.mubr.msk.f32.vlgmr.msra.gmra.mrb[58].mxu0 %vm2638_vm2, %v5186_v4 }
0x1110   : > { %7685 = vrcp.f32 %v5175_v14  ;;  %7201 = vmatprep.mubr.msk.f32.mxu0 %vm7756_vm0, %v7757_v8  ;;  %7200 = vmatpush3.msra.mxu0 %v6303_v36 }
0x1111   : > { %7209 = vmatprep.subr.mxu0 %v7757_v8 }
0x1112   : > { %v7684_v2 = vpop.eup %7683 }
0x1113   : > { %v5181_v22 = vmul.f32 %v7684_v2, %v7676_v50  ;;  %v6319_v50 = vld [vmem:[%s9183_s15 + $0x30] sm:$0xff]  ;;  %v6315_v2 = vld [vmem:[%s9181_s13 + $0x1] ss:$0 sm:$0xff] }
0x1115   : > { %v5185_v28 = vmul.f32 %v5181_v22, %v8556_v44  ;;  %v6316_v22 = vld [vmem:[%s9182_s14 + $0x1] ss:$0 sm:$0xff] }
0x1117   : > { %7187 = vmatmul.mubr.msk.f32.vlgmr.msra.gmra.mrb[52].mxu1 %vm2638_vm2, %v5185_v28 }
0x1118   : > { %7195 = vmatpush3.msra.mxu1 %v4825_v29  ;;  %7196 = vmatprep.mubr.msk.f32.mxu1 %vm7756_vm0, %v7757_v8 }
0x1119   : > { %7204 = vmatprep.subr.mxu1 %v7757_v8 }
0x111a   : > { %v7686_v34 = vpop.eup %7685 }
0x111b   : > { %v5183_v42 = vmul.f32 %v7686_v34, %v7678_v52  ;;  %v7591_v52 = vpack.c.bf16 %v6320_v51, %v6319_v50  ;;  %v6331_v34 = vld [vmem:[%s9185_s17 + $0x78] sm:$0xff] }
0x111d   : > { %v5187_v43 = vmul.f32 %v5183_v42, %v8556_v44  ;;  %v6305_v44 = vld [vmem:[%s9179_s11 + $0x30] sm:$0xff] }
0x111f   : > { %7197 = vmatmul.mubr.msk.f32.vlgmr.msra.gmra.mrb[54].mxu1 %vm2638_vm2, %v5187_v43  ;;  %v6322_v43 = vld [vmem:[%s9184_s16 + $0x1] ss:$0 sm:$0xff] }
0x1120   : > { %7206 = vmatprep.mubr.msk.f32.mxu1 %vm7756_vm0, %v7757_v8  ;;  %7205 = vmatpush3.msra.mxu1 %v6304_v48 }
0x1121   : > { %7214 = vmatprep.subr.mxu1 %v7757_v8 }
0x11da   : > { %v5257_v49 = vpop.f32.mrb[56].mxu0 }
0x11db   : > { %v7183_v54 = vpop.f32.mrb[57].mxu0  ;;  %7202 = vmatmul.mubr.msk.f32.vlgmr.msra.gmra.mrb[60].mxu0 %vm2638_vm2, %v5257_v49 }
0x11dc   : > { %7210 = vmatpush3.msra.mxu0 %v6305_v44  ;;  %7211 = vmatprep.mubr.msk.f32.mxu0 %vm7756_vm0, %v7757_v8 }
0x11dd   : > { %7587 = vmatprep.subr.bf16.mxu0 %v7755_v3 }
0x11e2   : > { %v5403_v55 = vpop.f32.mrb[58].mxu0 }
0x11e3   : > { %v7193_v58 = vpop.f32.mrb[59].mxu0  ;;  %7212 = vmatmul.mubr.msk.f32.vlgmr.msra.gmra.mrb[62].mxu0 %vm2638_vm2, %v5403_v55  ;;  %v6334_v55 = vld [vmem:[%s9186_s18 + $0x1] ss:$0 sm:$0xff] }
0x11e4   : > { %7227 = vmatprep.mubr.msk.f32.mxu0 %vm7756_vm0, %v7757_v8 }
0x11ea   : > { %v5330_v7 = vpop.f32.mrb[52].mxu1 }
0x11eb   : > { %v7188_v11 = vpop.f32.mrb[53].mxu1  ;;  %7207 = vmatmul.mubr.msk.f32.vlgmr.msra.gmra.mrb[56].mxu1 %vm2638_vm2, %v5330_v7 }
0x11ec   : > { %7215 = vmatpush3.msra.mxu1 %v6306_v6  ;;  %7216 = vmatprep.mubr.msk.f32.mxu1 %vm7756_vm0, %v7757_v8 }
0x11ed   : > { %7593 = vmatprep.subr.bf16.mxu1 %v7755_v3 }
0x11f2   : > { %v5476_v12 = vpop.f32.mrb[54].mxu1 }
0x11f3   : > { %v7198_v13 = vpop.f32.mrb[55].mxu1  ;;  %7217 = vmatmul.mubr.msk.f32.vlgmr.msra.gmra.mrb[58].mxu1 %vm2638_vm2, %v5476_v12 }
0x11f4   : > { %7246 = vmatprep.mubr.msk.f32.mxu1 %vm7756_vm0, %v7757_v8  ;;  %v6312_v8 = vld [vmem:[%s9180_s12 + $0x1] ss:$0 sm:$0xff]  ;;  %7595 = vmatpush3.bf16.msra.mxu1 %v7594_v59 }
0x11f5   : > { %7596 = vmatprep.subr.bf16.mxu1 %v7755_v3 }
0x11f8   : > { %7598 = vmatpush3.bf16.msra.mxu1 %v7597_v61 }
0x11f9   : > { %7599 = vmatprep.subr.bf16.mxu1 %v7755_v3 }
0x11fc   : > { %7601 = vmatpush3.bf16.msra.mxu1 %v7600_v1 }
0x11fd   : > { %7602 = vmatprep.subr.bf16.mxu1 %v7755_v3 }
0x12ae   : > { %v5554_v15 = vpop.f32.mrb[60].mxu0 }
0x12af   : > { %v7203_v23 = vpop.f32.mrb[61].mxu0  ;;  %v5777_v21 = vsel %vm715_vm1, %v5554_v15, 0.0 }
0x12b6   : > { %v5700_v16 = vpop.f32.mrb[62].mxu0 }
0x12b7   : > { %v7213_v17 = vpop.f32.mrb[63].mxu0  ;;  %v5780_v30 = vsel %vm715_vm1, %v5700_v16, 0.0 }
0x12be   : > { %v5627_v20 = vpop.f32.mrb[56].mxu1 }
0x12bf   : > { %v5778_v24 = vsel %vm715_vm1, %v5627_v20, 0.0  ;;  %v7208_v25 = vpop.f32.mrb[57].mxu1 }
0x12c0   : > { %v5779_v26 = vadd.f32 %v5778_v24, %v5777_v21  ;;  %v6335_v25 = vld [vmem:[%s9227_s29] ss:$0 sm:$0xff]  ;;  %s7697_s29 = scalar_lea.vmem %s7696_s1, 256 }
0x12c1   : > { %p7699_p1 = scmp.lt.s32.totalorder %s7697_s29, %s7691_s26 }
0x12c2   : > { %v5781_v33 = vadd.f32 %v5780_v30, %v5779_v26  ;;  %v6336_v30 = vld [vmem:[%s9228_s2] ss:$0 sm:$0xff] }
0x12c3   : > { %p7700_p2 = por %p7699_p1, %p7698_p0 }
0x12c5   : > { %p7701_p3 = pnand %p7700_p2, %p7694_p13 }
0x12c6   : > { %v5773_v35 = vpop.f32.mrb[58].mxu1 }
0x12c7   : > { %v5782_v37 = vsel %vm715_vm1, %v5773_v35, 0.0  ;;  %v7218_v38 = vpop.f32.mrb[59].mxu1 }
0x12c8   : > { %v5783_v27 = vadd.f32 %v5782_v37, %v5781_v33 }
0x12ca   : > { %v5784_v39 = vadd.f32 %v5783_v27, %v8696_v0  ;;  %v7588_v0 = vpack.c.bf16 %v6318_v32, %v6317_v18 }
0x12cc   : > { %v5793_v40 = vadd.f32 %v6312_v8, %v5784_v39  ;;  %7589 = vmatpush3.bf16.msra.mxu0 %v7588_v0 }
0x12cd   : > { %7590 = vmatprep.subr.bf16.mxu0 %v7755_v3  ;;  %v6330_v3 = vld [vmem:[%s9185_s17 + $0x70] sm:$0xff] }
0x12ce   : > { %v5798_v41 = vsel %vm715_vm1, %v5793_v40, 0.0  ;;  %v7603_v42 = vpack.c.bf16 %v6331_v34, %v6330_v3 }
0x12cf   : > { %5799 = vadd.xlane.f32.xlu0 %v5798_v41 }
0x12d0   : > { %7592 = vmatpush3.bf16.msra.mxu0 %v7591_v52  ;;  %7604 = vmatpush3.bf16.msra.mxu1 %v7603_v42 }
0x135c   : > { %v5800_v31 = vpop.xlane.xlu0 %5799 }
0x135d   : > { %v5801_v45 = vmul.f32 0.03125, %v5800_v31 }
0x135f   : > { %v5802_v47 = vsub.f32 %v5793_v40, %v5801_v45 }
0x1361   : > { %v5803_v46 = vmul.f32 %v5802_v47, %v5802_v47 }
0x1363   : > { %v5804_v9 = vsel %vm715_vm1, %v5803_v46, 0.0 }
0x1364   : > { %5805 = vadd.xlane.f32.xlu1 %v5804_v9 }
0x13f1   : > { %v5806_v5 = vpop.xlane.xlu1 %5805 }
0x13f2   : > { %v5807_v10 = vmul.f32 0.03125, %v5806_v5 }
0x13f4   : > { %v5808_v4 = vadd.f32 1e-12, %v5807_v10 }
0x13f6   : > { %7687 = vrsqrt.f32 %v5808_v4 }
0x1400   : > { %v7688_v14 = vpop.eup %7687 }
0x1401   : > { %v5810_v19 = vmul.f32 %v7688_v14, %v5802_v47 }
0x1403   : > { %v5817_v28 = vmul.f32 %v6315_v2, %v5810_v19 }
0x1405   : > { %v5824_v29 = vadd.f32 %v6316_v22, %v5817_v28 }
0x1407   : > { %7228 = vmatmul.mubr.msk.f32.vlgmr.msra.gmra.mrb[64].mxu0 %vm715_vm1, %v5824_v29 }
0x14da   : > { %v5907_v36 = vpop.f32.mrb[64].mxu0 }
0x14db   : > { %v5908_v48 = vadd.f32 %v6322_v43, %v5907_v36  ;;  %v7229_v44 = vpop.f32.mrb[65].mxu0 }
0x14dd   : > { %v5911_v49 = vmax.f32 %v5908_v48, 0.0 }
0x14df   : > { %7247 = vmatmul.mubr.msk.f32.vlgmr.msra.gmra.mrb[60].mxu1 %vm3737_vm4, %v5911_v49 }
0x15b2   : > { %v5990_v54 = vpop.f32.mrb[60].mxu1 }
0x15b3   : > { %v5994_v58 = vadd.f32 %v5990_v54, %v5793_v40  ;;  %v7248_v6 = vpop.f32.mrb[61].mxu1 }
0x15b5   : > { %v6003_v7 = vadd.f32 %v6334_v55, %v5994_v58 }
0x15b7   : > { %v6006_v11 = vsel %vm715_vm1, %v6003_v7, 0.0 }
0x15b8   : > { %6007 = vadd.xlane.f32.xlu0 %v6006_v11 }
0x1645   : > { %v6008_v12 = vpop.xlane.xlu0 %6007 }
0x1646   : > { %v6009_v13 = vmul.f32 0.03125, %v6008_v12 }
0x1648   : > { %v6010_v15 = vsub.f32 %v6003_v7, %v6009_v13 }
0x164a   : > { %v6011_v23 = vmul.f32 %v6010_v15, %v6010_v15 }
0x164c   : > { %v6012_v16 = vsel %vm715_vm1, %v6011_v23, 0.0 }
0x164d   : > { %6013 = vadd.xlane.f32.xlu1 %v6012_v16 }
0x16da   : > { %v6014_v17 = vpop.xlane.xlu1 %6013 }
0x16db   : > { %v6015_v20 = vmul.f32 0.03125, %v6014_v17 }
0x16dd   : > { %v6016_v21 = vadd.f32 1e-12, %v6015_v20 }
0x16df   : > { %7689 = vrsqrt.f32 %v6016_v21 }
0x16e9   : > { %v7690_v24 = vpop.eup %7689 }
0x16ea   : > { %v6018_v26 = vmul.f32 %v7690_v24, %v6010_v15 }
0x16ec   : > { %v6025_v33 = vmul.f32 %v6335_v25, %v6018_v26 }
0x16ee   : > { %v6032_v35 = vadd.f32 %v6336_v30, %v6025_v33 }
0x16f0   : > { %6033 = vst.msk [vmem:[%s660_s30] sm:$0xff] %vm715_vm1, %v6032_v35 }
0x16f1   : > { %7704 = shalt.err (!%p7701_p3)
}
0x16f2   : > { %s7705_s27 = scalar_lea.hbm %s9125_s7, 128  ;;  %s7709_s2 = scalar_lea.hbm %s9229_s6, 256 }
0x16f3   : > { %p7706_p4 = scmp.ne.s32.totalorder %s9125_s7, %s7705_s27  ;;  %p7710_p9 = scmp.lt.u32.totalorder %s9125_s7, %s9229_s6 }
0x16f4   : > { %p7711_p10 = scmp.lt.u32.totalorder %s7709_s2, %s7705_s27  ;;  %p7713_p12 = scmp.lt.u32.totalorder %s7705_s27, %s9125_s7 }
0x16f5   : > { %p7707_p7 = pnand %p7706_p4, %p7908_p5 }
0x16f6   : > { %p7712_p11 = por %p7711_p10, %p7710_p9 }
0x16f7   : > { %p7708_p8 = pneg %p7707_p7 }
0x16f8   : > { %p7714_p13 = por %p7713_p12, %p7712_p11 }
0x16fa   : > { %p7715_p0 = pnand %p7714_p13, %p7708_p8 }
0x16fc   : > { %7718 = shalt.err (!%p7715_p0)
}
0x16fd   : > { %7606 = dma.vmem_to_hbm [thread:$0]  (%p7908_p5), %s9127_s4, 128, %s9125_s7, %s6035_s28  }
0x16fe PF: > { %s9230_s21 = sld [smem:[#allocation7_spill]]  ;;  %s9231_s20 = sld [smem:[#allocation5_spill]] }
0x1704   : > { %p7612_p1 = scmp.ge.s32.totalorder %s9230_s21, 2  ;;  %s6060_s3 = sand.u32 1, %s9231_s20  }
0x1705   : > { %s6061_s1 = scalar_lea.sflag [#allocation3], %s6060_s3 }
0x1706   : > { %p7609_p2 = pnand %p7612_p1, %p7912_p6 }
0x1708   : > { %7736 = dma.done.wait (!%p7609_p2), %s6061_s1, 128  }
0x1709   : > { %7738 = vsyncadd (!%p7609_p2), %s6061_s1, 4294967168  ;;  %s9233_s27 = sld [smem:[#allocation8_spill]]  ;;  %s9234_s29 = sld [smem:[#allocation6_spill]] }
0x170a   : > { %s9235_s26 = sld [smem:[#allocation9_spill]]  ;;  %s9236_s2 = smov %s7745_s25 }
0x170f   : > { %p31_p3 = scmp.ge.s32.totalorder %s9233_s27, 4   ;;  %s9237_s25 = smov %s9234_s29 }
0x1711   :  { %33 = sbr.rel (!%p31_p3) target bundleno = 15 (0xf), region = 160 }
0x1718   :  { %6066 = vsyncpa [#allocation3], 1 }
0x1719   :  { %6068 = vsyncpa [#allocation3 + $0x1], 1 }

</bundles_post_ra>
